<compile_context>
chip_gen: v7x
topology: tpu7x:2x2x1
jax: 0.10.0
libtpu: 0.0.40
codegen_flags: <defaults>
</compile_context>

<pallas_src>
import functools
import math

import jax
import jax.numpy as jnp
from jax.experimental import pallas as pl
from jax.experimental.pallas import tpu as pltpu

_LN_EPS = 1e-5        # PyTorch nn.LayerNorm default
_MASK_NEG = -1e30     # finite "minus infinity": no NaN for fully-masked rows
                      # (must stay an f32 add; would become -inf in bf16)


# ----------------------------- in-kernel helpers -----------------------------

def _layer_norm(x, gamma, beta):
    # x: (..., D) f32; gamma/beta: (1, D) f32
    mu = jnp.mean(x, axis=-1, keepdims=True)
    var = jnp.mean(jnp.square(x - mu), axis=-1, keepdims=True)
    return (x - mu) * jax.lax.rsqrt(var + _LN_EPS) * gamma + beta


def _attention_heads(q, k, v, bias, att_ref, Bt, Sq, Sk, H, D):
    """Multi-head attention core (no output projection).

    q: (Bt*Sq, D) f32 (query scale already folded into the Q projection).
    k, v: (Bt*Sk, D) f32.  bias: (Bt, Sq or 1, Sk) additive f32 mask bias.
    Per-head context vectors are written into att_ref[:, h*dk:(h+1)*dk]
    ((Bt*Sq, D) f32 VMEM scratch) so the caller does ONE K=D output matmul.
    """
    dk = D // H
    q3 = q.reshape(Bt, Sq, D).astype(jnp.bfloat16)
    k3 = k.reshape(Bt, Sk, D).astype(jnp.bfloat16)
    v3 = v.reshape(Bt, Sk, D).astype(jnp.bfloat16)
    # Broadcast the mask bias ONCE (not per head): JAX does not CSE broadcasts.
    bias_full = jnp.broadcast_to(bias, (Bt, Sq, Sk))
    # TODO(synk): for long sequences, replace the full (Sq, Sk) score matrix
    # with a KV-tiled online-softmax accumulator (mandatory to fit v7x's
    # 64 MiB VMEM at Sc >= 2k); also consider packing 2+ heads per MXU call
    # (block-diagonal K) since dk < 128 under-fills the systolic depth.
    for h in range(H):                                  # small static unroll
        lo, hi = h * dk, (h + 1) * dk
        # Bt-batched score matmul (bf16 operands, f32 accumulation)
        s = jnp.einsum('bqd,bkd->bqk', q3[:, :, lo:hi], k3[:, :, lo:hi],
                       preferred_element_type=jnp.float32)       # (Bt, Sq, Sk)
        s = s + bias_full                                        # hoisted mask
        s = s - jnp.max(s, axis=-1, keepdims=True)
        p = jnp.exp(s)
        p = p * pl.reciprocal(jnp.sum(p, axis=-1, keepdims=True), approx=True)
        ctx = jnp.einsum('bqk,bkd->bqd', p.astype(jnp.bfloat16),
                         v3[:, :, lo:hi], preferred_element_type=jnp.float32)
        att_ref[:, lo:hi] = ctx.reshape(Bt * Sq, dk)
    return att_ref[...]


# --------------------------------- kernel ------------------------------------

def fusion_kernel(c_ref, m1_ref, cmask_ref, mmask_ref,
                  wqkv_s_ref, bqkv_s_ref, wo_s_ref, bo_s_ref,
                  wq_e_ref, bq_e_ref, wkv_e_ref, bkv_e_ref, wo_e_ref, bo_e_ref,
                  ln1_g_ref, ln1_b_ref, ln2_g_ref, ln2_b_ref,
                  lnc_g_ref, lnc_b_ref, o_ref, att_ref, *, H):
    Bt, Sc, Dc = c_ref.shape
    _, Sm, Dm = m1_ref.shape
    D = wo_s_ref.shape[0]

    C = c_ref[...].astype(jnp.float32)                       # (Bt, Sc, Dc)

    # Additive mask biases (f32), computed once per attention call.
    c_bias = jnp.where(cmask_ref[...].astype(jnp.int32) != 0, 0.0, _MASK_NEG)
    m_bias = jnp.where(mmask_ref[...].astype(jnp.int32) != 0, 0.0, _MASK_NEG)

    # ---- residual 1: x + self_att(LN1(x), LN1(x), LN1(x)) -------------------
    # (1/sqrt(dk) query scale is folded into wqkv_s / bqkv_s on the host.)
    Cn = _layer_norm(C, ln1_g_ref[...], ln1_b_ref[...])
    x = Cn.reshape(Bt * Sc, Dc).astype(jnp.bfloat16)
    qkv = jnp.dot(x, wqkv_s_ref[...],
                  preferred_element_type=jnp.float32) + bqkv_s_ref[...]
    att = _attention_heads(qkv[:, :D], qkv[:, D:2 * D], qkv[:, 2 * D:],
                           c_bias, att_ref, Bt, Sc, Sc, H, D)
    out = jnp.dot(att.astype(jnp.bfloat16), wo_s_ref[...],
                  preferred_element_type=jnp.float32) + bo_s_ref[...]
    C = C + out.reshape(Bt, Sc, Dc)

    # ---- residual 2: x + enc_att(LN2(x), M1, M1) ----------------------------
    Cn = _layer_norm(C, ln2_g_ref[...], ln2_b_ref[...])
    q = jnp.dot(Cn.reshape(Bt * Sc, Dc).astype(jnp.bfloat16), wq_e_ref[...],
                preferred_element_type=jnp.float32) + bq_e_ref[...]
    m = m1_ref[...].reshape(Bt * Sm, Dm).astype(jnp.bfloat16)
    kv = jnp.dot(m, wkv_e_ref[...],
                 preferred_element_type=jnp.float32) + bkv_e_ref[...]
    att = _attention_heads(q, kv[:, :D], kv[:, D:], m_bias, att_ref,
                           Bt, Sc, Sm, H, D)
    out = jnp.dot(att.astype(jnp.bfloat16), wo_e_ref[...],
                  preferred_element_type=jnp.float32) + bo_e_ref[...]
    C = C + out.reshape(Bt, Sc, Dc)

    # ---- final LayerNorm (normC) ---------------------------------------------
    o_ref[...] = _layer_norm(C, lnc_g_ref[...], lnc_b_ref[...]).astype(o_ref.dtype)


# ------------------------------ wrapper / params ------------------------------

def init_params(key, d_model_C, d_model_M1, d_model):
    """Deterministic synthetic init (nn.Linear-style uniform; LN gamma=1, beta=0)."""
    ks = jax.random.split(key, 8)

    def lin(k, din, dout):
        k1, k2 = jax.random.split(k)
        bound = 1.0 / math.sqrt(din)
        W = jax.random.uniform(k1, (din, dout), jnp.float32, -bound, bound)
        b = jax.random.uniform(k2, (1, dout), jnp.float32, -bound, bound)
        return W, b

    p = {}
    # self_att: MultiheadedAttention(Dc, Dc, Dc, H, dout, d_model)
    p['wq_s'], p['bq_s'] = lin(ks[0], d_model_C, d_model)
    p['wk_s'], p['bk_s'] = lin(ks[1], d_model_C, d_model)
    p['wv_s'], p['bv_s'] = lin(ks[2], d_model_C, d_model)
    p['wo_s'], p['bo_s'] = lin(ks[3], d_model, d_model_C)
    # enc_att: MultiheadedAttention(Dc, Dm1, Dm1, H, dout, d_model)
    p['wq_e'], p['bq_e'] = lin(ks[4], d_model_C, d_model)
    p['wk_e'], p['bk_e'] = lin(ks[5], d_model_M1, d_model)
    p['wv_e'], p['bv_e'] = lin(ks[6], d_model_M1, d_model)
    p['wo_e'], p['bo_e'] = lin(ks[7], d_model, d_model_C)
    # LayerNorms (res_layer_self_att.norm, res_layer_enc_att.norm, normC)
    for name in ('ln1', 'ln2', 'lnc'):
        p[name + '_g'] = jnp.ones((1, d_model_C), jnp.float32)
        p[name + '_b'] = jnp.zeros((1, d_model_C), jnp.float32)
    return p


def _fuse_weights(params, H, mxu_dtype=jnp.bfloat16):
    """Host-side prep: fused QKV / KV matrices, bf16 MXU weights, f32 biases/LN.
    The 1/sqrt(dk) query scale is folded into the Q weight/bias (one-time
    weight transform, not a per-call activation pre-scale).
    TODO(synk): on v7x, optionally store projection weights in fp8 (MXU native)
    behind an accuracy gate; keep bf16 on v5e/v6e."""
    p, f32 = params, jnp.float32
    D = p['wq_s'].shape[1]
    scale = 1.0 / math.sqrt(D // H)
    wqkv_s = jnp.concatenate(
        [p['wq_s'] * scale, p['wk_s'], p['wv_s']], axis=1).astype(mxu_dtype)
    bqkv_s = jnp.concatenate(
        [p['bq_s'] * scale, p['bk_s'], p['bv_s']], axis=1).astype(f32)
    wkv_e = jnp.concatenate([p['wk_e'], p['wv_e']], axis=1).astype(mxu_dtype)
    bkv_e = jnp.concatenate([p['bk_e'], p['bv_e']], axis=1).astype(f32)
    return [
        wqkv_s, bqkv_s,
        p['wo_s'].astype(mxu_dtype), p['bo_s'].astype(f32),
        (p['wq_e'] * scale).astype(mxu_dtype), (p['bq_e'] * scale).astype(f32),
        wkv_e, bkv_e,
        p['wo_e'].astype(mxu_dtype), p['bo_e'].astype(f32),
        p['ln1_g'].astype(f32), p['ln1_b'].astype(f32),
        p['ln2_g'].astype(f32), p['ln2_b'].astype(f32),
        p['lnc_g'].astype(f32), p['lnc_b'].astype(f32),
    ]


def _vmem_budget():
    """Generation-aware VMEM ceiling (+ row target for tile sizing)."""
    cap = 64 * 1024 * 1024
    try:
        cap = int(pltpu.get_tpu_info().vmem_capacity_bytes)
    except Exception:
        pass
    usable = (cap * 4) // 5            # ~20% headroom for Mosaic scratch/spill
    target_rows = 512 if cap > (96 << 20) else 256
    return usable, target_rows


def _pick_bt(B, Sc, target_rows, min_steps=2):
    """Largest divisor of B with Bt*Sc <= target_rows, keeping the grid at
    >= min_steps steps (so both v7x TensorCores get work) whenever possible."""
    best = 1
    for cand in range(1, B + 1):
        if B % cand != 0:
            continue
        if cand * Sc > max(target_rows, Sc):
            continue
        if cand > 1 and B // cand < min_steps:
            continue
        best = cand
    return best


def unimodal_fusion_layer(x, masks, params, H, *, bt=None):
    C, memory = x
    M1 = memory
    m1_mask, c_mask = masks
    B, Sc, Dc = C.shape
    _, Sm, Dm = M1.shape
    D = params['wq_s'].shape[1]
    assert D % H == 0

    vmem_usable, target_rows = _vmem_budget()
    bt = _pick_bt(B, Sc, target_rows) if bt is None else bt
    assert B % bt == 0

    weights = _fuse_weights(params, H)
    # int8 masks: c_mask is the only O(S^2) input -> 4x less DMA than f32.
    # TODO(synk): for structured masks (causal / simple padding) generate the
    # bias in-kernel from broadcasted_iota instead of DMA'ing the (B,Sc,Sc) mask.
    c_mask_i8 = (c_mask != 0).astype(jnp.int8)
    m1_mask_i8 = (m1_mask != 0).astype(jnp.int8)

    data_specs = [
        pl.BlockSpec((bt, Sc, Dc), lambda b: (b, 0, 0)),   # C
        pl.BlockSpec((bt, Sm, Dm), lambda b: (b, 0, 0)),   # M1 (memory)
        pl.BlockSpec((bt, Sc, Sc), lambda b: (b, 0, 0)),   # c_mask (int8)
        pl.BlockSpec((bt, 1, Sm), lambda b: (b, 0, 0)),    # m1_mask (int8)
    ]

    def weight_spec(a, single_buffer):
        nd = a.ndim
        if single_buffer:
            # Constant index map -> resident operand; single buffer saves VMEM.
            return pl.BlockSpec(a.shape, lambda *_: (0,) * nd,
                                pipeline_mode=pl.Buffered(1))
        return pl.BlockSpec(a.shape, lambda *_: (0,) * nd)

    # Rough per-step VMEM budget: data blocks double-buffered, weights 1x,
    # plus f32 intermediates; clamped to the generation-aware usable ceiling.
    w_bytes = sum(int(w.size) * w.dtype.itemsize for w in weights)
    blk_bytes = 2 * ((2 * bt * Sc * Dc + bt * Sm * Dm) * 4
                     + bt * Sc * Sc + bt * Sm)
    interm = (bt * Sc * (3 * D + 2 * D + 4 * max(Sc, Sm) + 4 * max(D, Dc))
              + bt * Sm * 2 * D) * 4
    vmem_limit = int(min(vmem_usable,
                         max(32 * 1024 * 1024, 2 * (w_bytes + blk_bytes + interm))))

    # Advisory cost estimate (whole call) for XLA's scheduler.
    rows, rows_m = B * Sc, B * Sm
    mm_flops = (2 * rows * Dc * 3 * D + 2 * rows * D * Dc          # self qkv + out
                + 2 * rows * Dc * D + 2 * rows_m * Dm * 2 * D      # enc q + kv
                + 2 * rows * D * Dc)                                # enc out
    att_flops = 4 * B * Sc * (Sc + Sm) * D
    trans = B * H * Sc * (Sc + Sm) + 3 * B * Sc
    io_bytes = ((C.size + M1.size + B * Sc * Dc) * 4
                + int(c_mask_i8.size) + int(m1_mask_i8.size) + w_bytes)
    cost = pl.CostEstimate(flops=int(mm_flops + att_flops),
                           transcendentals=int(trans),
                           bytes_accessed=int(io_bytes))

    def build(single_buffer_weights):
        in_specs = data_specs + [weight_spec(w, single_buffer_weights)
                                 for w in weights]
        return pl.pallas_call(
            functools.partial(fusion_kernel, H=H),
            out_shape=jax.ShapeDtypeStruct((B, Sc, Dc), C.dtype),
            grid=(B // bt,),
            in_specs=in_specs,
            out_specs=pl.BlockSpec((bt, Sc, Dc), lambda b: (b, 0, 0)),
            scratch_shapes=[pltpu.VMEM((bt * Sc, D), jnp.float32)],
            compiler_params=pltpu.CompilerParams(
                dimension_semantics=("parallel",),
                vmem_limit_bytes=vmem_limit),
            cost_estimate=cost,
        )

    args = (C, M1, c_mask_i8, m1_mask_i8, *weights)
    try:
        Cm = jax.block_until_ready(build(True)(*args))
    except Exception:
        # TODO(synk): drop this fallback once pl.Buffered(1) resident-weight
        # specs are confirmed available on the deployed jax/libtpu version.
        Cm = build(False)(*args)

    # TODO(synk): for long sequences, tile the key/value axis with an online-
    # softmax accumulator (flash-style) and add a parallel query-tile grid axis;
    # pad Dc/D to multiples of 128 (lane) and Sc/Sm to multiples of 8 (sublane)
    # at this boundary for unmasked lane-dense stores.
    return (Cm, memory)


# ------------------------------ pure-JAX reference ----------------------------

def _ref_forward(x, masks, params, H, matmul_dtype=jnp.float32):
    """Reference.  With matmul_dtype=bf16 it mirrors the kernel's cast points
    (bf16 MXU operands, f32 accumulation / epilogues)."""
    C, memory = x
    M1 = memory
    m1_mask, c_mask = masks
    cast = lambda a: a.astype(matmul_dtype)

    def ln(y, g, b):
        mu = y.mean(-1, keepdims=True)
        var = ((y - mu) ** 2).mean(-1, keepdims=True)
        return (y - mu) / jnp.sqrt(var + _LN_EPS) * g + b

    def mha(Q, K, V, mask, pfx):
        Wq, bq = params['wq_' + pfx], params['bq_' + pfx]
        Wk, bk = params['wk_' + pfx], params['bk_' + pfx]
        Wv, bv = params['wv_' + pfx], params['bv_' + pfx]
        Wo, bo = params['wo_' + pfx], params['bo_' + pfx]
        D = Wq.shape[1]
        dk = D // H
        B, Sq, _ = Q.shape
        mm = lambda a, w: jnp.einsum('bsd,de->bse', cast(a), cast(w),
                                     preferred_element_type=jnp.float32)
        q = (mm(Q, Wq) + bq) * (1.0 / math.sqrt(dk))
        k = mm(K, Wk) + bk
        v = mm(V, Wv) + bv
        q = q.reshape(B, Sq, H, dk).transpose(0, 2, 1, 3)
        k = k.reshape(B, -1, H, dk).transpose(0, 2, 1, 3)
        v = v.reshape(B, -1, H, dk).transpose(0, 2, 1, 3)
        s = jnp.einsum('bhqd,bhkd->bhqk', cast(q), cast(k),
                       preferred_element_type=jnp.float32)
        s = s + jnp.where(mask[:, None] != 0, 0.0, _MASK_NEG)
        s = s - s.max(-1, keepdims=True)
        p = jnp.exp(s)
        p = p / p.sum(-1, keepdims=True)
        o = jnp.einsum('bhqk,bhkd->bhqd', cast(p), cast(v),
                       preferred_element_type=jnp.float32)
        o = o.transpose(0, 2, 1, 3).reshape(B, Sq, D)
        return jnp.einsum('bsd,de->bse', cast(o), cast(Wo),
                          preferred_element_type=jnp.float32) + bo

    C = C.astype(jnp.float32)
    Cn = ln(C, params['ln1_g'], params['ln1_b'])
    C = C + mha(Cn, Cn, Cn, c_mask, 's')
    Cn = ln(C, params['ln2_g'], params['ln2_b'])
    C = C + mha(Cn, M1, M1, m1_mask, 'e')
    Cm = ln(C, params['lnc_g'], params['lnc_b'])
    return (Cm, memory)


# ----------------------------------- main -------------------------------------

if __name__ == "__main__":
    B, Sc, Sm = 2, 8, 8
    d_model_C, d_model_M1, d_model = 32, 32, 32
    H = 4
    # d_ff_c / dout_p exist in __init__ but are inert in forward (FFN unused, dropout=eval)

    key = jax.random.PRNGKey(0)
    k_c, k_m, k_p = jax.random.split(key, 3)
    C = jax.random.normal(k_c, (B, Sc, d_model_C), jnp.float32)
    M1 = jax.random.normal(k_m, (B, Sm, d_model_M1), jnp.float32)

    # c_mask: causal (B, Sc, Sc); m1_mask: first 6 memory positions valid (B, 1, Sm)
    c_mask = jnp.broadcast_to(jnp.tril(jnp.ones((Sc, Sc), jnp.float32)), (B, Sc, Sc))
    m1_mask = jnp.broadcast_to(
        (jnp.arange(Sm) < 6).astype(jnp.float32)[None, None, :], (B, 1, Sm))
    c_mask = jnp.array(c_mask)
    m1_mask = jnp.array(m1_mask)

    params = init_params(k_p, d_model_C, d_model_M1, d_model)

    (Cm, mem_out) = unimodal_fusion_layer((C, M1), (m1_mask, c_mask), params, H)
    Cm = jax.block_until_ready(Cm)

    # 1) bf16-matched reference (same MXU cast points) -> tight check
    (Cm_bf16, _) = _ref_forward((C, M1), (m1_mask, c_mask), params, H,
                                matmul_dtype=jnp.bfloat16)
    err_matched = float(jnp.max(jnp.abs(Cm - Cm_bf16)))
    assert jnp.allclose(Cm, Cm_bf16, atol=1e-2, rtol=1e-2), err_matched

    # 2) pure-f32 reference -> loose sanity check that module semantics hold
    (Cm_f32, _) = _ref_forward((C, M1), (m1_mask, c_mask), params, H,
                               matmul_dtype=jnp.float32)
    err_f32 = float(jnp.max(jnp.abs(Cm - Cm_f32)))
    assert err_f32 < 0.2, err_f32

    assert Cm.shape == (B, Sc, d_model_C)
    assert mem_out.shape == (B, Sm, d_model_M1)

    print("KERNEL_OK")
</pallas_src>

<mosaic_0001>
module attributes {stable_mosaic.version = 11 : i64} {
  func.func @fusion_kernel(%arg0: i32, %arg1: memref<1x8x32xf32, #tpu.memory_space<vmem>>, %arg2: memref<1x8x32xf32, #tpu.memory_space<vmem>>, %arg3: memref<1x8x8xi8, #tpu.memory_space<vmem>>, %arg4: memref<1x1x8xi8, #tpu.memory_space<vmem>>, %arg5: memref<32x96xbf16, #tpu.memory_space<vmem>>, %arg6: memref<1x96xf32, #tpu.memory_space<vmem>>, %arg7: memref<32x32xbf16, #tpu.memory_space<vmem>>, %arg8: memref<1x32xf32, #tpu.memory_space<vmem>>, %arg9: memref<32x32xbf16, #tpu.memory_space<vmem>>, %arg10: memref<1x32xf32, #tpu.memory_space<vmem>>, %arg11: memref<32x64xbf16, #tpu.memory_space<vmem>>, %arg12: memref<1x64xf32, #tpu.memory_space<vmem>>, %arg13: memref<32x32xbf16, #tpu.memory_space<vmem>>, %arg14: memref<1x32xf32, #tpu.memory_space<vmem>>, %arg15: memref<1x32xf32, #tpu.memory_space<vmem>>, %arg16: memref<1x32xf32, #tpu.memory_space<vmem>>, %arg17: memref<1x32xf32, #tpu.memory_space<vmem>>, %arg18: memref<1x32xf32, #tpu.memory_space<vmem>>, %arg19: memref<1x32xf32, #tpu.memory_space<vmem>>, %arg20: memref<1x32xf32, #tpu.memory_space<vmem>>, %arg21: memref<1x8x32xf32, #tpu.memory_space<vmem>>, %arg22: memref<8x32xf32, #tpu.memory_space<vmem>>) attributes {dimension_semantics = [#tpu.dimension_semantics<parallel>], iteration_bounds = array<i64: 2>, scalar_prefetch = 0 : i64, scratch_operands = 1 : i64, tpu.core_type = #tpu.core_type<tc>, window_params = [{transform_indices = @transform_0, window_bounds = array<i64: 1, 8, 32>}, {transform_indices = @transform_1, window_bounds = array<i64: 1, 8, 32>}, {transform_indices = @transform_2, window_bounds = array<i64: 1, 8, 8>}, {transform_indices = @transform_3, window_bounds = array<i64: 1, 1, 8>}, {pipeline_mode = #tpu.pipeline_mode<synchronous>, transform_indices = @transform_4, window_bounds = array<i64: 32, 96>}, {pipeline_mode = #tpu.pipeline_mode<synchronous>, transform_indices = @transform_5, window_bounds = array<i64: 1, 96>}, {pipeline_mode = #tpu.pipeline_mode<synchronous>, transform_indices = @transform_6, window_bounds = array<i64: 32, 32>}, {pipeline_mode = #tpu.pipeline_mode<synchronous>, transform_indices = @transform_7, window_bounds = array<i64: 1, 32>}, {pipeline_mode = #tpu.pipeline_mode<synchronous>, transform_indices = @transform_8, window_bounds = array<i64: 32, 32>}, {pipeline_mode = #tpu.pipeline_mode<synchronous>, transform_indices = @transform_9, window_bounds = array<i64: 1, 32>}, {pipeline_mode = #tpu.pipeline_mode<synchronous>, transform_indices = @transform_10, window_bounds = array<i64: 32, 64>}, {pipeline_mode = #tpu.pipeline_mode<synchronous>, transform_indices = @transform_11, window_bounds = array<i64: 1, 64>}, {pipeline_mode = #tpu.pipeline_mode<synchronous>, transform_indices = @transform_12, window_bounds = array<i64: 32, 32>}, {pipeline_mode = #tpu.pipeline_mode<synchronous>, transform_indices = @transform_13, window_bounds = array<i64: 1, 32>}, {pipeline_mode = #tpu.pipeline_mode<synchronous>, transform_indices = @transform_14, window_bounds = array<i64: 1, 32>}, {pipeline_mode = #tpu.pipeline_mode<synchronous>, transform_indices = @transform_15, window_bounds = array<i64: 1, 32>}, {pipeline_mode = #tpu.pipeline_mode<synchronous>, transform_indices = @transform_16, window_bounds = array<i64: 1, 32>}, {pipeline_mode = #tpu.pipeline_mode<synchronous>, transform_indices = @transform_17, window_bounds = array<i64: 1, 32>}, {pipeline_mode = #tpu.pipeline_mode<synchronous>, transform_indices = @transform_18, window_bounds = array<i64: 1, 32>}, {pipeline_mode = #tpu.pipeline_mode<synchronous>, transform_indices = @transform_19, window_bounds = array<i64: 1, 32>}, {transform_indices = @transform_20, window_bounds = array<i64: 1, 8, 32>}]} {
    %c0 = arith.constant 0 : index
    %c0_0 = arith.constant 0 : index
    %c0_1 = arith.constant 0 : index
    %0 = vector.load %arg1[%c0, %c0_0, %c0_1] : memref<1x8x32xf32, #tpu.memory_space<vmem>>, vector<1x8x32xf32>
    %c0_2 = arith.constant 0 : index
    %c0_3 = arith.constant 0 : index
    %c0_4 = arith.constant 0 : index
    %1 = vector.load %arg3[%c0_2, %c0_3, %c0_4] : memref<1x8x8xi8, #tpu.memory_space<vmem>>, vector<1x8x8xi8>
    %2 = arith.extsi %1 : vector<1x8x8xi8> to vector<1x8x8xi32>
    %c0_i32 = arith.constant 0 : i32
    %3 = vector.broadcast %c0_i32 : i32 to vector<1x8x8xi32>
    %4 = arith.cmpi ne, %2, %3 : vector<1x8x8xi32>
    %cst = arith.constant 0.000000e+00 : f32
    %cst_5 = arith.constant -1.000000e+30 : f32
    %5 = vector.broadcast %cst : f32 to vector<1x8x8xf32>
    %6 = vector.broadcast %cst_5 : f32 to vector<1x8x8xf32>
    %7 = arith.select %4, %5, %6 : vector<1x8x8xi1>, vector<1x8x8xf32>
    %c0_6 = arith.constant 0 : index
    %c0_7 = arith.constant 0 : index
    %c0_8 = arith.constant 0 : index
    %8 = vector.load %arg4[%c0_6, %c0_7, %c0_8] : memref<1x1x8xi8, #tpu.memory_space<vmem>>, vector<1x1x8xi8>
    %9 = arith.extsi %8 : vector<1x1x8xi8> to vector<1x1x8xi32>
    %c0_i32_9 = arith.constant 0 : i32
    %10 = vector.broadcast %c0_i32_9 : i32 to vector<1x1x8xi32>
    %11 = arith.cmpi ne, %9, %10 : vector<1x1x8xi32>
    %cst_10 = arith.constant 0.000000e+00 : f32
    %cst_11 = arith.constant -1.000000e+30 : f32
    %12 = vector.broadcast %cst_10 : f32 to vector<1x1x8xf32>
    %13 = vector.broadcast %cst_11 : f32 to vector<1x1x8xf32>
    %14 = arith.select %11, %12, %13 : vector<1x1x8xi1>, vector<1x1x8xf32>
    %c0_12 = arith.constant 0 : index
    %c0_13 = arith.constant 0 : index
    %15 = vector.load %arg15[%c0_12, %c0_13] : memref<1x32xf32, #tpu.memory_space<vmem>>, vector<1x32xf32>
    %c0_14 = arith.constant 0 : index
    %c0_15 = arith.constant 0 : index
    %16 = vector.load %arg16[%c0_14, %c0_15] : memref<1x32xf32, #tpu.memory_space<vmem>>, vector<1x32xf32>
    %cst_16 = arith.constant dense<0.000000e+00> : vector<1x8xf32>
    %17 = vector.multi_reduction <add>, %0, %cst_16 [2] : vector<1x8x32xf32> to vector<1x8xf32>
    %18 = vector.shape_cast %17 : vector<1x8xf32> to vector<1x8x1xf32>
    %cst_17 = arith.constant 3.200000e+01 : f32
    %19 = vector.broadcast %cst_17 : f32 to vector<1x8x1xf32>
    %20 = arith.divf %18, %19 : vector<1x8x1xf32>
    %21 = vector.broadcast %20 : vector<1x8x1xf32> to vector<1x8x32xf32>
    %22 = arith.subf %0, %21 : vector<1x8x32xf32>
    %23 = arith.mulf %22, %22 : vector<1x8x32xf32>
    %cst_18 = arith.constant dense<0.000000e+00> : vector<1x8xf32>
    %24 = vector.multi_reduction <add>, %23, %cst_18 [2] : vector<1x8x32xf32> to vector<1x8xf32>
    %25 = vector.shape_cast %24 : vector<1x8xf32> to vector<1x8x1xf32>
    %cst_19 = arith.constant 3.200000e+01 : f32
    %26 = vector.broadcast %cst_19 : f32 to vector<1x8x1xf32>
    %27 = arith.divf %25, %26 : vector<1x8x1xf32>
    %28 = vector.broadcast %20 : vector<1x8x1xf32> to vector<1x8x32xf32>
    %29 = arith.subf %0, %28 : vector<1x8x32xf32>
    %cst_20 = arith.constant 9.99999974E-6 : f32
    %30 = vector.broadcast %cst_20 : f32 to vector<1x8x1xf32>
    %31 = arith.addf %27, %30 : vector<1x8x1xf32>
    %32 = math.rsqrt %31 : vector<1x8x1xf32>
    %33 = vector.broadcast %32 : vector<1x8x1xf32> to vector<1x8x32xf32>
    %34 = arith.mulf %29, %33 : vector<1x8x32xf32>
    %35 = vector.shape_cast %15 : vector<1x32xf32> to vector<1x1x32xf32>
    %36 = vector.broadcast %35 : vector<1x1x32xf32> to vector<1x8x32xf32>
    %37 = arith.mulf %34, %36 : vector<1x8x32xf32>
    %38 = vector.shape_cast %16 : vector<1x32xf32> to vector<1x1x32xf32>
    %39 = vector.broadcast %38 : vector<1x1x32xf32> to vector<1x8x32xf32>
    %40 = arith.addf %37, %39 : vector<1x8x32xf32>
    %41 = vector.shape_cast %40 : vector<1x8x32xf32> to vector<8x32xf32>
    %42 = arith.truncf %41 : vector<8x32xf32> to vector<8x32xbf16>
    %c0_21 = arith.constant 0 : index
    %c0_22 = arith.constant 0 : index
    %43 = vector.load %arg5[%c0_21, %c0_22] : memref<32x96xbf16, #tpu.memory_space<vmem>>, vector<32x96xbf16>
    %cst_23 = arith.constant dense<0.000000e+00> : vector<8x96xf32>
    %44 = tpu.matmul %42, %43, %cst_23 {dimension_numbers = #tpu.dot_dimension_numbers<[1], [0], [0], [1], [0, 0, 1, 1], [], []>} : vector<8x32xbf16>, vector<32x96xbf16>, vector<8x96xf32> -> vector<8x96xf32>
    %c0_24 = arith.constant 0 : index
    %c0_25 = arith.constant 0 : index
    %45 = vector.load %arg6[%c0_24, %c0_25] : memref<1x96xf32, #tpu.memory_space<vmem>>, vector<1x96xf32>
    %46 = vector.broadcast %45 : vector<1x96xf32> to vector<8x96xf32>
    %47 = arith.addf %44, %46 : vector<8x96xf32>
    %48 = vector.extract_strided_slice %47 {offsets = [0, 0], sizes = [8, 32], strides = [1, 1]} : vector<8x96xf32> to vector<8x32xf32>
    %49 = vector.extract_strided_slice %47 {offsets = [0, 32], sizes = [8, 32], strides = [1, 1]} : vector<8x96xf32> to vector<8x32xf32>
    %50 = vector.extract_strided_slice %47 {offsets = [0, 64], sizes = [8, 32], strides = [1, 1]} : vector<8x96xf32> to vector<8x32xf32>
    %51 = vector.shape_cast %48 : vector<8x32xf32> to vector<1x8x32xf32>
    %52 = arith.truncf %51 : vector<1x8x32xf32> to vector<1x8x32xbf16>
    %53 = vector.shape_cast %49 : vector<8x32xf32> to vector<1x8x32xf32>
    %54 = arith.truncf %53 : vector<1x8x32xf32> to vector<1x8x32xbf16>
    %55 = vector.shape_cast %50 : vector<8x32xf32> to vector<1x8x32xf32>
    %56 = arith.truncf %55 : vector<1x8x32xf32> to vector<1x8x32xbf16>
    %57 = vector.extract_strided_slice %52 {offsets = [0, 0, 0], sizes = [1, 8, 8], strides = [1, 1, 1]} : vector<1x8x32xbf16> to vector<1x8x8xbf16>
    %58 = vector.extract_strided_slice %54 {offsets = [0, 0, 0], sizes = [1, 8, 8], strides = [1, 1, 1]} : vector<1x8x32xbf16> to vector<1x8x8xbf16>
    "tpu.trace_start"() <{level = 10 : i32, message = "bqd,bkd->bqk"}> : () -> ()
    %cst_26 = arith.constant dense<0.000000e+00> : vector<1x8x8xf32>
    %59 = tpu.matmul %57, %58, %cst_26 {dimension_numbers = #tpu.dot_dimension_numbers<[2], [2], [1], [1], [0, 0, 0, 1, 1, 1], [0], [0]>} : vector<1x8x8xbf16>, vector<1x8x8xbf16>, vector<1x8x8xf32> -> vector<1x8x8xf32>
    "tpu.trace_stop"() : () -> ()
    %60 = arith.addf %59, %7 : vector<1x8x8xf32>
    %cst_27 = arith.constant dense<0xFF800000> : vector<1x8xf32>
    %61 = vector.multi_reduction <maximumf>, %60, %cst_27 [2] : vector<1x8x8xf32> to vector<1x8xf32>
    %62 = vector.shape_cast %61 : vector<1x8xf32> to vector<1x8x1xf32>
    %63 = vector.broadcast %62 : vector<1x8x1xf32> to vector<1x8x8xf32>
    %64 = arith.subf %60, %63 : vector<1x8x8xf32>
    %65 = math.exp %64 : vector<1x8x8xf32>
    %cst_28 = arith.constant dense<0.000000e+00> : vector<1x8xf32>
    %66 = vector.multi_reduction <add>, %65, %cst_28 [2] : vector<1x8x8xf32> to vector<1x8xf32>
    %67 = vector.shape_cast %66 : vector<1x8xf32> to vector<1x8x1xf32>
    %68 = tpu.reciprocal %67 {approx = true} : vector<1x8x1xf32> -> vector<1x8x1xf32>
    %69 = vector.broadcast %68 : vector<1x8x1xf32> to vector<1x8x8xf32>
    %70 = arith.mulf %65, %69 : vector<1x8x8xf32>
    %71 = arith.truncf %70 : vector<1x8x8xf32> to vector<1x8x8xbf16>
    %72 = vector.extract_strided_slice %56 {offsets = [0, 0, 0], sizes = [1, 8, 8], strides = [1, 1, 1]} : vector<1x8x32xbf16> to vector<1x8x8xbf16>
    "tpu.trace_start"() <{level = 10 : i32, message = "bqk,bkd->bqd"}> : () -> ()
    %cst_29 = arith.constant dense<0.000000e+00> : vector<1x8x8xf32>
    %73 = tpu.matmul %71, %72, %cst_29 {dimension_numbers = #tpu.dot_dimension_numbers<[2], [1], [1], [2], [0, 0, 0, 1, 1, 2], [0], [0]>} : vector<1x8x8xbf16>, vector<1x8x8xbf16>, vector<1x8x8xf32> -> vector<1x8x8xf32>
    "tpu.trace_stop"() : () -> ()
    %74 = vector.shape_cast %73 : vector<1x8x8xf32> to vector<8x8xf32>
    %c0_30 = arith.constant 0 : index
    %c0_31 = arith.constant 0 : index
    %75 = vector.load %arg22[%c0_30, %c0_31] : memref<8x32xf32, #tpu.memory_space<vmem>>, vector<8x8xf32>
    tpu.vector_store %arg22[%c0_30, %c0_31], %74 {strides = array<i32>} : memref<8x32xf32, #tpu.memory_space<vmem>>, vector<8x8xf32>,
    %76 = vector.extract_strided_slice %52 {offsets = [0, 0, 8], sizes = [1, 8, 8], strides = [1, 1, 1]} : vector<1x8x32xbf16> to vector<1x8x8xbf16>
    %77 = vector.extract_strided_slice %54 {offsets = [0, 0, 8], sizes = [1, 8, 8], strides = [1, 1, 1]} : vector<1x8x32xbf16> to vector<1x8x8xbf16>
    "tpu.trace_start"() <{level = 10 : i32, message = "bqd,bkd->bqk"}> : () -> ()
    %cst_32 = arith.constant dense<0.000000e+00> : vector<1x8x8xf32>
    %78 = tpu.matmul %76, %77, %cst_32 {dimension_numbers = #tpu.dot_dimension_numbers<[2], [2], [1], [1], [0, 0, 0, 1, 1, 1], [0], [0]>} : vector<1x8x8xbf16>, vector<1x8x8xbf16>, vector<1x8x8xf32> -> vector<1x8x8xf32>
    "tpu.trace_stop"() : () -> ()
    %79 = arith.addf %78, %7 : vector<1x8x8xf32>
    %cst_33 = arith.constant dense<0xFF800000> : vector<1x8xf32>
    %80 = vector.multi_reduction <maximumf>, %79, %cst_33 [2] : vector<1x8x8xf32> to vector<1x8xf32>
    %81 = vector.shape_cast %80 : vector<1x8xf32> to vector<1x8x1xf32>
    %82 = vector.broadcast %81 : vector<1x8x1xf32> to vector<1x8x8xf32>
    %83 = arith.subf %79, %82 : vector<1x8x8xf32>
    %84 = math.exp %83 : vector<1x8x8xf32>
    %cst_34 = arith.constant dense<0.000000e+00> : vector<1x8xf32>
    %85 = vector.multi_reduction <add>, %84, %cst_34 [2] : vector<1x8x8xf32> to vector<1x8xf32>
    %86 = vector.shape_cast %85 : vector<1x8xf32> to vector<1x8x1xf32>
    %87 = tpu.reciprocal %86 {approx = true} : vector<1x8x1xf32> -> vector<1x8x1xf32>
    %88 = vector.broadcast %87 : vector<1x8x1xf32> to vector<1x8x8xf32>
    %89 = arith.mulf %84, %88 : vector<1x8x8xf32>
    %90 = arith.truncf %89 : vector<1x8x8xf32> to vector<1x8x8xbf16>
    %91 = vector.extract_strided_slice %56 {offsets = [0, 0, 8], sizes = [1, 8, 8], strides = [1, 1, 1]} : vector<1x8x32xbf16> to vector<1x8x8xbf16>
    "tpu.trace_start"() <{level = 10 : i32, message = "bqk,bkd->bqd"}> : () -> ()
    %cst_35 = arith.constant dense<0.000000e+00> : vector<1x8x8xf32>
    %92 = tpu.matmul %90, %91, %cst_35 {dimension_numbers = #tpu.dot_dimension_numbers<[2], [1], [1], [2], [0, 0, 0, 1, 1, 2], [0], [0]>} : vector<1x8x8xbf16>, vector<1x8x8xbf16>, vector<1x8x8xf32> -> vector<1x8x8xf32>
    "tpu.trace_stop"() : () -> ()
    %93 = vector.shape_cast %92 : vector<1x8x8xf32> to vector<8x8xf32>
    %c0_36 = arith.constant 0 : index
    %c8 = arith.constant 8 : index
    %94 = vector.load %arg22[%c0_36, %c8] : memref<8x32xf32, #tpu.memory_space<vmem>>, vector<8x8xf32>
    tpu.vector_store %arg22[%c0_36, %c8], %93 {strides = array<i32>} : memref<8x32xf32, #tpu.memory_space<vmem>>, vector<8x8xf32>,
    %95 = vector.extract_strided_slice %52 {offsets = [0, 0, 16], sizes = [1, 8, 8], strides = [1, 1, 1]} : vector<1x8x32xbf16> to vector<1x8x8xbf16>
    %96 = vector.extract_strided_slice %54 {offsets = [0, 0, 16], sizes = [1, 8, 8], strides = [1, 1, 1]} : vector<1x8x32xbf16> to vector<1x8x8xbf16>
    "tpu.trace_start"() <{level = 10 : i32, message = "bqd,bkd->bqk"}> : () -> ()
    %cst_37 = arith.constant dense<0.000000e+00> : vector<1x8x8xf32>
    %97 = tpu.matmul %95, %96, %cst_37 {dimension_numbers = #tpu.dot_dimension_numbers<[2], [2], [1], [1], [0, 0, 0, 1, 1, 1], [0], [0]>} : vector<1x8x8xbf16>, vector<1x8x8xbf16>, vector<1x8x8xf32> -> vector<1x8x8xf32>
    "tpu.trace_stop"() : () -> ()
    %98 = arith.addf %97, %7 : vector<1x8x8xf32>
    %cst_38 = arith.constant dense<0xFF800000> : vector<1x8xf32>
    %99 = vector.multi_reduction <maximumf>, %98, %cst_38 [2] : vector<1x8x8xf32> to vector<1x8xf32>
    %100 = vector.shape_cast %99 : vector<1x8xf32> to vector<1x8x1xf32>
    %101 = vector.broadcast %100 : vector<1x8x1xf32> to vector<1x8x8xf32>
    %102 = arith.subf %98, %101 : vector<1x8x8xf32>
    %103 = math.exp %102 : vector<1x8x8xf32>
    %cst_39 = arith.constant dense<0.000000e+00> : vector<1x8xf32>
    %104 = vector.multi_reduction <add>, %103, %cst_39 [2] : vector<1x8x8xf32> to vector<1x8xf32>
    %105 = vector.shape_cast %104 : vector<1x8xf32> to vector<1x8x1xf32>
    %106 = tpu.reciprocal %105 {approx = true} : vector<1x8x1xf32> -> vector<1x8x1xf32>
    %107 = vector.broadcast %106 : vector<1x8x1xf32> to vector<1x8x8xf32>
    %108 = arith.mulf %103, %107 : vector<1x8x8xf32>
    %109 = arith.truncf %108 : vector<1x8x8xf32> to vector<1x8x8xbf16>
    %110 = vector.extract_strided_slice %56 {offsets = [0, 0, 16], sizes = [1, 8, 8], strides = [1, 1, 1]} : vector<1x8x32xbf16> to vector<1x8x8xbf16>
    "tpu.trace_start"() <{level = 10 : i32, message = "bqk,bkd->bqd"}> : () -> ()
    %cst_40 = arith.constant dense<0.000000e+00> : vector<1x8x8xf32>
    %111 = tpu.matmul %109, %110, %cst_40 {dimension_numbers = #tpu.dot_dimension_numbers<[2], [1], [1], [2], [0, 0, 0, 1, 1, 2], [0], [0]>} : vector<1x8x8xbf16>, vector<1x8x8xbf16>, vector<1x8x8xf32> -> vector<1x8x8xf32>
    "tpu.trace_stop"() : () -> ()
    %112 = vector.shape_cast %111 : vector<1x8x8xf32> to vector<8x8xf32>
    %c0_41 = arith.constant 0 : index
    %c16 = arith.constant 16 : index
    %113 = vector.load %arg22[%c0_41, %c16] : memref<8x32xf32, #tpu.memory_space<vmem>>, vector<8x8xf32>
    tpu.vector_store %arg22[%c0_41, %c16], %112 {strides = array<i32>} : memref<8x32xf32, #tpu.memory_space<vmem>>, vector<8x8xf32>,
    %114 = vector.extract_strided_slice %52 {offsets = [0, 0, 24], sizes = [1, 8, 8], strides = [1, 1, 1]} : vector<1x8x32xbf16> to vector<1x8x8xbf16>
    %115 = vector.extract_strided_slice %54 {offsets = [0, 0, 24], sizes = [1, 8, 8], strides = [1, 1, 1]} : vector<1x8x32xbf16> to vector<1x8x8xbf16>
    "tpu.trace_start"() <{level = 10 : i32, message = "bqd,bkd->bqk"}> : () -> ()
    %cst_42 = arith.constant dense<0.000000e+00> : vector<1x8x8xf32>
    %116 = tpu.matmul %114, %115, %cst_42 {dimension_numbers = #tpu.dot_dimension_numbers<[2], [2], [1], [1], [0, 0, 0, 1, 1, 1], [0], [0]>} : vector<1x8x8xbf16>, vector<1x8x8xbf16>, vector<1x8x8xf32> -> vector<1x8x8xf32>
    "tpu.trace_stop"() : () -> ()
    %117 = arith.addf %116, %7 : vector<1x8x8xf32>
    %cst_43 = arith.constant dense<0xFF800000> : vector<1x8xf32>
    %118 = vector.multi_reduction <maximumf>, %117, %cst_43 [2] : vector<1x8x8xf32> to vector<1x8xf32>
    %119 = vector.shape_cast %118 : vector<1x8xf32> to vector<1x8x1xf32>
    %120 = vector.broadcast %119 : vector<1x8x1xf32> to vector<1x8x8xf32>
    %121 = arith.subf %117, %120 : vector<1x8x8xf32>
    %122 = math.exp %121 : vector<1x8x8xf32>
    %cst_44 = arith.constant dense<0.000000e+00> : vector<1x8xf32>
    %123 = vector.multi_reduction <add>, %122, %cst_44 [2] : vector<1x8x8xf32> to vector<1x8xf32>
    %124 = vector.shape_cast %123 : vector<1x8xf32> to vector<1x8x1xf32>
    %125 = tpu.reciprocal %124 {approx = true} : vector<1x8x1xf32> -> vector<1x8x1xf32>
    %126 = vector.broadcast %125 : vector<1x8x1xf32> to vector<1x8x8xf32>
    %127 = arith.mulf %122, %126 : vector<1x8x8xf32>
    %128 = arith.truncf %127 : vector<1x8x8xf32> to vector<1x8x8xbf16>
    %129 = vector.extract_strided_slice %56 {offsets = [0, 0, 24], sizes = [1, 8, 8], strides = [1, 1, 1]} : vector<1x8x32xbf16> to vector<1x8x8xbf16>
    "tpu.trace_start"() <{level = 10 : i32, message = "bqk,bkd->bqd"}> : () -> ()
    %cst_45 = arith.constant dense<0.000000e+00> : vector<1x8x8xf32>
    %130 = tpu.matmul %128, %129, %cst_45 {dimension_numbers = #tpu.dot_dimension_numbers<[2], [1], [1], [2], [0, 0, 0, 1, 1, 2], [0], [0]>} : vector<1x8x8xbf16>, vector<1x8x8xbf16>, vector<1x8x8xf32> -> vector<1x8x8xf32>
    "tpu.trace_stop"() : () -> ()
    %131 = vector.shape_cast %130 : vector<1x8x8xf32> to vector<8x8xf32>
    %c0_46 = arith.constant 0 : index
    %c24 = arith.constant 24 : index
    %132 = vector.load %arg22[%c0_46, %c24] : memref<8x32xf32, #tpu.memory_space<vmem>>, vector<8x8xf32>
    tpu.vector_store %arg22[%c0_46, %c24], %131 {strides = array<i32>} : memref<8x32xf32, #tpu.memory_space<vmem>>, vector<8x8xf32>,
    %c0_47 = arith.constant 0 : index
    %c0_48 = arith.constant 0 : index
    %133 = vector.load %arg22[%c0_47, %c0_48] : memref<8x32xf32, #tpu.memory_space<vmem>>, vector<8x32xf32>
    %134 = arith.truncf %133 : vector<8x32xf32> to vector<8x32xbf16>
    %c0_49 = arith.constant 0 : index
    %c0_50 = arith.constant 0 : index
    %135 = vector.load %arg7[%c0_49, %c0_50] : memref<32x32xbf16, #tpu.memory_space<vmem>>, vector<32x32xbf16>
    %cst_51 = arith.constant dense<0.000000e+00> : vector<8x32xf32>
    %136 = tpu.matmul %134, %135, %cst_51 {dimension_numbers = #tpu.dot_dimension_numbers<[1], [0], [0], [1], [0, 0, 1, 1], [], []>} : vector<8x32xbf16>, vector<32x32xbf16>, vector<8x32xf32> -> vector<8x32xf32>
    %c0_52 = arith.constant 0 : index
    %c0_53 = arith.constant 0 : index
    %137 = vector.load %arg8[%c0_52, %c0_53] : memref<1x32xf32, #tpu.memory_space<vmem>>, vector<1x32xf32>
    %138 = vector.broadcast %137 : vector<1x32xf32> to vector<8x32xf32>
    %139 = arith.addf %136, %138 : vector<8x32xf32>
    %140 = vector.shape_cast %139 : vector<8x32xf32> to vector<1x8x32xf32>
    %141 = arith.addf %0, %140 : vector<1x8x32xf32>
    %c0_54 = arith.constant 0 : index
    %c0_55 = arith.constant 0 : index
    %142 = vector.load %arg17[%c0_54, %c0_55] : memref<1x32xf32, #tpu.memory_space<vmem>>, vector<1x32xf32>
    %c0_56 = arith.constant 0 : index
    %c0_57 = arith.constant 0 : index
    %143 = vector.load %arg18[%c0_56, %c0_57] : memref<1x32xf32, #tpu.memory_space<vmem>>, vector<1x32xf32>
    %cst_58 = arith.constant dense<0.000000e+00> : vector<1x8xf32>
    %144 = vector.multi_reduction <add>, %141, %cst_58 [2] : vector<1x8x32xf32> to vector<1x8xf32>
    %145 = vector.shape_cast %144 : vector<1x8xf32> to vector<1x8x1xf32>
    %cst_59 = arith.constant 3.200000e+01 : f32
    %146 = vector.broadcast %cst_59 : f32 to vector<1x8x1xf32>
    %147 = arith.divf %145, %146 : vector<1x8x1xf32>
    %148 = vector.broadcast %147 : vector<1x8x1xf32> to vector<1x8x32xf32>
    %149 = arith.subf %141, %148 : vector<1x8x32xf32>
    %150 = arith.mulf %149, %149 : vector<1x8x32xf32>
    %cst_60 = arith.constant dense<0.000000e+00> : vector<1x8xf32>
    %151 = vector.multi_reduction <add>, %150, %cst_60 [2] : vector<1x8x32xf32> to vector<1x8xf32>
    %152 = vector.shape_cast %151 : vector<1x8xf32> to vector<1x8x1xf32>
    %cst_61 = arith.constant 3.200000e+01 : f32
    %153 = vector.broadcast %cst_61 : f32 to vector<1x8x1xf32>
    %154 = arith.divf %152, %153 : vector<1x8x1xf32>
    %155 = vector.broadcast %147 : vector<1x8x1xf32> to vector<1x8x32xf32>
    %156 = arith.subf %141, %155 : vector<1x8x32xf32>
    %cst_62 = arith.constant 9.99999974E-6 : f32
    %157 = vector.broadcast %cst_62 : f32 to vector<1x8x1xf32>
    %158 = arith.addf %154, %157 : vector<1x8x1xf32>
    %159 = math.rsqrt %158 : vector<1x8x1xf32>
    %160 = vector.broadcast %159 : vector<1x8x1xf32> to vector<1x8x32xf32>
    %161 = arith.mulf %156, %160 : vector<1x8x32xf32>
    %162 = vector.shape_cast %142 : vector<1x32xf32> to vector<1x1x32xf32>
    %163 = vector.broadcast %162 : vector<1x1x32xf32> to vector<1x8x32xf32>
    %164 = arith.mulf %161, %163 : vector<1x8x32xf32>
    %165 = vector.shape_cast %143 : vector<1x32xf32> to vector<1x1x32xf32>
    %166 = vector.broadcast %165 : vector<1x1x32xf32> to vector<1x8x32xf32>
    %167 = arith.addf %164, %166 : vector<1x8x32xf32>
    %168 = vector.shape_cast %167 : vector<1x8x32xf32> to vector<8x32xf32>
    %169 = arith.truncf %168 : vector<8x32xf32> to vector<8x32xbf16>
    %c0_63 = arith.constant 0 : index
    %c0_64 = arith.constant 0 : index
    %170 = vector.load %arg9[%c0_63, %c0_64] : memref<32x32xbf16, #tpu.memory_space<vmem>>, vector<32x32xbf16>
    %cst_65 = arith.constant dense<0.000000e+00> : vector<8x32xf32>
    %171 = tpu.matmul %169, %170, %cst_65 {dimension_numbers = #tpu.dot_dimension_numbers<[1], [0], [0], [1], [0, 0, 1, 1], [], []>} : vector<8x32xbf16>, vector<32x32xbf16>, vector<8x32xf32> -> vector<8x32xf32>
    %c0_66 = arith.constant 0 : index
    %c0_67 = arith.constant 0 : index
    %172 = vector.load %arg10[%c0_66, %c0_67] : memref<1x32xf32, #tpu.memory_space<vmem>>, vector<1x32xf32>
    %173 = vector.broadcast %172 : vector<1x32xf32> to vector<8x32xf32>
    %174 = arith.addf %171, %173 : vector<8x32xf32>
    %c0_68 = arith.constant 0 : index
    %c0_69 = arith.constant 0 : index
    %c0_70 = arith.constant 0 : index
    %175 = vector.load %arg2[%c0_68, %c0_69, %c0_70] : memref<1x8x32xf32, #tpu.memory_space<vmem>>, vector<1x8x32xf32>
    %176 = vector.shape_cast %175 : vector<1x8x32xf32> to vector<8x32xf32>
    %177 = arith.truncf %176 : vector<8x32xf32> to vector<8x32xbf16>
    %c0_71 = arith.constant 0 : index
    %c0_72 = arith.constant 0 : index
    %178 = vector.load %arg11[%c0_71, %c0_72] : memref<32x64xbf16, #tpu.memory_space<vmem>>, vector<32x64xbf16>
    %cst_73 = arith.constant dense<0.000000e+00> : vector<8x64xf32>
    %179 = tpu.matmul %177, %178, %cst_73 {dimension_numbers = #tpu.dot_dimension_numbers<[1], [0], [0], [1], [0, 0, 1, 1], [], []>} : vector<8x32xbf16>, vector<32x64xbf16>, vector<8x64xf32> -> vector<8x64xf32>
    %c0_74 = arith.constant 0 : index
    %c0_75 = arith.constant 0 : index
    %180 = vector.load %arg12[%c0_74, %c0_75] : memref<1x64xf32, #tpu.memory_space<vmem>>, vector<1x64xf32>
    %181 = vector.broadcast %180 : vector<1x64xf32> to vector<8x64xf32>
    %182 = arith.addf %179, %181 : vector<8x64xf32>
    %183 = vector.extract_strided_slice %182 {offsets = [0, 0], sizes = [8, 32], strides = [1, 1]} : vector<8x64xf32> to vector<8x32xf32>
    %184 = vector.extract_strided_slice %182 {offsets = [0, 32], sizes = [8, 32], strides = [1, 1]} : vector<8x64xf32> to vector<8x32xf32>
    %185 = vector.shape_cast %174 : vector<8x32xf32> to vector<1x8x32xf32>
    %186 = arith.truncf %185 : vector<1x8x32xf32> to vector<1x8x32xbf16>
    %187 = vector.shape_cast %183 : vector<8x32xf32> to vector<1x8x32xf32>
    %188 = arith.truncf %187 : vector<1x8x32xf32> to vector<1x8x32xbf16>
    %189 = vector.shape_cast %184 : vector<8x32xf32> to vector<1x8x32xf32>
    %190 = arith.truncf %189 : vector<1x8x32xf32> to vector<1x8x32xbf16>
    %191 = vector.shape_cast %14 : vector<1x1x8xf32> to vector<1x1x8xf32>
    %192 = vector.broadcast %191 : vector<1x1x8xf32> to vector<1x8x8xf32>
    %193 = vector.extract_strided_slice %186 {offsets = [0, 0, 0], sizes = [1, 8, 8], strides = [1, 1, 1]} : vector<1x8x32xbf16> to vector<1x8x8xbf16>
    %194 = vector.extract_strided_slice %188 {offsets = [0, 0, 0], sizes = [1, 8, 8], strides = [1, 1, 1]} : vector<1x8x32xbf16> to vector<1x8x8xbf16>
    "tpu.trace_start"() <{level = 10 : i32, message = "bqd,bkd->bqk"}> : () -> ()
    %cst_76 = arith.constant dense<0.000000e+00> : vector<1x8x8xf32>
    %195 = tpu.matmul %193, %194, %cst_76 {dimension_numbers = #tpu.dot_dimension_numbers<[2], [2], [1], [1], [0, 0, 0, 1, 1, 1], [0], [0]>} : vector<1x8x8xbf16>, vector<1x8x8xbf16>, vector<1x8x8xf32> -> vector<1x8x8xf32>
    "tpu.trace_stop"() : () -> ()
    %196 = arith.addf %195, %192 : vector<1x8x8xf32>
    %cst_77 = arith.constant dense<0xFF800000> : vector<1x8xf32>
    %197 = vector.multi_reduction <maximumf>, %196, %cst_77 [2] : vector<1x8x8xf32> to vector<1x8xf32>
    %198 = vector.shape_cast %197 : vector<1x8xf32> to vector<1x8x1xf32>
    %199 = vector.broadcast %198 : vector<1x8x1xf32> to vector<1x8x8xf32>
    %200 = arith.subf %196, %199 : vector<1x8x8xf32>
    %201 = math.exp %200 : vector<1x8x8xf32>
    %cst_78 = arith.constant dense<0.000000e+00> : vector<1x8xf32>
    %202 = vector.multi_reduction <add>, %201, %cst_78 [2] : vector<1x8x8xf32> to vector<1x8xf32>
    %203 = vector.shape_cast %202 : vector<1x8xf32> to vector<1x8x1xf32>
    %204 = tpu.reciprocal %203 {approx = true} : vector<1x8x1xf32> -> vector<1x8x1xf32>
    %205 = vector.broadcast %204 : vector<1x8x1xf32> to vector<1x8x8xf32>
    %206 = arith.mulf %201, %205 : vector<1x8x8xf32>
    %207 = arith.truncf %206 : vector<1x8x8xf32> to vector<1x8x8xbf16>
    %208 = vector.extract_strided_slice %190 {offsets = [0, 0, 0], sizes = [1, 8, 8], strides = [1, 1, 1]} : vector<1x8x32xbf16> to vector<1x8x8xbf16>
    "tpu.trace_start"() <{level = 10 : i32, message = "bqk,bkd->bqd"}> : () -> ()
    %cst_79 = arith.constant dense<0.000000e+00> : vector<1x8x8xf32>
    %209 = tpu.matmul %207, %208, %cst_79 {dimension_numbers = #tpu.dot_dimension_numbers<[2], [1], [1], [2], [0, 0, 0, 1, 1, 2], [0], [0]>} : vector<1x8x8xbf16>, vector<1x8x8xbf16>, vector<1x8x8xf32> -> vector<1x8x8xf32>
    "tpu.trace_stop"() : () -> ()
    %210 = vector.shape_cast %209 : vector<1x8x8xf32> to vector<8x8xf32>
    %c0_80 = arith.constant 0 : index
    %c0_81 = arith.constant 0 : index
    %211 = vector.load %arg22[%c0_80, %c0_81] : memref<8x32xf32, #tpu.memory_space<vmem>>, vector<8x8xf32>
    tpu.vector_store %arg22[%c0_80, %c0_81], %210 {strides = array<i32>} : memref<8x32xf32, #tpu.memory_space<vmem>>, vector<8x8xf32>,
    %212 = vector.extract_strided_slice %186 {offsets = [0, 0, 8], sizes = [1, 8, 8], strides = [1, 1, 1]} : vector<1x8x32xbf16> to vector<1x8x8xbf16>
    %213 = vector.extract_strided_slice %188 {offsets = [0, 0, 8], sizes = [1, 8, 8], strides = [1, 1, 1]} : vector<1x8x32xbf16> to vector<1x8x8xbf16>
    "tpu.trace_start"() <{level = 10 : i32, message = "bqd,bkd->bqk"}> : () -> ()
    %cst_82 = arith.constant dense<0.000000e+00> : vector<1x8x8xf32>
    %214 = tpu.matmul %212, %213, %cst_82 {dimension_numbers = #tpu.dot_dimension_numbers<[2], [2], [1], [1], [0, 0, 0, 1, 1, 1], [0], [0]>} : vector<1x8x8xbf16>, vector<1x8x8xbf16>, vector<1x8x8xf32> -> vector<1x8x8xf32>
    "tpu.trace_stop"() : () -> ()
    %215 = arith.addf %214, %192 : vector<1x8x8xf32>
    %cst_83 = arith.constant dense<0xFF800000> : vector<1x8xf32>
    %216 = vector.multi_reduction <maximumf>, %215, %cst_83 [2] : vector<1x8x8xf32> to vector<1x8xf32>
    %217 = vector.shape_cast %216 : vector<1x8xf32> to vector<1x8x1xf32>
    %218 = vector.broadcast %217 : vector<1x8x1xf32> to vector<1x8x8xf32>
    %219 = arith.subf %215, %218 : vector<1x8x8xf32>
    %220 = math.exp %219 : vector<1x8x8xf32>
    %cst_84 = arith.constant dense<0.000000e+00> : vector<1x8xf32>
    %221 = vector.multi_reduction <add>, %220, %cst_84 [2] : vector<1x8x8xf32> to vector<1x8xf32>
    %222 = vector.shape_cast %221 : vector<1x8xf32> to vector<1x8x1xf32>
    %223 = tpu.reciprocal %222 {approx = true} : vector<1x8x1xf32> -> vector<1x8x1xf32>
    %224 = vector.broadcast %223 : vector<1x8x1xf32> to vector<1x8x8xf32>
    %225 = arith.mulf %220, %224 : vector<1x8x8xf32>
    %226 = arith.truncf %225 : vector<1x8x8xf32> to vector<1x8x8xbf16>
    %227 = vector.extract_strided_slice %190 {offsets = [0, 0, 8], sizes = [1, 8, 8], strides = [1, 1, 1]} : vector<1x8x32xbf16> to vector<1x8x8xbf16>
    "tpu.trace_start"() <{level = 10 : i32, message = "bqk,bkd->bqd"}> : () -> ()
    %cst_85 = arith.constant dense<0.000000e+00> : vector<1x8x8xf32>
    %228 = tpu.matmul %226, %227, %cst_85 {dimension_numbers = #tpu.dot_dimension_numbers<[2], [1], [1], [2], [0, 0, 0, 1, 1, 2], [0], [0]>} : vector<1x8x8xbf16>, vector<1x8x8xbf16>, vector<1x8x8xf32> -> vector<1x8x8xf32>
    "tpu.trace_stop"() : () -> ()
    %229 = vector.shape_cast %228 : vector<1x8x8xf32> to vector<8x8xf32>
    %c0_86 = arith.constant 0 : index
    %c8_87 = arith.constant 8 : index
    %230 = vector.load %arg22[%c0_86, %c8_87] : memref<8x32xf32, #tpu.memory_space<vmem>>, vector<8x8xf32>
    tpu.vector_store %arg22[%c0_86, %c8_87], %229 {strides = array<i32>} : memref<8x32xf32, #tpu.memory_space<vmem>>, vector<8x8xf32>,
    %231 = vector.extract_strided_slice %186 {offsets = [0, 0, 16], sizes = [1, 8, 8], strides = [1, 1, 1]} : vector<1x8x32xbf16> to vector<1x8x8xbf16>
    %232 = vector.extract_strided_slice %188 {offsets = [0, 0, 16], sizes = [1, 8, 8], strides = [1, 1, 1]} : vector<1x8x32xbf16> to vector<1x8x8xbf16>
    "tpu.trace_start"() <{level = 10 : i32, message = "bqd,bkd->bqk"}> : () -> ()
    %cst_88 = arith.constant dense<0.000000e+00> : vector<1x8x8xf32>
    %233 = tpu.matmul %231, %232, %cst_88 {dimension_numbers = #tpu.dot_dimension_numbers<[2], [2], [1], [1], [0, 0, 0, 1, 1, 1], [0], [0]>} : vector<1x8x8xbf16>, vector<1x8x8xbf16>, vector<1x8x8xf32> -> vector<1x8x8xf32>
    "tpu.trace_stop"() : () -> ()
    %234 = arith.addf %233, %192 : vector<1x8x8xf32>
    %cst_89 = arith.constant dense<0xFF800000> : vector<1x8xf32>
    %235 = vector.multi_reduction <maximumf>, %234, %cst_89 [2] : vector<1x8x8xf32> to vector<1x8xf32>
    %236 = vector.shape_cast %235 : vector<1x8xf32> to vector<1x8x1xf32>
    %237 = vector.broadcast %236 : vector<1x8x1xf32> to vector<1x8x8xf32>
    %238 = arith.subf %234, %237 : vector<1x8x8xf32>
    %239 = math.exp %238 : vector<1x8x8xf32>
    %cst_90 = arith.constant dense<0.000000e+00> : vector<1x8xf32>
    %240 = vector.multi_reduction <add>, %239, %cst_90 [2] : vector<1x8x8xf32> to vector<1x8xf32>
    %241 = vector.shape_cast %240 : vector<1x8xf32> to vector<1x8x1xf32>
    %242 = tpu.reciprocal %241 {approx = true} : vector<1x8x1xf32> -> vector<1x8x1xf32>
    %243 = vector.broadcast %242 : vector<1x8x1xf32> to vector<1x8x8xf32>
    %244 = arith.mulf %239, %243 : vector<1x8x8xf32>
    %245 = arith.truncf %244 : vector<1x8x8xf32> to vector<1x8x8xbf16>
    %246 = vector.extract_strided_slice %190 {offsets = [0, 0, 16], sizes = [1, 8, 8], strides = [1, 1, 1]} : vector<1x8x32xbf16> to vector<1x8x8xbf16>
    "tpu.trace_start"() <{level = 10 : i32, message = "bqk,bkd->bqd"}> : () -> ()
    %cst_91 = arith.constant dense<0.000000e+00> : vector<1x8x8xf32>
    %247 = tpu.matmul %245, %246, %cst_91 {dimension_numbers = #tpu.dot_dimension_numbers<[2], [1], [1], [2], [0, 0, 0, 1, 1, 2], [0], [0]>} : vector<1x8x8xbf16>, vector<1x8x8xbf16>, vector<1x8x8xf32> -> vector<1x8x8xf32>
    "tpu.trace_stop"() : () -> ()
    %248 = vector.shape_cast %247 : vector<1x8x8xf32> to vector<8x8xf32>
    %c0_92 = arith.constant 0 : index
    %c16_93 = arith.constant 16 : index
    %249 = vector.load %arg22[%c0_92, %c16_93] : memref<8x32xf32, #tpu.memory_space<vmem>>, vector<8x8xf32>
    tpu.vector_store %arg22[%c0_92, %c16_93], %248 {strides = array<i32>} : memref<8x32xf32, #tpu.memory_space<vmem>>, vector<8x8xf32>,
    %250 = vector.extract_strided_slice %186 {offsets = [0, 0, 24], sizes = [1, 8, 8], strides = [1, 1, 1]} : vector<1x8x32xbf16> to vector<1x8x8xbf16>
    %251 = vector.extract_strided_slice %188 {offsets = [0, 0, 24], sizes = [1, 8, 8], strides = [1, 1, 1]} : vector<1x8x32xbf16> to vector<1x8x8xbf16>
    "tpu.trace_start"() <{level = 10 : i32, message = "bqd,bkd->bqk"}> : () -> ()
    %cst_94 = arith.constant dense<0.000000e+00> : vector<1x8x8xf32>
    %252 = tpu.matmul %250, %251, %cst_94 {dimension_numbers = #tpu.dot_dimension_numbers<[2], [2], [1], [1], [0, 0, 0, 1, 1, 1], [0], [0]>} : vector<1x8x8xbf16>, vector<1x8x8xbf16>, vector<1x8x8xf32> -> vector<1x8x8xf32>
    "tpu.trace_stop"() : () -> ()
    %253 = arith.addf %252, %192 : vector<1x8x8xf32>
    %cst_95 = arith.constant dense<0xFF800000> : vector<1x8xf32>
    %254 = vector.multi_reduction <maximumf>, %253, %cst_95 [2] : vector<1x8x8xf32> to vector<1x8xf32>
    %255 = vector.shape_cast %254 : vector<1x8xf32> to vector<1x8x1xf32>
    %256 = vector.broadcast %255 : vector<1x8x1xf32> to vector<1x8x8xf32>
    %257 = arith.subf %253, %256 : vector<1x8x8xf32>
    %258 = math.exp %257 : vector<1x8x8xf32>
    %cst_96 = arith.constant dense<0.000000e+00> : vector<1x8xf32>
    %259 = vector.multi_reduction <add>, %258, %cst_96 [2] : vector<1x8x8xf32> to vector<1x8xf32>
    %260 = vector.shape_cast %259 : vector<1x8xf32> to vector<1x8x1xf32>
    %261 = tpu.reciprocal %260 {approx = true} : vector<1x8x1xf32> -> vector<1x8x1xf32>
    %262 = vector.broadcast %261 : vector<1x8x1xf32> to vector<1x8x8xf32>
    %263 = arith.mulf %258, %262 : vector<1x8x8xf32>
    %264 = arith.truncf %263 : vector<1x8x8xf32> to vector<1x8x8xbf16>
    %265 = vector.extract_strided_slice %190 {offsets = [0, 0, 24], sizes = [1, 8, 8], strides = [1, 1, 1]} : vector<1x8x32xbf16> to vector<1x8x8xbf16>
    "tpu.trace_start"() <{level = 10 : i32, message = "bqk,bkd->bqd"}> : () -> ()
    %cst_97 = arith.constant dense<0.000000e+00> : vector<1x8x8xf32>
    %266 = tpu.matmul %264, %265, %cst_97 {dimension_numbers = #tpu.dot_dimension_numbers<[2], [1], [1], [2], [0, 0, 0, 1, 1, 2], [0], [0]>} : vector<1x8x8xbf16>, vector<1x8x8xbf16>, vector<1x8x8xf32> -> vector<1x8x8xf32>
    "tpu.trace_stop"() : () -> ()
    %267 = vector.shape_cast %266 : vector<1x8x8xf32> to vector<8x8xf32>
    %c0_98 = arith.constant 0 : index
    %c24_99 = arith.constant 24 : index
    %268 = vector.load %arg22[%c0_98, %c24_99] : memref<8x32xf32, #tpu.memory_space<vmem>>, vector<8x8xf32>
    tpu.vector_store %arg22[%c0_98, %c24_99], %267 {strides = array<i32>} : memref<8x32xf32, #tpu.memory_space<vmem>>, vector<8x8xf32>,
    %c0_100 = arith.constant 0 : index
    %c0_101 = arith.constant 0 : index
    %269 = vector.load %arg22[%c0_100, %c0_101] : memref<8x32xf32, #tpu.memory_space<vmem>>, vector<8x32xf32>
    %270 = arith.truncf %269 : vector<8x32xf32> to vector<8x32xbf16>
    %c0_102 = arith.constant 0 : index
    %c0_103 = arith.constant 0 : index
    %271 = vector.load %arg13[%c0_102, %c0_103] : memref<32x32xbf16, #tpu.memory_space<vmem>>, vector<32x32xbf16>
    %cst_104 = arith.constant dense<0.000000e+00> : vector<8x32xf32>
    %272 = tpu.matmul %270, %271, %cst_104 {dimension_numbers = #tpu.dot_dimension_numbers<[1], [0], [0], [1], [0, 0, 1, 1], [], []>} : vector<8x32xbf16>, vector<32x32xbf16>, vector<8x32xf32> -> vector<8x32xf32>
    %c0_105 = arith.constant 0 : index
    %c0_106 = arith.constant 0 : index
    %273 = vector.load %arg14[%c0_105, %c0_106] : memref<1x32xf32, #tpu.memory_space<vmem>>, vector<1x32xf32>
    %274 = vector.broadcast %273 : vector<1x32xf32> to vector<8x32xf32>
    %275 = arith.addf %272, %274 : vector<8x32xf32>
    %276 = vector.shape_cast %275 : vector<8x32xf32> to vector<1x8x32xf32>
    %277 = arith.addf %141, %276 : vector<1x8x32xf32>
    %c0_107 = arith.constant 0 : index
    %c0_108 = arith.constant 0 : index
    %278 = vector.load %arg19[%c0_107, %c0_108] : memref<1x32xf32, #tpu.memory_space<vmem>>, vector<1x32xf32>
    %c0_109 = arith.constant 0 : index
    %c0_110 = arith.constant 0 : index
    %279 = vector.load %arg20[%c0_109, %c0_110] : memref<1x32xf32, #tpu.memory_space<vmem>>, vector<1x32xf32>
    %cst_111 = arith.constant dense<0.000000e+00> : vector<1x8xf32>
    %280 = vector.multi_reduction <add>, %277, %cst_111 [2] : vector<1x8x32xf32> to vector<1x8xf32>
    %281 = vector.shape_cast %280 : vector<1x8xf32> to vector<1x8x1xf32>
    %cst_112 = arith.constant 3.200000e+01 : f32
    %282 = vector.broadcast %cst_112 : f32 to vector<1x8x1xf32>
    %283 = arith.divf %281, %282 : vector<1x8x1xf32>
    %284 = vector.broadcast %283 : vector<1x8x1xf32> to vector<1x8x32xf32>
    %285 = arith.subf %277, %284 : vector<1x8x32xf32>
    %286 = arith.mulf %285, %285 : vector<1x8x32xf32>
    %cst_113 = arith.constant dense<0.000000e+00> : vector<1x8xf32>
    %287 = vector.multi_reduction <add>, %286, %cst_113 [2] : vector<1x8x32xf32> to vector<1x8xf32>
    %288 = vector.shape_cast %287 : vector<1x8xf32> to vector<1x8x1xf32>
    %cst_114 = arith.constant 3.200000e+01 : f32
    %289 = vector.broadcast %cst_114 : f32 to vector<1x8x1xf32>
    %290 = arith.divf %288, %289 : vector<1x8x1xf32>
    %291 = vector.broadcast %283 : vector<1x8x1xf32> to vector<1x8x32xf32>
    %292 = arith.subf %277, %291 : vector<1x8x32xf32>
    %cst_115 = arith.constant 9.99999974E-6 : f32
    %293 = vector.broadcast %cst_115 : f32 to vector<1x8x1xf32>
    %294 = arith.addf %290, %293 : vector<1x8x1xf32>
    %295 = math.rsqrt %294 : vector<1x8x1xf32>
    %296 = vector.broadcast %295 : vector<1x8x1xf32> to vector<1x8x32xf32>
    %297 = arith.mulf %292, %296 : vector<1x8x32xf32>
    %298 = vector.shape_cast %278 : vector<1x32xf32> to vector<1x1x32xf32>
    %299 = vector.broadcast %298 : vector<1x1x32xf32> to vector<1x8x32xf32>
    %300 = arith.mulf %297, %299 : vector<1x8x32xf32>
    %301 = vector.shape_cast %279 : vector<1x32xf32> to vector<1x1x32xf32>
    %302 = vector.broadcast %301 : vector<1x1x32xf32> to vector<1x8x32xf32>
    %303 = arith.addf %300, %302 : vector<1x8x32xf32>
    %c0_116 = arith.constant 0 : index
    %c0_117 = arith.constant 0 : index
    %c0_118 = arith.constant 0 : index
    %304 = vector.load %arg21[%c0_116, %c0_117, %c0_118] : memref<1x8x32xf32, #tpu.memory_space<vmem>>, vector<1x8x32xf32>
    tpu.vector_store %arg21[%c0_116, %c0_117, %c0_118], %303 {strides = array<i32>} : memref<1x8x32xf32, #tpu.memory_space<vmem>>, vector<1x8x32xf32>,
    return
  }
  func.func @transform_0(%arg0: i32) -> (i32, i32, i32) {
    %c0_i32 = arith.constant 0 : i32
    %c0_i32_0 = arith.constant 0 : i32
    %c0_i32_1 = arith.constant 0 : i32
    return %arg0, %c0_i32, %c0_i32_0 : i32, i32, i32
  }
  func.func @transform_1(%arg0: i32) -> (i32, i32, i32) {
    %c0_i32 = arith.constant 0 : i32
    %c0_i32_0 = arith.constant 0 : i32
    %c0_i32_1 = arith.constant 0 : i32
    return %arg0, %c0_i32, %c0_i32_0 : i32, i32, i32
  }
  func.func @transform_2(%arg0: i32) -> (i32, i32, i32) {
    %c0_i32 = arith.constant 0 : i32
    %c0_i32_0 = arith.constant 0 : i32
    %c0_i32_1 = arith.constant 0 : i32
    return %arg0, %c0_i32, %c0_i32_0 : i32, i32, i32
  }
  func.func @transform_3(%arg0: i32) -> (i32, i32, i32) {
    %c0_i32 = arith.constant 0 : i32
    %c0_i32_0 = arith.constant 0 : i32
    %c0_i32_1 = arith.constant 0 : i32
    return %arg0, %c0_i32, %c0_i32_0 : i32, i32, i32
  }
  func.func @transform_4(%arg0: i32) -> (i32, i32) {
    %c0_i32 = arith.constant 0 : i32
    %c0_i32_0 = arith.constant 0 : i32
    %c0_i32_1 = arith.constant 0 : i32
    return %c0_i32, %c0_i32_0 : i32, i32
  }
  func.func @transform_5(%arg0: i32) -> (i32, i32) {
    %c0_i32 = arith.constant 0 : i32
    %c0_i32_0 = arith.constant 0 : i32
    %c0_i32_1 = arith.constant 0 : i32
    return %c0_i32, %c0_i32_0 : i32, i32
  }
  func.func @transform_6(%arg0: i32) -> (i32, i32) {
    %c0_i32 = arith.constant 0 : i32
    %c0_i32_0 = arith.constant 0 : i32
    %c0_i32_1 = arith.constant 0 : i32
    return %c0_i32, %c0_i32_0 : i32, i32
  }
  func.func @transform_7(%arg0: i32) -> (i32, i32) {
    %c0_i32 = arith.constant 0 : i32
    %c0_i32_0 = arith.constant 0 : i32
    %c0_i32_1 = arith.constant 0 : i32
    return %c0_i32, %c0_i32_0 : i32, i32
  }
  func.func @transform_8(%arg0: i32) -> (i32, i32) {
    %c0_i32 = arith.constant 0 : i32
    %c0_i32_0 = arith.constant 0 : i32
    %c0_i32_1 = arith.constant 0 : i32
    return %c0_i32, %c0_i32_0 : i32, i32
  }
  func.func @transform_9(%arg0: i32) -> (i32, i32) {
    %c0_i32 = arith.constant 0 : i32
    %c0_i32_0 = arith.constant 0 : i32
    %c0_i32_1 = arith.constant 0 : i32
    return %c0_i32, %c0_i32_0 : i32, i32
  }
  func.func @transform_10(%arg0: i32) -> (i32, i32) {
    %c0_i32 = arith.constant 0 : i32
    %c0_i32_0 = arith.constant 0 : i32
    %c0_i32_1 = arith.constant 0 : i32
    return %c0_i32, %c0_i32_0 : i32, i32
  }
  func.func @transform_11(%arg0: i32) -> (i32, i32) {
    %c0_i32 = arith.constant 0 : i32
    %c0_i32_0 = arith.constant 0 : i32
    %c0_i32_1 = arith.constant 0 : i32
    return %c0_i32, %c0_i32_0 : i32, i32
  }
  func.func @transform_12(%arg0: i32) -> (i32, i32) {
    %c0_i32 = arith.constant 0 : i32
    %c0_i32_0 = arith.constant 0 : i32
    %c0_i32_1 = arith.constant 0 : i32
    return %c0_i32, %c0_i32_0 : i32, i32
  }
  func.func @transform_13(%arg0: i32) -> (i32, i32) {
    %c0_i32 = arith.constant 0 : i32
    %c0_i32_0 = arith.constant 0 : i32
    %c0_i32_1 = arith.constant 0 : i32
    return %c0_i32, %c0_i32_0 : i32, i32
  }
  func.func @transform_14(%arg0: i32) -> (i32, i32) {
    %c0_i32 = arith.constant 0 : i32
    %c0_i32_0 = arith.constant 0 : i32
    %c0_i32_1 = arith.constant 0 : i32
    return %c0_i32, %c0_i32_0 : i32, i32
  }
  func.func @transform_15(%arg0: i32) -> (i32, i32) {
    %c0_i32 = arith.constant 0 : i32
    %c0_i32_0 = arith.constant 0 : i32
    %c0_i32_1 = arith.constant 0 : i32
    return %c0_i32, %c0_i32_0 : i32, i32
  }
  func.func @transform_16(%arg0: i32) -> (i32, i32) {
    %c0_i32 = arith.constant 0 : i32
    %c0_i32_0 = arith.constant 0 : i32
    %c0_i32_1 = arith.constant 0 : i32
    return %c0_i32, %c0_i32_0 : i32, i32
  }
  func.func @transform_17(%arg0: i32) -> (i32, i32) {
    %c0_i32 = arith.constant 0 : i32
    %c0_i32_0 = arith.constant 0 : i32
    %c0_i32_1 = arith.constant 0 : i32
    return %c0_i32, %c0_i32_0 : i32, i32
  }
  func.func @transform_18(%arg0: i32) -> (i32, i32) {
    %c0_i32 = arith.constant 0 : i32
    %c0_i32_0 = arith.constant 0 : i32
    %c0_i32_1 = arith.constant 0 : i32
    return %c0_i32, %c0_i32_0 : i32, i32
  }
  func.func @transform_19(%arg0: i32) -> (i32, i32) {
    %c0_i32 = arith.constant 0 : i32
    %c0_i32_0 = arith.constant 0 : i32
    %c0_i32_1 = arith.constant 0 : i32
    return %c0_i32, %c0_i32_0 : i32, i32
  }
  func.func @transform_20(%arg0: i32) -> (i32, i32, i32) {
    %c0_i32 = arith.constant 0 : i32
    %c0_i32_0 = arith.constant 0 : i32
    %c0_i32_1 = arith.constant 0 : i32
    return %arg0, %c0_i32, %c0_i32_0 : i32, i32, i32
  }
}

module attributes {stable_mosaic.version = 11 : i64} {
  func.func @fusion_kernel(%arg0: i32, %arg1: memref<1x8x32xf32, #tpu.memory_space<vmem>>, %arg2: memref<1x8x32xf32, #tpu.memory_space<vmem>>, %arg3: memref<1x8x8xi8, #tpu.memory_space<vmem>>, %arg4: memref<1x1x8xi8, #tpu.memory_space<vmem>>, %arg5: memref<32x96xbf16, #tpu.memory_space<vmem>>, %arg6: memref<1x96xf32, #tpu.memory_space<vmem>>, %arg7: memref<32x32xbf16, #tpu.memory_space<vmem>>, %arg8: memref<1x32xf32, #tpu.memory_space<vmem>>, %arg9: memref<32x32xbf16, #tpu.memory_space<vmem>>, %arg10: memref<1x32xf32, #tpu.memory_space<vmem>>, %arg11: memref<32x64xbf16, #tpu.memory_space<vmem>>, %arg12: memref<1x64xf32, #tpu.memory_space<vmem>>, %arg13: memref<32x32xbf16, #tpu.memory_space<vmem>>, %arg14: memref<1x32xf32, #tpu.memory_space<vmem>>, %arg15: memref<1x32xf32, #tpu.memory_space<vmem>>, %arg16: memref<1x32xf32, #tpu.memory_space<vmem>>, %arg17: memref<1x32xf32, #tpu.memory_space<vmem>>, %arg18: memref<1x32xf32, #tpu.memory_space<vmem>>, %arg19: memref<1x32xf32, #tpu.memory_space<vmem>>, %arg20: memref<1x32xf32, #tpu.memory_space<vmem>>, %arg21: memref<1x8x32xf32, #tpu.memory_space<vmem>>, %arg22: memref<8x32xf32, #tpu.memory_space<vmem>>) attributes {dimension_semantics = [#tpu.dimension_semantics<parallel>], iteration_bounds = array<i64: 2>, scalar_prefetch = 0 : i64, scratch_operands = 1 : i64, tpu.core_type = #tpu.core_type<tc>, window_params = [{transform_indices = @transform_0, window_bounds = array<i64: 1, 8, 32>}, {transform_indices = @transform_1, window_bounds = array<i64: 1, 8, 32>}, {transform_indices = @transform_2, window_bounds = array<i64: 1, 8, 8>}, {transform_indices = @transform_3, window_bounds = array<i64: 1, 1, 8>}, {pipeline_mode = #tpu.pipeline_mode<synchronous>, transform_indices = @transform_4, window_bounds = array<i64: 32, 96>}, {pipeline_mode = #tpu.pipeline_mode<synchronous>, transform_indices = @transform_5, window_bounds = array<i64: 1, 96>}, {pipeline_mode = #tpu.pipeline_mode<synchronous>, transform_indices = @transform_6, window_bounds = array<i64: 32, 32>}, {pipeline_mode = #tpu.pipeline_mode<synchronous>, transform_indices = @transform_7, window_bounds = array<i64: 1, 32>}, {pipeline_mode = #tpu.pipeline_mode<synchronous>, transform_indices = @transform_8, window_bounds = array<i64: 32, 32>}, {pipeline_mode = #tpu.pipeline_mode<synchronous>, transform_indices = @transform_9, window_bounds = array<i64: 1, 32>}, {pipeline_mode = #tpu.pipeline_mode<synchronous>, transform_indices = @transform_10, window_bounds = array<i64: 32, 64>}, {pipeline_mode = #tpu.pipeline_mode<synchronous>, transform_indices = @transform_11, window_bounds = array<i64: 1, 64>}, {pipeline_mode = #tpu.pipeline_mode<synchronous>, transform_indices = @transform_12, window_bounds = array<i64: 32, 32>}, {pipeline_mode = #tpu.pipeline_mode<synchronous>, transform_indices = @transform_13, window_bounds = array<i64: 1, 32>}, {pipeline_mode = #tpu.pipeline_mode<synchronous>, transform_indices = @transform_14, window_bounds = array<i64: 1, 32>}, {pipeline_mode = #tpu.pipeline_mode<synchronous>, transform_indices = @transform_15, window_bounds = array<i64: 1, 32>}, {pipeline_mode = #tpu.pipeline_mode<synchronous>, transform_indices = @transform_16, window_bounds = array<i64: 1, 32>}, {pipeline_mode = #tpu.pipeline_mode<synchronous>, transform_indices = @transform_17, window_bounds = array<i64: 1, 32>}, {pipeline_mode = #tpu.pipeline_mode<synchronous>, transform_indices = @transform_18, window_bounds = array<i64: 1, 32>}, {pipeline_mode = #tpu.pipeline_mode<synchronous>, transform_indices = @transform_19, window_bounds = array<i64: 1, 32>}, {transform_indices = @transform_20, window_bounds = array<i64: 1, 8, 32>}]} {
    %c0 = arith.constant 0 : index
    %c0_0 = arith.constant 0 : index
    %c0_1 = arith.constant 0 : index
    %0 = vector.load %arg1[%c0, %c0_0, %c0_1] : memref<1x8x32xf32, #tpu.memory_space<vmem>>, vector<1x8x32xf32>
    %c0_2 = arith.constant 0 : index
    %c0_3 = arith.constant 0 : index
    %c0_4 = arith.constant 0 : index
    %1 = vector.load %arg3[%c0_2, %c0_3, %c0_4] : memref<1x8x8xi8, #tpu.memory_space<vmem>>, vector<1x8x8xi8>
    %2 = arith.extsi %1 : vector<1x8x8xi8> to vector<1x8x8xi32>
    %c0_i32 = arith.constant 0 : i32
    %3 = vector.broadcast %c0_i32 : i32 to vector<1x8x8xi32>
    %4 = arith.cmpi ne, %2, %3 : vector<1x8x8xi32>
    %cst = arith.constant 0.000000e+00 : f32
    %cst_5 = arith.constant -1.000000e+30 : f32
    %5 = vector.broadcast %cst : f32 to vector<1x8x8xf32>
    %6 = vector.broadcast %cst_5 : f32 to vector<1x8x8xf32>
    %7 = arith.select %4, %5, %6 : vector<1x8x8xi1>, vector<1x8x8xf32>
    %c0_6 = arith.constant 0 : index
    %c0_7 = arith.constant 0 : index
    %c0_8 = arith.constant 0 : index
    %8 = vector.load %arg4[%c0_6, %c0_7, %c0_8] : memref<1x1x8xi8, #tpu.memory_space<vmem>>, vector<1x1x8xi8>
    %9 = arith.extsi %8 : vector<1x1x8xi8> to vector<1x1x8xi32>
    %c0_i32_9 = arith.constant 0 : i32
    %10 = vector.broadcast %c0_i32_9 : i32 to vector<1x1x8xi32>
    %11 = arith.cmpi ne, %9, %10 : vector<1x1x8xi32>
    %cst_10 = arith.constant 0.000000e+00 : f32
    %cst_11 = arith.constant -1.000000e+30 : f32
    %12 = vector.broadcast %cst_10 : f32 to vector<1x1x8xf32>
    %13 = vector.broadcast %cst_11 : f32 to vector<1x1x8xf32>
    %14 = arith.select %11, %12, %13 : vector<1x1x8xi1>, vector<1x1x8xf32>
    %c0_12 = arith.constant 0 : index
    %c0_13 = arith.constant 0 : index
    %15 = vector.load %arg15[%c0_12, %c0_13] : memref<1x32xf32, #tpu.memory_space<vmem>>, vector<1x32xf32>
    %c0_14 = arith.constant 0 : index
    %c0_15 = arith.constant 0 : index
    %16 = vector.load %arg16[%c0_14, %c0_15] : memref<1x32xf32, #tpu.memory_space<vmem>>, vector<1x32xf32>
    %cst_16 = arith.constant dense<0.000000e+00> : vector<1x8xf32>
    %17 = vector.multi_reduction <add>, %0, %cst_16 [2] : vector<1x8x32xf32> to vector<1x8xf32>
    %18 = vector.shape_cast %17 : vector<1x8xf32> to vector<1x8x1xf32>
    %cst_17 = arith.constant 3.200000e+01 : f32
    %19 = vector.broadcast %cst_17 : f32 to vector<1x8x1xf32>
    %20 = arith.divf %18, %19 : vector<1x8x1xf32>
    %21 = vector.broadcast %20 : vector<1x8x1xf32> to vector<1x8x32xf32>
    %22 = arith.subf %0, %21 : vector<1x8x32xf32>
    %23 = arith.mulf %22, %22 : vector<1x8x32xf32>
    %cst_18 = arith.constant dense<0.000000e+00> : vector<1x8xf32>
    %24 = vector.multi_reduction <add>, %23, %cst_18 [2] : vector<1x8x32xf32> to vector<1x8xf32>
    %25 = vector.shape_cast %24 : vector<1x8xf32> to vector<1x8x1xf32>
    %cst_19 = arith.constant 3.200000e+01 : f32
    %26 = vector.broadcast %cst_19 : f32 to vector<1x8x1xf32>
    %27 = arith.divf %25, %26 : vector<1x8x1xf32>
    %28 = vector.broadcast %20 : vector<1x8x1xf32> to vector<1x8x32xf32>
    %29 = arith.subf %0, %28 : vector<1x8x32xf32>
    %cst_20 = arith.constant 9.99999974E-6 : f32
    %30 = vector.broadcast %cst_20 : f32 to vector<1x8x1xf32>
    %31 = arith.addf %27, %30 : vector<1x8x1xf32>
    %32 = math.rsqrt %31 : vector<1x8x1xf32>
    %33 = vector.broadcast %32 : vector<1x8x1xf32> to vector<1x8x32xf32>
    %34 = arith.mulf %29, %33 : vector<1x8x32xf32>
    %35 = vector.shape_cast %15 : vector<1x32xf32> to vector<1x1x32xf32>
    %36 = vector.broadcast %35 : vector<1x1x32xf32> to vector<1x8x32xf32>
    %37 = arith.mulf %34, %36 : vector<1x8x32xf32>
    %38 = vector.shape_cast %16 : vector<1x32xf32> to vector<1x1x32xf32>
    %39 = vector.broadcast %38 : vector<1x1x32xf32> to vector<1x8x32xf32>
    %40 = arith.addf %37, %39 : vector<1x8x32xf32>
    %41 = vector.shape_cast %40 : vector<1x8x32xf32> to vector<8x32xf32>
    %42 = arith.truncf %41 : vector<8x32xf32> to vector<8x32xbf16>
    %c0_21 = arith.constant 0 : index
    %c0_22 = arith.constant 0 : index
    %43 = vector.load %arg5[%c0_21, %c0_22] : memref<32x96xbf16, #tpu.memory_space<vmem>>, vector<32x96xbf16>
    %cst_23 = arith.constant dense<0.000000e+00> : vector<8x96xf32>
    %44 = tpu.matmul %42, %43, %cst_23 {dimension_numbers = #tpu.dot_dimension_numbers<[1], [0], [0], [1], [0, 0, 1, 1], [], []>} : vector<8x32xbf16>, vector<32x96xbf16>, vector<8x96xf32> -> vector<8x96xf32>
    %c0_24 = arith.constant 0 : index
    %c0_25 = arith.constant 0 : index
    %45 = vector.load %arg6[%c0_24, %c0_25] : memref<1x96xf32, #tpu.memory_space<vmem>>, vector<1x96xf32>
    %46 = vector.broadcast %45 : vector<1x96xf32> to vector<8x96xf32>
    %47 = arith.addf %44, %46 : vector<8x96xf32>
    %48 = vector.extract_strided_slice %47 {offsets = [0, 0], sizes = [8, 32], strides = [1, 1]} : vector<8x96xf32> to vector<8x32xf32>
    %49 = vector.extract_strided_slice %47 {offsets = [0, 32], sizes = [8, 32], strides = [1, 1]} : vector<8x96xf32> to vector<8x32xf32>
    %50 = vector.extract_strided_slice %47 {offsets = [0, 64], sizes = [8, 32], strides = [1, 1]} : vector<8x96xf32> to vector<8x32xf32>
    %51 = vector.shape_cast %48 : vector<8x32xf32> to vector<1x8x32xf32>
    %52 = arith.truncf %51 : vector<1x8x32xf32> to vector<1x8x32xbf16>
    %53 = vector.shape_cast %49 : vector<8x32xf32> to vector<1x8x32xf32>
    %54 = arith.truncf %53 : vector<1x8x32xf32> to vector<1x8x32xbf16>
    %55 = vector.shape_cast %50 : vector<8x32xf32> to vector<1x8x32xf32>
    %56 = arith.truncf %55 : vector<1x8x32xf32> to vector<1x8x32xbf16>
    %57 = vector.extract_strided_slice %52 {offsets = [0, 0, 0], sizes = [1, 8, 8], strides = [1, 1, 1]} : vector<1x8x32xbf16> to vector<1x8x8xbf16>
    %58 = vector.extract_strided_slice %54 {offsets = [0, 0, 0], sizes = [1, 8, 8], strides = [1, 1, 1]} : vector<1x8x32xbf16> to vector<1x8x8xbf16>
    "tpu.trace_start"() <{level = 10 : i32, message = "bqd,bkd->bqk"}> : () -> ()
    %cst_26 = arith.constant dense<0.000000e+00> : vector<1x8x8xf32>
    %59 = tpu.matmul %57, %58, %cst_26 {dimension_numbers = #tpu.dot_dimension_numbers<[2], [2], [1], [1], [0, 0, 0, 1, 1, 1], [0], [0]>} : vector<1x8x8xbf16>, vector<1x8x8xbf16>, vector<1x8x8xf32> -> vector<1x8x8xf32>
    "tpu.trace_stop"() : () -> ()
    %60 = arith.addf %59, %7 : vector<1x8x8xf32>
    %cst_27 = arith.constant dense<0xFF800000> : vector<1x8xf32>
    %61 = vector.multi_reduction <maximumf>, %60, %cst_27 [2] : vector<1x8x8xf32> to vector<1x8xf32>
    %62 = vector.shape_cast %61 : vector<1x8xf32> to vector<1x8x1xf32>
    %63 = vector.broadcast %62 : vector<1x8x1xf32> to vector<1x8x8xf32>
    %64 = arith.subf %60, %63 : vector<1x8x8xf32>
    %65 = math.exp %64 : vector<1x8x8xf32>
    %cst_28 = arith.constant dense<0.000000e+00> : vector<1x8xf32>
    %66 = vector.multi_reduction <add>, %65, %cst_28 [2] : vector<1x8x8xf32> to vector<1x8xf32>
    %67 = vector.shape_cast %66 : vector<1x8xf32> to vector<1x8x1xf32>
    %68 = tpu.reciprocal %67 {approx = true} : vector<1x8x1xf32> -> vector<1x8x1xf32>
    %69 = vector.broadcast %68 : vector<1x8x1xf32> to vector<1x8x8xf32>
    %70 = arith.mulf %65, %69 : vector<1x8x8xf32>
    %71 = arith.truncf %70 : vector<1x8x8xf32> to vector<1x8x8xbf16>
    %72 = vector.extract_strided_slice %56 {offsets = [0, 0, 0], sizes = [1, 8, 8], strides = [1, 1, 1]} : vector<1x8x32xbf16> to vector<1x8x8xbf16>
    "tpu.trace_start"() <{level = 10 : i32, message = "bqk,bkd->bqd"}> : () -> ()
    %cst_29 = arith.constant dense<0.000000e+00> : vector<1x8x8xf32>
    %73 = tpu.matmul %71, %72, %cst_29 {dimension_numbers = #tpu.dot_dimension_numbers<[2], [1], [1], [2], [0, 0, 0, 1, 1, 2], [0], [0]>} : vector<1x8x8xbf16>, vector<1x8x8xbf16>, vector<1x8x8xf32> -> vector<1x8x8xf32>
    "tpu.trace_stop"() : () -> ()
    %74 = vector.shape_cast %73 : vector<1x8x8xf32> to vector<8x8xf32>
    %c0_30 = arith.constant 0 : index
    %c0_31 = arith.constant 0 : index
    %75 = vector.load %arg22[%c0_30, %c0_31] : memref<8x32xf32, #tpu.memory_space<vmem>>, vector<8x8xf32>
    tpu.vector_store %arg22[%c0_30, %c0_31], %74 {strides = array<i32>} : memref<8x32xf32, #tpu.memory_space<vmem>>, vector<8x8xf32>,
    %76 = vector.extract_strided_slice %52 {offsets = [0, 0, 8], sizes = [1, 8, 8], strides = [1, 1, 1]} : vector<1x8x32xbf16> to vector<1x8x8xbf16>
    %77 = vector.extract_strided_slice %54 {offsets = [0, 0, 8], sizes = [1, 8, 8], strides = [1, 1, 1]} : vector<1x8x32xbf16> to vector<1x8x8xbf16>
    "tpu.trace_start"() <{level = 10 : i32, message = "bqd,bkd->bqk"}> : () -> ()
    %cst_32 = arith.constant dense<0.000000e+00> : vector<1x8x8xf32>
    %78 = tpu.matmul %76, %77, %cst_32 {dimension_numbers = #tpu.dot_dimension_numbers<[2], [2], [1], [1], [0, 0, 0, 1, 1, 1], [0], [0]>} : vector<1x8x8xbf16>, vector<1x8x8xbf16>, vector<1x8x8xf32> -> vector<1x8x8xf32>
    "tpu.trace_stop"() : () -> ()
    %79 = arith.addf %78, %7 : vector<1x8x8xf32>
    %cst_33 = arith.constant dense<0xFF800000> : vector<1x8xf32>
    %80 = vector.multi_reduction <maximumf>, %79, %cst_33 [2] : vector<1x8x8xf32> to vector<1x8xf32>
    %81 = vector.shape_cast %80 : vector<1x8xf32> to vector<1x8x1xf32>
    %82 = vector.broadcast %81 : vector<1x8x1xf32> to vector<1x8x8xf32>
    %83 = arith.subf %79, %82 : vector<1x8x8xf32>
    %84 = math.exp %83 : vector<1x8x8xf32>
    %cst_34 = arith.constant dense<0.000000e+00> : vector<1x8xf32>
    %85 = vector.multi_reduction <add>, %84, %cst_34 [2] : vector<1x8x8xf32> to vector<1x8xf32>
    %86 = vector.shape_cast %85 : vector<1x8xf32> to vector<1x8x1xf32>
    %87 = tpu.reciprocal %86 {approx = true} : vector<1x8x1xf32> -> vector<1x8x1xf32>
    %88 = vector.broadcast %87 : vector<1x8x1xf32> to vector<1x8x8xf32>
    %89 = arith.mulf %84, %88 : vector<1x8x8xf32>
    %90 = arith.truncf %89 : vector<1x8x8xf32> to vector<1x8x8xbf16>
    %91 = vector.extract_strided_slice %56 {offsets = [0, 0, 8], sizes = [1, 8, 8], strides = [1, 1, 1]} : vector<1x8x32xbf16> to vector<1x8x8xbf16>
    "tpu.trace_start"() <{level = 10 : i32, message = "bqk,bkd->bqd"}> : () -> ()
    %cst_35 = arith.constant dense<0.000000e+00> : vector<1x8x8xf32>
    %92 = tpu.matmul %90, %91, %cst_35 {dimension_numbers = #tpu.dot_dimension_numbers<[2], [1], [1], [2], [0, 0, 0, 1, 1, 2], [0], [0]>} : vector<1x8x8xbf16>, vector<1x8x8xbf16>, vector<1x8x8xf32> -> vector<1x8x8xf32>
    "tpu.trace_stop"() : () -> ()
    %93 = vector.shape_cast %92 : vector<1x8x8xf32> to vector<8x8xf32>
    %c0_36 = arith.constant 0 : index
    %c8 = arith.constant 8 : index
    %94 = vector.load %arg22[%c0_36, %c8] : memref<8x32xf32, #tpu.memory_space<vmem>>, vector<8x8xf32>
    tpu.vector_store %arg22[%c0_36, %c8], %93 {strides = array<i32>} : memref<8x32xf32, #tpu.memory_space<vmem>>, vector<8x8xf32>,
    %95 = vector.extract_strided_slice %52 {offsets = [0, 0, 16], sizes = [1, 8, 8], strides = [1, 1, 1]} : vector<1x8x32xbf16> to vector<1x8x8xbf16>
    %96 = vector.extract_strided_slice %54 {offsets = [0, 0, 16], sizes = [1, 8, 8], strides = [1, 1, 1]} : vector<1x8x32xbf16> to vector<1x8x8xbf16>
    "tpu.trace_start"() <{level = 10 : i32, message = "bqd,bkd->bqk"}> : () -> ()
    %cst_37 = arith.constant dense<0.000000e+00> : vector<1x8x8xf32>
    %97 = tpu.matmul %95, %96, %cst_37 {dimension_numbers = #tpu.dot_dimension_numbers<[2], [2], [1], [1], [0, 0, 0, 1, 1, 1], [0], [0]>} : vector<1x8x8xbf16>, vector<1x8x8xbf16>, vector<1x8x8xf32> -> vector<1x8x8xf32>
    "tpu.trace_stop"() : () -> ()
    %98 = arith.addf %97, %7 : vector<1x8x8xf32>
    %cst_38 = arith.constant dense<0xFF800000> : vector<1x8xf32>
    %99 = vector.multi_reduction <maximumf>, %98, %cst_38 [2] : vector<1x8x8xf32> to vector<1x8xf32>
    %100 = vector.shape_cast %99 : vector<1x8xf32> to vector<1x8x1xf32>
    %101 = vector.broadcast %100 : vector<1x8x1xf32> to vector<1x8x8xf32>
    %102 = arith.subf %98, %101 : vector<1x8x8xf32>
    %103 = math.exp %102 : vector<1x8x8xf32>
    %cst_39 = arith.constant dense<0.000000e+00> : vector<1x8xf32>
    %104 = vector.multi_reduction <add>, %103, %cst_39 [2] : vector<1x8x8xf32> to vector<1x8xf32>
    %105 = vector.shape_cast %104 : vector<1x8xf32> to vector<1x8x1xf32>
    %106 = tpu.reciprocal %105 {approx = true} : vector<1x8x1xf32> -> vector<1x8x1xf32>
    %107 = vector.broadcast %106 : vector<1x8x1xf32> to vector<1x8x8xf32>
    %108 = arith.mulf %103, %107 : vector<1x8x8xf32>
    %109 = arith.truncf %108 : vector<1x8x8xf32> to vector<1x8x8xbf16>
    %110 = vector.extract_strided_slice %56 {offsets = [0, 0, 16], sizes = [1, 8, 8], strides = [1, 1, 1]} : vector<1x8x32xbf16> to vector<1x8x8xbf16>
    "tpu.trace_start"() <{level = 10 : i32, message = "bqk,bkd->bqd"}> : () -> ()
    %cst_40 = arith.constant dense<0.000000e+00> : vector<1x8x8xf32>
    %111 = tpu.matmul %109, %110, %cst_40 {dimension_numbers = #tpu.dot_dimension_numbers<[2], [1], [1], [2], [0, 0, 0, 1, 1, 2], [0], [0]>} : vector<1x8x8xbf16>, vector<1x8x8xbf16>, vector<1x8x8xf32> -> vector<1x8x8xf32>
    "tpu.trace_stop"() : () -> ()
    %112 = vector.shape_cast %111 : vector<1x8x8xf32> to vector<8x8xf32>
    %c0_41 = arith.constant 0 : index
    %c16 = arith.constant 16 : index
    %113 = vector.load %arg22[%c0_41, %c16] : memref<8x32xf32, #tpu.memory_space<vmem>>, vector<8x8xf32>
    tpu.vector_store %arg22[%c0_41, %c16], %112 {strides = array<i32>} : memref<8x32xf32, #tpu.memory_space<vmem>>, vector<8x8xf32>,
    %114 = vector.extract_strided_slice %52 {offsets = [0, 0, 24], sizes = [1, 8, 8], strides = [1, 1, 1]} : vector<1x8x32xbf16> to vector<1x8x8xbf16>
    %115 = vector.extract_strided_slice %54 {offsets = [0, 0, 24], sizes = [1, 8, 8], strides = [1, 1, 1]} : vector<1x8x32xbf16> to vector<1x8x8xbf16>
    "tpu.trace_start"() <{level = 10 : i32, message = "bqd,bkd->bqk"}> : () -> ()
    %cst_42 = arith.constant dense<0.000000e+00> : vector<1x8x8xf32>
    %116 = tpu.matmul %114, %115, %cst_42 {dimension_numbers = #tpu.dot_dimension_numbers<[2], [2], [1], [1], [0, 0, 0, 1, 1, 1], [0], [0]>} : vector<1x8x8xbf16>, vector<1x8x8xbf16>, vector<1x8x8xf32> -> vector<1x8x8xf32>
    "tpu.trace_stop"() : () -> ()
    %117 = arith.addf %116, %7 : vector<1x8x8xf32>
    %cst_43 = arith.constant dense<0xFF800000> : vector<1x8xf32>
    %118 = vector.multi_reduction <maximumf>, %117, %cst_43 [2] : vector<1x8x8xf32> to vector<1x8xf32>
    %119 = vector.shape_cast %118 : vector<1x8xf32> to vector<1x8x1xf32>
    %120 = vector.broadcast %119 : vector<1x8x1xf32> to vector<1x8x8xf32>
    %121 = arith.subf %117, %120 : vector<1x8x8xf32>
    %122 = math.exp %121 : vector<1x8x8xf32>
    %cst_44 = arith.constant dense<0.000000e+00> : vector<1x8xf32>
    %123 = vector.multi_reduction <add>, %122, %cst_44 [2] : vector<1x8x8xf32> to vector<1x8xf32>
    %124 = vector.shape_cast %123 : vector<1x8xf32> to vector<1x8x1xf32>
    %125 = tpu.reciprocal %124 {approx = true} : vector<1x8x1xf32> -> vector<1x8x1xf32>
    %126 = vector.broadcast %125 : vector<1x8x1xf32> to vector<1x8x8xf32>
    %127 = arith.mulf %122, %126 : vector<1x8x8xf32>
    %128 = arith.truncf %127 : vector<1x8x8xf32> to vector<1x8x8xbf16>
    %129 = vector.extract_strided_slice %56 {offsets = [0, 0, 24], sizes = [1, 8, 8], strides = [1, 1, 1]} : vector<1x8x32xbf16> to vector<1x8x8xbf16>
    "tpu.trace_start"() <{level = 10 : i32, message = "bqk,bkd->bqd"}> : () -> ()
    %cst_45 = arith.constant dense<0.000000e+00> : vector<1x8x8xf32>
    %130 = tpu.matmul %128, %129, %cst_45 {dimension_numbers = #tpu.dot_dimension_numbers<[2], [1], [1], [2], [0, 0, 0, 1, 1, 2], [0], [0]>} : vector<1x8x8xbf16>, vector<1x8x8xbf16>, vector<1x8x8xf32> -> vector<1x8x8xf32>
    "tpu.trace_stop"() : () -> ()
    %131 = vector.shape_cast %130 : vector<1x8x8xf32> to vector<8x8xf32>
    %c0_46 = arith.constant 0 : index
    %c24 = arith.constant 24 : index
    %132 = vector.load %arg22[%c0_46, %c24] : memref<8x32xf32, #tpu.memory_space<vmem>>, vector<8x8xf32>
    tpu.vector_store %arg22[%c0_46, %c24], %131 {strides = array<i32>} : memref<8x32xf32, #tpu.memory_space<vmem>>, vector<8x8xf32>,
    %c0_47 = arith.constant 0 : index
    %c0_48 = arith.constant 0 : index
    %133 = vector.load %arg22[%c0_47, %c0_48] : memref<8x32xf32, #tpu.memory_space<vmem>>, vector<8x32xf32>
    %134 = arith.truncf %133 : vector<8x32xf32> to vector<8x32xbf16>
    %c0_49 = arith.constant 0 : index
    %c0_50 = arith.constant 0 : index
    %135 = vector.load %arg7[%c0_49, %c0_50] : memref<32x32xbf16, #tpu.memory_space<vmem>>, vector<32x32xbf16>
    %cst_51 = arith.constant dense<0.000000e+00> : vector<8x32xf32>
    %136 = tpu.matmul %134, %135, %cst_51 {dimension_numbers = #tpu.dot_dimension_numbers<[1], [0], [0], [1], [0, 0, 1, 1], [], []>} : vector<8x32xbf16>, vector<32x32xbf16>, vector<8x32xf32> -> vector<8x32xf32>
    %c0_52 = arith.constant 0 : index
    %c0_53 = arith.constant 0 : index
    %137 = vector.load %arg8[%c0_52, %c0_53] : memref<1x32xf32, #tpu.memory_space<vmem>>, vector<1x32xf32>
    %138 = vector.broadcast %137 : vector<1x32xf32> to vector<8x32xf32>
    %139 = arith.addf %136, %138 : vector<8x32xf32>
    %140 = vector.shape_cast %139 : vector<8x32xf32> to vector<1x8x32xf32>
    %141 = arith.addf %0, %140 : vector<1x8x32xf32>
    %c0_54 = arith.constant 0 : index
    %c0_55 = arith.constant 0 : index
    %142 = vector.load %arg17[%c0_54, %c0_55] : memref<1x32xf32, #tpu.memory_space<vmem>>, vector<1x32xf32>
    %c0_56 = arith.constant 0 : index
    %c0_57 = arith.constant 0 : index
    %143 = vector.load %arg18[%c0_56, %c0_57] : memref<1x32xf32, #tpu.memory_space<vmem>>, vector<1x32xf32>
    %cst_58 = arith.constant dense<0.000000e+00> : vector<1x8xf32>
    %144 = vector.multi_reduction <add>, %141, %cst_58 [2] : vector<1x8x32xf32> to vector<1x8xf32>
    %145 = vector.shape_cast %144 : vector<1x8xf32> to vector<1x8x1xf32>
    %cst_59 = arith.constant 3.200000e+01 : f32
    %146 = vector.broadcast %cst_59 : f32 to vector<1x8x1xf32>
    %147 = arith.divf %145, %146 : vector<1x8x1xf32>
    %148 = vector.broadcast %147 : vector<1x8x1xf32> to vector<1x8x32xf32>
    %149 = arith.subf %141, %148 : vector<1x8x32xf32>
    %150 = arith.mulf %149, %149 : vector<1x8x32xf32>
    %cst_60 = arith.constant dense<0.000000e+00> : vector<1x8xf32>
    %151 = vector.multi_reduction <add>, %150, %cst_60 [2] : vector<1x8x32xf32> to vector<1x8xf32>
    %152 = vector.shape_cast %151 : vector<1x8xf32> to vector<1x8x1xf32>
    %cst_61 = arith.constant 3.200000e+01 : f32
    %153 = vector.broadcast %cst_61 : f32 to vector<1x8x1xf32>
    %154 = arith.divf %152, %153 : vector<1x8x1xf32>
    %155 = vector.broadcast %147 : vector<1x8x1xf32> to vector<1x8x32xf32>
    %156 = arith.subf %141, %155 : vector<1x8x32xf32>
    %cst_62 = arith.constant 9.99999974E-6 : f32
    %157 = vector.broadcast %cst_62 : f32 to vector<1x8x1xf32>
    %158 = arith.addf %154, %157 : vector<1x8x1xf32>
    %159 = math.rsqrt %158 : vector<1x8x1xf32>
    %160 = vector.broadcast %159 : vector<1x8x1xf32> to vector<1x8x32xf32>
    %161 = arith.mulf %156, %160 : vector<1x8x32xf32>
    %162 = vector.shape_cast %142 : vector<1x32xf32> to vector<1x1x32xf32>
    %163 = vector.broadcast %162 : vector<1x1x32xf32> to vector<1x8x32xf32>
    %164 = arith.mulf %161, %163 : vector<1x8x32xf32>
    %165 = vector.shape_cast %143 : vector<1x32xf32> to vector<1x1x32xf32>
    %166 = vector.broadcast %165 : vector<1x1x32xf32> to vector<1x8x32xf32>
    %167 = arith.addf %164, %166 : vector<1x8x32xf32>
    %168 = vector.shape_cast %167 : vector<1x8x32xf32> to vector<8x32xf32>
    %169 = arith.truncf %168 : vector<8x32xf32> to vector<8x32xbf16>
    %c0_63 = arith.constant 0 : index
    %c0_64 = arith.constant 0 : index
    %170 = vector.load %arg9[%c0_63, %c0_64] : memref<32x32xbf16, #tpu.memory_space<vmem>>, vector<32x32xbf16>
    %cst_65 = arith.constant dense<0.000000e+00> : vector<8x32xf32>
    %171 = tpu.matmul %169, %170, %cst_65 {dimension_numbers = #tpu.dot_dimension_numbers<[1], [0], [0], [1], [0, 0, 1, 1], [], []>} : vector<8x32xbf16>, vector<32x32xbf16>, vector<8x32xf32> -> vector<8x32xf32>
    %c0_66 = arith.constant 0 : index
    %c0_67 = arith.constant 0 : index
    %172 = vector.load %arg10[%c0_66, %c0_67] : memref<1x32xf32, #tpu.memory_space<vmem>>, vector<1x32xf32>
    %173 = vector.broadcast %172 : vector<1x32xf32> to vector<8x32xf32>
    %174 = arith.addf %171, %173 : vector<8x32xf32>
    %c0_68 = arith.constant 0 : index
    %c0_69 = arith.constant 0 : index
    %c0_70 = arith.constant 0 : index
    %175 = vector.load %arg2[%c0_68, %c0_69, %c0_70] : memref<1x8x32xf32, #tpu.memory_space<vmem>>, vector<1x8x32xf32>
    %176 = vector.shape_cast %175 : vector<1x8x32xf32> to vector<8x32xf32>
    %177 = arith.truncf %176 : vector<8x32xf32> to vector<8x32xbf16>
    %c0_71 = arith.constant 0 : index
    %c0_72 = arith.constant 0 : index
    %178 = vector.load %arg11[%c0_71, %c0_72] : memref<32x64xbf16, #tpu.memory_space<vmem>>, vector<32x64xbf16>
    %cst_73 = arith.constant dense<0.000000e+00> : vector<8x64xf32>
    %179 = tpu.matmul %177, %178, %cst_73 {dimension_numbers = #tpu.dot_dimension_numbers<[1], [0], [0], [1], [0, 0, 1, 1], [], []>} : vector<8x32xbf16>, vector<32x64xbf16>, vector<8x64xf32> -> vector<8x64xf32>
    %c0_74 = arith.constant 0 : index
    %c0_75 = arith.constant 0 : index
    %180 = vector.load %arg12[%c0_74, %c0_75] : memref<1x64xf32, #tpu.memory_space<vmem>>, vector<1x64xf32>
    %181 = vector.broadcast %180 : vector<1x64xf32> to vector<8x64xf32>
    %182 = arith.addf %179, %181 : vector<8x64xf32>
    %183 = vector.extract_strided_slice %182 {offsets = [0, 0], sizes = [8, 32], strides = [1, 1]} : vector<8x64xf32> to vector<8x32xf32>
    %184 = vector.extract_strided_slice %182 {offsets = [0, 32], sizes = [8, 32], strides = [1, 1]} : vector<8x64xf32> to vector<8x32xf32>
    %185 = vector.shape_cast %174 : vector<8x32xf32> to vector<1x8x32xf32>
    %186 = arith.truncf %185 : vector<1x8x32xf32> to vector<1x8x32xbf16>
    %187 = vector.shape_cast %183 : vector<8x32xf32> to vector<1x8x32xf32>
    %188 = arith.truncf %187 : vector<1x8x32xf32> to vector<1x8x32xbf16>
    %189 = vector.shape_cast %184 : vector<8x32xf32> to vector<1x8x32xf32>
    %190 = arith.truncf %189 : vector<1x8x32xf32> to vector<1x8x32xbf16>
    %191 = vector.shape_cast %14 : vector<1x1x8xf32> to vector<1x1x8xf32>
    %192 = vector.broadcast %191 : vector<1x1x8xf32> to vector<1x8x8xf32>
    %193 = vector.extract_strided_slice %186 {offsets = [0, 0, 0], sizes = [1, 8, 8], strides = [1, 1, 1]} : vector<1x8x32xbf16> to vector<1x8x8xbf16>
    %194 = vector.extract_strided_slice %188 {offsets = [0, 0, 0], sizes = [1, 8, 8], strides = [1, 1, 1]} : vector<1x8x32xbf16> to vector<1x8x8xbf16>
    "tpu.trace_start"() <{level = 10 : i32, message = "bqd,bkd->bqk"}> : () -> ()
    %cst_76 = arith.constant dense<0.000000e+00> : vector<1x8x8xf32>
    %195 = tpu.matmul %193, %194, %cst_76 {dimension_numbers = #tpu.dot_dimension_numbers<[2], [2], [1], [1], [0, 0, 0, 1, 1, 1], [0], [0]>} : vector<1x8x8xbf16>, vector<1x8x8xbf16>, vector<1x8x8xf32> -> vector<1x8x8xf32>
    "tpu.trace_stop"() : () -> ()
    %196 = arith.addf %195, %192 : vector<1x8x8xf32>
    %cst_77 = arith.constant dense<0xFF800000> : vector<1x8xf32>
    %197 = vector.multi_reduction <maximumf>, %196, %cst_77 [2] : vector<1x8x8xf32> to vector<1x8xf32>
    %198 = vector.shape_cast %197 : vector<1x8xf32> to vector<1x8x1xf32>
    %199 = vector.broadcast %198 : vector<1x8x1xf32> to vector<1x8x8xf32>
    %200 = arith.subf %196, %199 : vector<1x8x8xf32>
    %201 = math.exp %200 : vector<1x8x8xf32>
    %cst_78 = arith.constant dense<0.000000e+00> : vector<1x8xf32>
    %202 = vector.multi_reduction <add>, %201, %cst_78 [2] : vector<1x8x8xf32> to vector<1x8xf32>
    %203 = vector.shape_cast %202 : vector<1x8xf32> to vector<1x8x1xf32>
    %204 = tpu.reciprocal %203 {approx = true} : vector<1x8x1xf32> -> vector<1x8x1xf32>
    %205 = vector.broadcast %204 : vector<1x8x1xf32> to vector<1x8x8xf32>
    %206 = arith.mulf %201, %205 : vector<1x8x8xf32>
    %207 = arith.truncf %206 : vector<1x8x8xf32> to vector<1x8x8xbf16>
    %208 = vector.extract_strided_slice %190 {offsets = [0, 0, 0], sizes = [1, 8, 8], strides = [1, 1, 1]} : vector<1x8x32xbf16> to vector<1x8x8xbf16>
    "tpu.trace_start"() <{level = 10 : i32, message = "bqk,bkd->bqd"}> : () -> ()
    %cst_79 = arith.constant dense<0.000000e+00> : vector<1x8x8xf32>
    %209 = tpu.matmul %207, %208, %cst_79 {dimension_numbers = #tpu.dot_dimension_numbers<[2], [1], [1], [2], [0, 0, 0, 1, 1, 2], [0], [0]>} : vector<1x8x8xbf16>, vector<1x8x8xbf16>, vector<1x8x8xf32> -> vector<1x8x8xf32>
    "tpu.trace_stop"() : () -> ()
    %210 = vector.shape_cast %209 : vector<1x8x8xf32> to vector<8x8xf32>
    %c0_80 = arith.constant 0 : index
    %c0_81 = arith.constant 0 : index
    %211 = vector.load %arg22[%c0_80, %c0_81] : memref<8x32xf32, #tpu.memory_space<vmem>>, vector<8x8xf32>
    tpu.vector_store %arg22[%c0_80, %c0_81], %210 {strides = array<i32>} : memref<8x32xf32, #tpu.memory_space<vmem>>, vector<8x8xf32>,
    %212 = vector.extract_strided_slice %186 {offsets = [0, 0, 8], sizes = [1, 8, 8], strides = [1, 1, 1]} : vector<1x8x32xbf16> to vector<1x8x8xbf16>
    %213 = vector.extract_strided_slice %188 {offsets = [0, 0, 8], sizes = [1, 8, 8], strides = [1, 1, 1]} : vector<1x8x32xbf16> to vector<1x8x8xbf16>
    "tpu.trace_start"() <{level = 10 : i32, message = "bqd,bkd->bqk"}> : () -> ()
    %cst_82 = arith.constant dense<0.000000e+00> : vector<1x8x8xf32>
    %214 = tpu.matmul %212, %213, %cst_82 {dimension_numbers = #tpu.dot_dimension_numbers<[2], [2], [1], [1], [0, 0, 0, 1, 1, 1], [0], [0]>} : vector<1x8x8xbf16>, vector<1x8x8xbf16>, vector<1x8x8xf32> -> vector<1x8x8xf32>
    "tpu.trace_stop"() : () -> ()
    %215 = arith.addf %214, %192 : vector<1x8x8xf32>
    %cst_83 = arith.constant dense<0xFF800000> : vector<1x8xf32>
    %216 = vector.multi_reduction <maximumf>, %215, %cst_83 [2] : vector<1x8x8xf32> to vector<1x8xf32>
    %217 = vector.shape_cast %216 : vector<1x8xf32> to vector<1x8x1xf32>
    %218 = vector.broadcast %217 : vector<1x8x1xf32> to vector<1x8x8xf32>
    %219 = arith.subf %215, %218 : vector<1x8x8xf32>
    %220 = math.exp %219 : vector<1x8x8xf32>
    %cst_84 = arith.constant dense<0.000000e+00> : vector<1x8xf32>
    %221 = vector.multi_reduction <add>, %220, %cst_84 [2] : vector<1x8x8xf32> to vector<1x8xf32>
    %222 = vector.shape_cast %221 : vector<1x8xf32> to vector<1x8x1xf32>
    %223 = tpu.reciprocal %222 {approx = true} : vector<1x8x1xf32> -> vector<1x8x1xf32>
    %224 = vector.broadcast %223 : vector<1x8x1xf32> to vector<1x8x8xf32>
    %225 = arith.mulf %220, %224 : vector<1x8x8xf32>
    %226 = arith.truncf %225 : vector<1x8x8xf32> to vector<1x8x8xbf16>
    %227 = vector.extract_strided_slice %190 {offsets = [0, 0, 8], sizes = [1, 8, 8], strides = [1, 1, 1]} : vector<1x8x32xbf16> to vector<1x8x8xbf16>
    "tpu.trace_start"() <{level = 10 : i32, message = "bqk,bkd->bqd"}> : () -> ()
    %cst_85 = arith.constant dense<0.000000e+00> : vector<1x8x8xf32>
    %228 = tpu.matmul %226, %227, %cst_85 {dimension_numbers = #tpu.dot_dimension_numbers<[2], [1], [1], [2], [0, 0, 0, 1, 1, 2], [0], [0]>} : vector<1x8x8xbf16>, vector<1x8x8xbf16>, vector<1x8x8xf32> -> vector<1x8x8xf32>
    "tpu.trace_stop"() : () -> ()
    %229 = vector.shape_cast %228 : vector<1x8x8xf32> to vector<8x8xf32>
    %c0_86 = arith.constant 0 : index
    %c8_87 = arith.constant 8 : index
    %230 = vector.load %arg22[%c0_86, %c8_87] : memref<8x32xf32, #tpu.memory_space<vmem>>, vector<8x8xf32>
    tpu.vector_store %arg22[%c0_86, %c8_87], %229 {strides = array<i32>} : memref<8x32xf32, #tpu.memory_space<vmem>>, vector<8x8xf32>,
    %231 = vector.extract_strided_slice %186 {offsets = [0, 0, 16], sizes = [1, 8, 8], strides = [1, 1, 1]} : vector<1x8x32xbf16> to vector<1x8x8xbf16>
    %232 = vector.extract_strided_slice %188 {offsets = [0, 0, 16], sizes = [1, 8, 8], strides = [1, 1, 1]} : vector<1x8x32xbf16> to vector<1x8x8xbf16>
    "tpu.trace_start"() <{level = 10 : i32, message = "bqd,bkd->bqk"}> : () -> ()
    %cst_88 = arith.constant dense<0.000000e+00> : vector<1x8x8xf32>
    %233 = tpu.matmul %231, %232, %cst_88 {dimension_numbers = #tpu.dot_dimension_numbers<[2], [2], [1], [1], [0, 0, 0, 1, 1, 1], [0], [0]>} : vector<1x8x8xbf16>, vector<1x8x8xbf16>, vector<1x8x8xf32> -> vector<1x8x8xf32>
    "tpu.trace_stop"() : () -> ()
    %234 = arith.addf %233, %192 : vector<1x8x8xf32>
    %cst_89 = arith.constant dense<0xFF800000> : vector<1x8xf32>
    %235 = vector.multi_reduction <maximumf>, %234, %cst_89 [2] : vector<1x8x8xf32> to vector<1x8xf32>
    %236 = vector.shape_cast %235 : vector<1x8xf32> to vector<1x8x1xf32>
    %237 = vector.broadcast %236 : vector<1x8x1xf32> to vector<1x8x8xf32>
    %238 = arith.subf %234, %237 : vector<1x8x8xf32>
    %239 = math.exp %238 : vector<1x8x8xf32>
    %cst_90 = arith.constant dense<0.000000e+00> : vector<1x8xf32>
    %240 = vector.multi_reduction <add>, %239, %cst_90 [2] : vector<1x8x8xf32> to vector<1x8xf32>
    %241 = vector.shape_cast %240 : vector<1x8xf32> to vector<1x8x1xf32>
    %242 = tpu.reciprocal %241 {approx = true} : vector<1x8x1xf32> -> vector<1x8x1xf32>
    %243 = vector.broadcast %242 : vector<1x8x1xf32> to vector<1x8x8xf32>
    %244 = arith.mulf %239, %243 : vector<1x8x8xf32>
    %245 = arith.truncf %244 : vector<1x8x8xf32> to vector<1x8x8xbf16>
    %246 = vector.extract_strided_slice %190 {offsets = [0, 0, 16], sizes = [1, 8, 8], strides = [1, 1, 1]} : vector<1x8x32xbf16> to vector<1x8x8xbf16>
    "tpu.trace_start"() <{level = 10 : i32, message = "bqk,bkd->bqd"}> : () -> ()
    %cst_91 = arith.constant dense<0.000000e+00> : vector<1x8x8xf32>
    %247 = tpu.matmul %245, %246, %cst_91 {dimension_numbers = #tpu.dot_dimension_numbers<[2], [1], [1], [2], [0, 0, 0, 1, 1, 2], [0], [0]>} : vector<1x8x8xbf16>, vector<1x8x8xbf16>, vector<1x8x8xf32> -> vector<1x8x8xf32>
    "tpu.trace_stop"() : () -> ()
    %248 = vector.shape_cast %247 : vector<1x8x8xf32> to vector<8x8xf32>
    %c0_92 = arith.constant 0 : index
    %c16_93 = arith.constant 16 : index
    %249 = vector.load %arg22[%c0_92, %c16_93] : memref<8x32xf32, #tpu.memory_space<vmem>>, vector<8x8xf32>
    tpu.vector_store %arg22[%c0_92, %c16_93], %248 {strides = array<i32>} : memref<8x32xf32, #tpu.memory_space<vmem>>, vector<8x8xf32>,
    %250 = vector.extract_strided_slice %186 {offsets = [0, 0, 24], sizes = [1, 8, 8], strides = [1, 1, 1]} : vector<1x8x32xbf16> to vector<1x8x8xbf16>
    %251 = vector.extract_strided_slice %188 {offsets = [0, 0, 24], sizes = [1, 8, 8], strides = [1, 1, 1]} : vector<1x8x32xbf16> to vector<1x8x8xbf16>
    "tpu.trace_start"() <{level = 10 : i32, message = "bqd,bkd->bqk"}> : () -> ()
    %cst_94 = arith.constant dense<0.000000e+00> : vector<1x8x8xf32>
    %252 = tpu.matmul %250, %251, %cst_94 {dimension_numbers = #tpu.dot_dimension_numbers<[2], [2], [1], [1], [0, 0, 0, 1, 1, 1], [0], [0]>} : vector<1x8x8xbf16>, vector<1x8x8xbf16>, vector<1x8x8xf32> -> vector<1x8x8xf32>
    "tpu.trace_stop"() : () -> ()
    %253 = arith.addf %252, %192 : vector<1x8x8xf32>
    %cst_95 = arith.constant dense<0xFF800000> : vector<1x8xf32>
    %254 = vector.multi_reduction <maximumf>, %253, %cst_95 [2] : vector<1x8x8xf32> to vector<1x8xf32>
    %255 = vector.shape_cast %254 : vector<1x8xf32> to vector<1x8x1xf32>
    %256 = vector.broadcast %255 : vector<1x8x1xf32> to vector<1x8x8xf32>
    %257 = arith.subf %253, %256 : vector<1x8x8xf32>
    %258 = math.exp %257 : vector<1x8x8xf32>
    %cst_96 = arith.constant dense<0.000000e+00> : vector<1x8xf32>
    %259 = vector.multi_reduction <add>, %258, %cst_96 [2] : vector<1x8x8xf32> to vector<1x8xf32>
    %260 = vector.shape_cast %259 : vector<1x8xf32> to vector<1x8x1xf32>
    %261 = tpu.reciprocal %260 {approx = true} : vector<1x8x1xf32> -> vector<1x8x1xf32>
    %262 = vector.broadcast %261 : vector<1x8x1xf32> to vector<1x8x8xf32>
    %263 = arith.mulf %258, %262 : vector<1x8x8xf32>
    %264 = arith.truncf %263 : vector<1x8x8xf32> to vector<1x8x8xbf16>
    %265 = vector.extract_strided_slice %190 {offsets = [0, 0, 24], sizes = [1, 8, 8], strides = [1, 1, 1]} : vector<1x8x32xbf16> to vector<1x8x8xbf16>
    "tpu.trace_start"() <{level = 10 : i32, message = "bqk,bkd->bqd"}> : () -> ()
    %cst_97 = arith.constant dense<0.000000e+00> : vector<1x8x8xf32>
    %266 = tpu.matmul %264, %265, %cst_97 {dimension_numbers = #tpu.dot_dimension_numbers<[2], [1], [1], [2], [0, 0, 0, 1, 1, 2], [0], [0]>} : vector<1x8x8xbf16>, vector<1x8x8xbf16>, vector<1x8x8xf32> -> vector<1x8x8xf32>
    "tpu.trace_stop"() : () -> ()
    %267 = vector.shape_cast %266 : vector<1x8x8xf32> to vector<8x8xf32>
    %c0_98 = arith.constant 0 : index
    %c24_99 = arith.constant 24 : index
    %268 = vector.load %arg22[%c0_98, %c24_99] : memref<8x32xf32, #tpu.memory_space<vmem>>, vector<8x8xf32>
    tpu.vector_store %arg22[%c0_98, %c24_99], %267 {strides = array<i32>} : memref<8x32xf32, #tpu.memory_space<vmem>>, vector<8x8xf32>,
    %c0_100 = arith.constant 0 : index
    %c0_101 = arith.constant 0 : index
    %269 = vector.load %arg22[%c0_100, %c0_101] : memref<8x32xf32, #tpu.memory_space<vmem>>, vector<8x32xf32>
    %270 = arith.truncf %269 : vector<8x32xf32> to vector<8x32xbf16>
    %c0_102 = arith.constant 0 : index
    %c0_103 = arith.constant 0 : index
    %271 = vector.load %arg13[%c0_102, %c0_103] : memref<32x32xbf16, #tpu.memory_space<vmem>>, vector<32x32xbf16>
    %cst_104 = arith.constant dense<0.000000e+00> : vector<8x32xf32>
    %272 = tpu.matmul %270, %271, %cst_104 {dimension_numbers = #tpu.dot_dimension_numbers<[1], [0], [0], [1], [0, 0, 1, 1], [], []>} : vector<8x32xbf16>, vector<32x32xbf16>, vector<8x32xf32> -> vector<8x32xf32>
    %c0_105 = arith.constant 0 : index
    %c0_106 = arith.constant 0 : index
    %273 = vector.load %arg14[%c0_105, %c0_106] : memref<1x32xf32, #tpu.memory_space<vmem>>, vector<1x32xf32>
    %274 = vector.broadcast %273 : vector<1x32xf32> to vector<8x32xf32>
    %275 = arith.addf %272, %274 : vector<8x32xf32>
    %276 = vector.shape_cast %275 : vector<8x32xf32> to vector<1x8x32xf32>
    %277 = arith.addf %141, %276 : vector<1x8x32xf32>
    %c0_107 = arith.constant 0 : index
    %c0_108 = arith.constant 0 : index
    %278 = vector.load %arg19[%c0_107, %c0_108] : memref<1x32xf32, #tpu.memory_space<vmem>>, vector<1x32xf32>
    %c0_109 = arith.constant 0 : index
    %c0_110 = arith.constant 0 : index
    %279 = vector.load %arg20[%c0_109, %c0_110] : memref<1x32xf32, #tpu.memory_space<vmem>>, vector<1x32xf32>
    %cst_111 = arith.constant dense<0.000000e+00> : vector<1x8xf32>
    %280 = vector.multi_reduction <add>, %277, %cst_111 [2] : vector<1x8x32xf32> to vector<1x8xf32>
    %281 = vector.shape_cast %280 : vector<1x8xf32> to vector<1x8x1xf32>
    %cst_112 = arith.constant 3.200000e+01 : f32
    %282 = vector.broadcast %cst_112 : f32 to vector<1x8x1xf32>
    %283 = arith.divf %281, %282 : vector<1x8x1xf32>
    %284 = vector.broadcast %283 : vector<1x8x1xf32> to vector<1x8x32xf32>
    %285 = arith.subf %277, %284 : vector<1x8x32xf32>
    %286 = arith.mulf %285, %285 : vector<1x8x32xf32>
    %cst_113 = arith.constant dense<0.000000e+00> : vector<1x8xf32>
    %287 = vector.multi_reduction <add>, %286, %cst_113 [2] : vector<1x8x32xf32> to vector<1x8xf32>
    %288 = vector.shape_cast %287 : vector<1x8xf32> to vector<1x8x1xf32>
    %cst_114 = arith.constant 3.200000e+01 : f32
    %289 = vector.broadcast %cst_114 : f32 to vector<1x8x1xf32>
    %290 = arith.divf %288, %289 : vector<1x8x1xf32>
    %291 = vector.broadcast %283 : vector<1x8x1xf32> to vector<1x8x32xf32>
    %292 = arith.subf %277, %291 : vector<1x8x32xf32>
    %cst_115 = arith.constant 9.99999974E-6 : f32
    %293 = vector.broadcast %cst_115 : f32 to vector<1x8x1xf32>
    %294 = arith.addf %290, %293 : vector<1x8x1xf32>
    %295 = math.rsqrt %294 : vector<1x8x1xf32>
    %296 = vector.broadcast %295 : vector<1x8x1xf32> to vector<1x8x32xf32>
    %297 = arith.mulf %292, %296 : vector<1x8x32xf32>
    %298 = vector.shape_cast %278 : vector<1x32xf32> to vector<1x1x32xf32>
    %299 = vector.broadcast %298 : vector<1x1x32xf32> to vector<1x8x32xf32>
    %300 = arith.mulf %297, %299 : vector<1x8x32xf32>
    %301 = vector.shape_cast %279 : vector<1x32xf32> to vector<1x1x32xf32>
    %302 = vector.broadcast %301 : vector<1x1x32xf32> to vector<1x8x32xf32>
    %303 = arith.addf %300, %302 : vector<1x8x32xf32>
    %c0_116 = arith.constant 0 : index
    %c0_117 = arith.constant 0 : index
    %c0_118 = arith.constant 0 : index
    %304 = vector.load %arg21[%c0_116, %c0_117, %c0_118] : memref<1x8x32xf32, #tpu.memory_space<vmem>>, vector<1x8x32xf32>
    tpu.vector_store %arg21[%c0_116, %c0_117, %c0_118], %303 {strides = array<i32>} : memref<1x8x32xf32, #tpu.memory_space<vmem>>, vector<1x8x32xf32>,
    return
  }
  func.func @transform_0(%arg0: i32) -> (i32, i32, i32) {
    %c0_i32 = arith.constant 0 : i32
    %c0_i32_0 = arith.constant 0 : i32
    %c0_i32_1 = arith.constant 0 : i32
    return %arg0, %c0_i32, %c0_i32_0 : i32, i32, i32
  }
  func.func @transform_1(%arg0: i32) -> (i32, i32, i32) {
    %c0_i32 = arith.constant 0 : i32
    %c0_i32_0 = arith.constant 0 : i32
    %c0_i32_1 = arith.constant 0 : i32
    return %arg0, %c0_i32, %c0_i32_0 : i32, i32, i32
  }
  func.func @transform_2(%arg0: i32) -> (i32, i32, i32) {
    %c0_i32 = arith.constant 0 : i32
    %c0_i32_0 = arith.constant 0 : i32
    %c0_i32_1 = arith.constant 0 : i32
    return %arg0, %c0_i32, %c0_i32_0 : i32, i32, i32
  }
  func.func @transform_3(%arg0: i32) -> (i32, i32, i32) {
    %c0_i32 = arith.constant 0 : i32
    %c0_i32_0 = arith.constant 0 : i32
    %c0_i32_1 = arith.constant 0 : i32
    return %arg0, %c0_i32, %c0_i32_0 : i32, i32, i32
  }
  func.func @transform_4(%arg0: i32) -> (i32, i32) {
    %c0_i32 = arith.constant 0 : i32
    %c0_i32_0 = arith.constant 0 : i32
    %c0_i32_1 = arith.constant 0 : i32
    return %c0_i32, %c0_i32_0 : i32, i32
  }
  func.func @transform_5(%arg0: i32) -> (i32, i32) {
    %c0_i32 = arith.constant 0 : i32
    %c0_i32_0 = arith.constant 0 : i32
    %c0_i32_1 = arith.constant 0 : i32
    return %c0_i32, %c0_i32_0 : i32, i32
  }
  func.func @transform_6(%arg0: i32) -> (i32, i32) {
    %c0_i32 = arith.constant 0 : i32
    %c0_i32_0 = arith.constant 0 : i32
    %c0_i32_1 = arith.constant 0 : i32
    return %c0_i32, %c0_i32_0 : i32, i32
  }
  func.func @transform_7(%arg0: i32) -> (i32, i32) {
    %c0_i32 = arith.constant 0 : i32
    %c0_i32_0 = arith.constant 0 : i32
    %c0_i32_1 = arith.constant 0 : i32
    return %c0_i32, %c0_i32_0 : i32, i32
  }
  func.func @transform_8(%arg0: i32) -> (i32, i32) {
    %c0_i32 = arith.constant 0 : i32
    %c0_i32_0 = arith.constant 0 : i32
    %c0_i32_1 = arith.constant 0 : i32
    return %c0_i32, %c0_i32_0 : i32, i32
  }
  func.func @transform_9(%arg0: i32) -> (i32, i32) {
    %c0_i32 = arith.constant 0 : i32
    %c0_i32_0 = arith.constant 0 : i32
    %c0_i32_1 = arith.constant 0 : i32
    return %c0_i32, %c0_i32_0 : i32, i32
  }
  func.func @transform_10(%arg0: i32) -> (i32, i32) {
    %c0_i32 = arith.constant 0 : i32
    %c0_i32_0 = arith.constant 0 : i32
    %c0_i32_1 = arith.constant 0 : i32
    return %c0_i32, %c0_i32_0 : i32, i32
  }
  func.func @transform_11(%arg0: i32) -> (i32, i32) {
    %c0_i32 = arith.constant 0 : i32
    %c0_i32_0 = arith.constant 0 : i32
    %c0_i32_1 = arith.constant 0 : i32
    return %c0_i32, %c0_i32_0 : i32, i32
  }
  func.func @transform_12(%arg0: i32) -> (i32, i32) {
    %c0_i32 = arith.constant 0 : i32
    %c0_i32_0 = arith.constant 0 : i32
    %c0_i32_1 = arith.constant 0 : i32
    return %c0_i32, %c0_i32_0 : i32, i32
  }
  func.func @transform_13(%arg0: i32) -> (i32, i32) {
    %c0_i32 = arith.constant 0 : i32
    %c0_i32_0 = arith.constant 0 : i32
    %c0_i32_1 = arith.constant 0 : i32
    return %c0_i32, %c0_i32_0 : i32, i32
  }
  func.func @transform_14(%arg0: i32) -> (i32, i32) {
    %c0_i32 = arith.constant 0 : i32
    %c0_i32_0 = arith.constant 0 : i32
    %c0_i32_1 = arith.constant 0 : i32
    return %c0_i32, %c0_i32_0 : i32, i32
  }
  func.func @transform_15(%arg0: i32) -> (i32, i32) {
    %c0_i32 = arith.constant 0 : i32
    %c0_i32_0 = arith.constant 0 : i32
    %c0_i32_1 = arith.constant 0 : i32
    return %c0_i32, %c0_i32_0 : i32, i32
  }
  func.func @transform_16(%arg0: i32) -> (i32, i32) {
    %c0_i32 = arith.constant 0 : i32
    %c0_i32_0 = arith.constant 0 : i32
    %c0_i32_1 = arith.constant 0 : i32
    return %c0_i32, %c0_i32_0 : i32, i32
  }
  func.func @transform_17(%arg0: i32) -> (i32, i32) {
    %c0_i32 = arith.constant 0 : i32
    %c0_i32_0 = arith.constant 0 : i32
    %c0_i32_1 = arith.constant 0 : i32
    return %c0_i32, %c0_i32_0 : i32, i32
  }
  func.func @transform_18(%arg0: i32) -> (i32, i32) {
    %c0_i32 = arith.constant 0 : i32
    %c0_i32_0 = arith.constant 0 : i32
    %c0_i32_1 = arith.constant 0 : i32
    return %c0_i32, %c0_i32_0 : i32, i32
  }
  func.func @transform_19(%arg0: i32) -> (i32, i32) {
    %c0_i32 = arith.constant 0 : i32
    %c0_i32_0 = arith.constant 0 : i32
    %c0_i32_1 = arith.constant 0 : i32
    return %c0_i32, %c0_i32_0 : i32, i32
  }
  func.func @transform_20(%arg0: i32) -> (i32, i32, i32) {
    %c0_i32 = arith.constant 0 : i32
    %c0_i32_0 = arith.constant 0 : i32
    %c0_i32_1 = arith.constant 0 : i32
    return %arg0, %c0_i32, %c0_i32_0 : i32, i32, i32
  }
}

</mosaic_0001>

<bundles_post_ra>
// kernel: tpu_custom_call.1
= control target key start
LH: loop header
LB: loop body
LE: loop exit
PB: predicated region body
PF: predicated region fallthrough
CT: control target
= control target key end

     0   :  { %s3833_s0 = inlined_call_operand.hbm [shape: f32[2,8,32], index: 0, kind: input, shape index: {}]   ;;  %s3834_s1 = inlined_call_operand.hbm [shape: f32[2,8,32], index: 1, kind: input, shape index: {}]   ;;  %s3835_s2 = inlined_call_operand.hbm [shape: s8[2,8,8], index: 2, kind: input, shape index: {}]   ;;  %s3836_s3 = inlined_call_operand.vmem [shape: s8[2,1,8], index: 3, kind: input, shape index: {}]   ;;  %s3837_s4 = inlined_call_operand.vmem [shape: bf16[32,96], index: 4, kind: input, shape index: {}]   ;;  %s3838_s5 = inlined_call_operand.vmem [shape: f32[1,96], index: 5, kind: input, shape index: {}]   ;;  %s3839_s6 = inlined_call_operand.hbm [shape: bf16[32,32], index: 6, kind: input, shape index: {}]   ;;  %s3840_s7 = inlined_call_operand.hbm [shape: f32[1,32], index: 7, kind: input, shape index: {}]   ;;  %s3841_s8 = inlined_call_operand.vmem [shape: bf16[32,32], index: 8, kind: input, shape index: {}]   ;;  %s3842_s9 = inlined_call_operand.hbm [shape: f32[1,32], index: 9, kind: input, shape index: {}]   ;;  %s3843_s10 = inlined_call_operand.hbm [shape: bf16[32,64], index: 10, kind: input, shape index: {}]   ;;  %s3844_s11 = inlined_call_operand.hbm [shape: f32[1,64], index: 11, kind: input, shape index: {}]   ;;  %s3845_s12 = inlined_call_operand.vmem [shape: bf16[32,32], index: 12, kind: input, shape index: {}]   ;;  %s3846_s13 = inlined_call_operand.vmem [shape: f32[1,32], index: 13, kind: input, shape index: {}]   ;;  %s3847_s14 = inlined_call_operand.vmem [shape: f32[1,32], index: 14, kind: input, shape index: {}]   ;;  %s3848_s15 = inlined_call_operand.vmem [shape: f32[1,32], index: 15, kind: input, shape index: {}]   ;;  %s3849_s16 = inlined_call_operand.vmem [shape: f32[1,32], index: 16, kind: input, shape index: {}]   ;;  %s3850_s17 = inlined_call_operand.vmem [shape: f32[1,32], index: 17, kind: input, shape index: {}]   ;;  %s3851_s18 = inlined_call_operand.vmem [shape: f32[1,32], index: 18, kind: input, shape index: {}]   ;;  %s3852_s19 = inlined_call_operand.vmem [shape: f32[1,32], index: 19, kind: input, shape index: {}]   ;;  %s3853_s20 = inlined_call_operand.hbm [shape: f32[2,8,32], index: 20, kind: output, shape index: {}]  }
   0x1   :  { %3884 = sst [smem:[#allocation30_spill]] %s3833_s0 }
   0x2   :  { %3885 = sst [smem:[#allocation31_spill]] %s3834_s1 }
   0x3   :  { %3886 = sst [smem:[#allocation32_spill]] %s3835_s2 }
   0x4   :  { %3887 = sst [smem:[#allocation33_spill]] %s3836_s3 }
   0x5   :  { %3888 = sst [smem:[#allocation34_spill]] %s3837_s4 }
   0x6   :  { %3889 = sst [smem:[#allocation35_spill]] %s3839_s6 }
   0x7   :  { %3890 = sst [smem:[#allocation36_spill]] %s3840_s7 }
   0x8   :  { %3891 = sst [smem:[#allocation37_spill]] %s3842_s9 }
   0x9   :  { %3892 = sst [smem:[#allocation38_spill]] %s3843_s10 }
   0xa   :  { %3893 = sst [smem:[#allocation39_spill]] %s3845_s12 }
   0xb   :  { %3894 = sst [smem:[#allocation40_spill]] %s3846_s13 }
   0xc   :  { %3895 = sst [smem:[#allocation41_spill]] %s3849_s16 }
   0xd   :  { %3896 = sst [smem:[#allocation42_spill]] %s3850_s17 }
   0xe   :  { %3897 = sst [smem:[#allocation43_spill]] %s3851_s18 }
   0xf   :  { %3898 = sst [smem:[#allocation44_spill]] %s3852_s19 }
  0x10   :  { %3899 = sst [smem:[#allocation45_spill]] %s3853_s20 }
  0x11   :  { %25 = vsyncpa [#allocation4], 0 }
  0x12   :  { %27 = vsyncpa [#allocation4 + $0x1], 0 }
  0x13   :  { %28 = vsyncpa [#allocation7], 0 }
  0x14   :  { %30 = vsyncpa [#allocation7 + $0x1], 0 }
  0x15   :  { %31 = vsyncpa [#allocation10], 0 }
  0x16   :  { %32 = vsyncpa [#allocation13], 0 }
  0x17   :  { %33 = vsyncpa [#allocation16], 0 }
  0x18   :  { %34 = vsyncpa [#allocation5], 0 }
  0x19   :  { %36 = vsyncpa [#allocation5 + $0x1], 0  ;;  %s3216_s1 = smov 0   ;;  %s3218_s22 = smov 0  }
  0x1a   :  { %s3220_s23 = smov 0   ;;  %s3222_s24 = smov 0  }
  0x1b LB: > { %3900 = sst [smem:[#allocation24_spill]] %s3069_s1  ;;  %s3083_s2 = smov [#allocation9]   ;;  %s3081_s24 = sphi %s3222_s24, %s3954_s24   ;;  %s3077_s23 = sphi %s3220_s23, %s3956_s23   ;;  %s3073_s22 = sphi %s3218_s22, %s3958_s22   ;;  %s3069_s1 = sphi %s3216_s1, %s3957_s1  }
  0x1c   : > { %3901 = sst [smem:[#allocation25_spill]] %s3077_s23  ;;  %s531_s25 = sshll.u32 %s3083_s2, 4  ;;  %s3242_s25 = int_to_ptr.vmem [resolvable:$true] %s531_s25 }
  0x1d   : > { %s3237_s3 = sadd.s32 4294967295, %s3081_s24   ;;  %p2343_p0 = scmp.ge.s32.totalorder %s3081_s24, 1 }
  0x1e   : > { %p3870_p1 = scmp.eq.s32.totalorder %s3237_s3, 0  ;;  %p513_p2 = scmp.lt.s32.totalorder %s3081_s24, 3 }
  0x1f   : > { %s3084_s27 = smov [#allocation12]   ;;  %s3904_s6 = sld [smem:[#allocation35_spill]] }
  0x20   : > { %p3244_p3 = pnand %p2343_p0, %p513_p2  ;;  %s559_s28 = sshll.u32 %s3084_s27, 4  ;;  %s3257_s28 = int_to_ptr.vmem [resolvable:$true] %s559_s28 }
  0x22   : > { %s3902_s26 = scalar_select %p3244_p3, 1, 0 }
  0x23   : > { %p2623_p5 = pneg %p3244_p3 }
  0x25   : > { %p3253_p6 = pnand %p2623_p5, %p3870_p1  ;;  %s2769_s0 = scalar_lea.hbm %s3904_s6, 256 }
  0x26   : > { %p2770_p7 = scmp.ne.s32.totalorder %s3904_s6, %s2769_s0  ;;  %p2776_p11 = scmp.lt.u32.totalorder %s2769_s0, %s3904_s6 }
  0x27   : > { %s3903_s4 = scalar_select %p3253_p6, 1, 0 }
  0x28   : > { %p3267_p8 = pneg %p3253_p6 }
  0x2a   : > { %s3905_s20 = scalar_select %p3267_p8, 1, 0 }
  0x2b   : > { %p2772_p9 = pnand %p3267_p8, %p2770_p7 }
  0x2d   : > { %p2773_p10 = pneg %p2772_p9 }
  0x2f   : > { %p2778_p12 = pnand %p2776_p11, %p2773_p10 }
  0x31   : > { %2781 = shalt.err (!%p2778_p12)
}
  0x32   : > { %s2782_s29 = scalar_lea.vmem %s3242_s25, 256  ;;  %p2790_p5 = scmp.lt.s32.totalorder %s3242_s25, %s3242_s25 }
  0x33   : > { %p2783_p13 = scmp.ne.s32.totalorder %s3242_s25, %s2782_s29  ;;  %p2791_p4 = scmp.lt.s32.totalorder %s2782_s29, %s2782_s29 }
  0x35   : > { %p2785_p0 = pnand %p2783_p13, %p3267_p8  ;;  %p2792_p7 = por %p2791_p4, %p2790_p5 }
  0x37   : > { %p2786_p2 = pneg %p2785_p0 }
  0x39   : > { %p2793_p9 = pnand %p2792_p7, %p2786_p2 }
  0x3b   : > { %2796 = shalt.err (!%p2793_p9)
}
  0x3c   : > { %s3861_s30 = smov 64   ;;  %s3862_s19 = smov 4  }
  0x3d   : > { %2626 = dma.hbm_to_vmem [thread:$0]  (!%p3253_p6), %s3904_s6, 256, %s3242_s25, [#allocation10], %s3861_s30, %s3861_s30, %s3862_s19  }
  0x3e   : > { %s3906_s9 = sld [smem:[#allocation37_spill]] }
  0x44   : > { %s2797_s29 = scalar_lea.hbm %s3906_s9, 16 }
  0x45   : > { %p2798_p4 = scmp.ne.s32.totalorder %s3906_s9, %s2797_s29  ;;  %p2804_p12 = scmp.lt.u32.totalorder %s2797_s29, %s3906_s9 }
  0x47   : > { %p2800_p10 = pnand %p2798_p4, %p3267_p8 }
  0x49   : > { %p2801_p11 = pneg %p2800_p10 }
  0x4b   : > { %p2806_p13 = pnand %p2804_p12, %p2801_p11 }
  0x4d   : > { %2809 = shalt.err (!%p2806_p13)
}
  0x4e   : > { %s2810_s25 = scalar_lea.vmem %s3257_s28, 16  ;;  %s2817_s13 = scalar_lea.vmem %s3257_s28, 32 }
  0x4f   : > { %p2811_p0 = scmp.ne.s32.totalorder %s3257_s28, %s2810_s25  ;;  %p2818_p7 = scmp.lt.s32.totalorder %s3257_s28, %s3257_s28 }
  0x50   : > { %p2819_p9 = scmp.lt.s32.totalorder %s2817_s13, %s2810_s25 }
  0x51   : > { %p2813_p2 = pnand %p2811_p0, %p3267_p8 }
  0x52   : > { %p2820_p4 = por %p2819_p9, %p2818_p7 }
  0x53   : > { %p2814_p5 = pneg %p2813_p2 }
  0x55   : > { %p2821_p10 = pnand %p2820_p4, %p2814_p5 }
  0x57   : > { %2824 = shalt.err (!%p2821_p10)
}
  0x58   : > { %2632 = dma.hbm_to_vmem [thread:$0]  (!%p3253_p6), %s3906_s9, 16, %s3257_s28, [#allocation13]  }
  0x59   : > { %s2342_s18 = sadd.s32 4294967294, %s3081_s24   ;;  %s3317_s0 = sadd.s32 1, %s3081_s24  }
  0x5a   : > { %3907 = sst [smem:[#allocation26_spill]] %s3317_s0  ;;  %s46_s21 = ssub.s32 %s3081_s24, %s3317_s0 }
  0x5b   : > { %s49_s2 = sadd.s32 1, %s3077_s23  ;;  %p47_p11 = scmp.eq.s32.totalorder %s46_s21, 0 }
  0x5c   : > { %p56_p12 = scmp.ne.s32.totalorder %s3077_s23, %s3073_s22  ;;  %p57_p13 = scmp.eq.s32.totalorder %s3081_s24, 0 }
  0x5d   : > { %p62_p0 = scmp.ne.s32.totalorder %s3073_s22, %s3069_s1  ;;  %p500_p7 = scmp.eq.s32.totalorder %s3237_s3, 1 }
  0x5e   : > { %s3328_s27 = scalar_select %p47_p11, %s3077_s23, %s49_s2  }
  0x5f   : > { %p58_p2 = por %p57_p13, %p56_p12  ;;  %p3332_p5 = por %p3870_p1, %p62_p0 }
  0x60   : > { %3908 = sst [smem:[#allocation27_spill]] %s3328_s27  ;;  %p506_p9 = scmp.eq.s32.totalorder %s2342_s18, 1 }
  0x61   : > { %s3909_s29 = scalar_select %p3332_p5, 1, 0 }
  0x62   : > { %p2658_p4 = scmp.lt.s32.totalorder %s3081_s24, 2  ;;  %s3339_s28 = sand.u32 1, %s3077_s23  }
  0x63   : > { %p3341_p10 = por %p500_p7, %p56_p12  ;;  %p3345_p3 = por %p506_p9, %p62_p0 }
  0x64   : > { %s3868_s12 = sshll.u32 %s3339_s28, 3  ;;  %s3869_s17 = sshll.u32 %s3081_s24, 7 }
  0x65   : > { %s3910_s25 = scalar_select %p3341_p10, 1, 0 }
  0x66   : > { %s3912_s13 = scalar_select %p3345_p3, 1, 0 }
  0x67   : > { %3911 = sst [smem:[#allocation28_spill]] %s3910_s25  ;;  %p3351_p11 = pnand %p2658_p4, %p58_p2 }
  0x68   : > { %3913 = sst [smem:[#allocation29_spill]] %s3912_s13  ;;  %s636_s18 = sand.u32 1, %s3081_s24  }
  0x69   : > { %s3914_s21 = scalar_select %p3351_p11, 1, 0 }
  0x6a   : > { %s3915_s19 = sld [smem:[#allocation31_spill]]  ;;  %s640_s9 = scalar_lea.vmem [#allocation6], %s3868_s12 }
  0x6b   : > { %s647_s27 = sshll.u32 %s640_s9, 4  ;;  %s3087_s23 = smov [#allocation11]   ;;  %s3365_s27 = int_to_ptr.vmem [resolvable:$true] %s647_s27 }
  0x6c   : > { %s3367_s0 = sshll.u32 %s3087_s23, 4  ;;  %s3369_s13 = scalar_lea.sflag [#allocation7], %s636_s18  ;;  %s546_s0 = int_to_ptr.vmem [resolvable:$true] %s3367_s0 }
  0x6d   : > { %p3375_p13 = pneg %p3351_p11 }
  0x6f   : > { %s3916_s30 = scalar_select %p3375_p13, 1, 0 }
  0x70   : > { %s3361_s6 = scalar_lea.hbm %s3915_s19, %s3869_s17  ;;  %s2830_s12 = scalar_lea.hbm %s3915_s19, 256 }
  0x71   : > { %s2825_s1 = scalar_lea.hbm %s3361_s6, 128  ;;  %p2831_p7 = scmp.lt.u32.totalorder %s3361_s6, %s3915_s19 }
  0x72   : > { %p2826_p12 = scmp.ne.s32.totalorder %s3361_s6, %s2825_s1  ;;  %p2832_p9 = scmp.lt.u32.totalorder %s2830_s12, %s2825_s1 }
  0x73   : > { %p2834_p1 = scmp.lt.u32.totalorder %s2825_s1, %s3361_s6 }
  0x74   : > { %p2828_p0 = pnand %p3375_p13, %p2826_p12  ;;  %p2833_p4 = por %p2832_p9, %p2831_p7 }
  0x76   : > { %p2829_p2 = pneg %p2828_p0  ;;  %p2835_p3 = por %p2834_p1, %p2833_p4 }
  0x78   : > { %p2836_p10 = pnand %p2835_p3, %p2829_p2 }
  0x7a   : > { %2839 = shalt.err (!%p2836_p10)
}
  0x7b   : > { %s2840_s18 = scalar_lea.vmem %s3365_s27, 128  ;;  %s3088_s2 = smov [#allocation6]  }
  0x7c   : > { %p2841_p12 = scmp.ne.s32.totalorder %s3365_s27, %s2840_s18  ;;  %s2845_s9 = sshll.u32 %s3088_s2, 4  ;;  %s2846_s9 = int_to_ptr.vmem [resolvable:$false] %s2845_s9 }
  0x7d   : > { %s2847_s17 = scalar_lea.vmem %s2846_s9, 256  ;;  %p2848_p6 = scmp.lt.s32.totalorder %s3365_s27, %s2846_s9 }
  0x7e   : > { %p2843_p0 = pnand %p2841_p12, %p3375_p13  ;;  %p2849_p8 = scmp.lt.s32.totalorder %s2847_s17, %s2840_s18 }
  0x80   : > { %p2844_p5 = pneg %p2843_p0  ;;  %p2850_p7 = por %p2849_p8, %p2848_p6 }
  0x82   : > { %p2851_p9 = pnand %p2850_p7, %p2844_p5 }
  0x84   : > { %2854 = shalt.err (!%p2851_p9)
}
  0x85   : > { %2645 = dma.hbm_to_vmem [thread:$0]  (!%p3351_p11), %s3361_s6, 128, %s3365_s27, %s3369_s13  }
  0x86   : > { %s3917_s7 = sld [smem:[#allocation36_spill]]  ;;  %p3918_p3 = scmp.ne.s32.totalorder %s3905_s20, 0 }
  0x8c   : > { %s2855_s23 = scalar_lea.hbm %s3917_s7, 16 }
  0x8d   : > { %p2856_p1 = scmp.ne.s32.totalorder %s3917_s7, %s2855_s23  ;;  %p2862_p5 = scmp.lt.u32.totalorder %s2855_s23, %s3917_s7 }
  0x8f   : > { %p2858_p6 = pnand %p2856_p1, %p3918_p3 }
  0x91   : > { %p2859_p8 = pneg %p2858_p6 }
  0x93   : > { %p2864_p10 = pnand %p2862_p5, %p2859_p8 }
  0x95   : > { %2867 = shalt.err (!%p2864_p10)
}
  0x96   : > { %s2868_s17 = scalar_lea.vmem %s546_s0, 16  ;;  %s2875_s6 = scalar_lea.vmem %s546_s0, 32 }
  0x97   : > { %p2869_p2 = scmp.ne.s32.totalorder %s546_s0, %s2868_s17  ;;  %p2876_p0 = scmp.lt.s32.totalorder %s546_s0, %s546_s0 }
  0x98   : > { %p2877_p7 = scmp.lt.s32.totalorder %s2875_s6, %s2868_s17 }
  0x99   : > { %p2871_p4 = pnand %p2869_p2, %p3918_p3 }
  0x9a   : > { %p2878_p9 = por %p2877_p7, %p2876_p0 }
  0x9b   : > { %p2872_p12 = pneg %p2871_p4 }
  0x9d   : > { %p2879_p11 = pnand %p2878_p9, %p2872_p12 }
  0x9f   : > { %2882 = shalt.err (!%p2879_p11)
}
  0xa0   : > { %p3919_p1 = scmp.ne.s32.totalorder %s3903_s4, 0  ;;  %s3089_s1 = smov [#allocation14]  }
  0xa1   : > { %s569_s12 = sshll.u32 %s3089_s1, 4  ;;  %s3090_s23 = smov [#allocation15]   ;;  %s570_s12 = int_to_ptr.vmem [resolvable:$true] %s569_s12 }
  0xa2   : > { %2629 = dma.hbm_to_vmem [thread:$0]  (!%p3919_p1), %s3917_s7, 16, %s546_s0, [#allocation10]  }
  0xa3   : > { %s583_s2 = sshll.u32 %s3090_s23, 4  ;;  %s3920_s10 = sld [smem:[#allocation38_spill]]  ;;  %s584_s2 = int_to_ptr.vmem [resolvable:$true] %s583_s2 }
  0xa9   : > { %s2883_s25 = scalar_lea.hbm %s3920_s10, 256 }
  0xaa   : > { %p2884_p11 = scmp.ne.s32.totalorder %s3920_s10, %s2883_s25  ;;  %p2890_p5 = scmp.lt.u32.totalorder %s2883_s25, %s3920_s10 }
  0xac   : > { %p2886_p6 = pnand %p2884_p11, %p3918_p3 }
  0xae   : > { %p2887_p8 = pneg %p2886_p6 }
  0xb0   : > { %p2892_p10 = pnand %p2890_p5, %p2887_p8 }
  0xb2   : > { %2895 = shalt.err (!%p2892_p10)
}
  0xb3   : > { %s2896_s0 = scalar_lea.vmem %s570_s12, 256  ;;  %p2904_p0 = scmp.lt.s32.totalorder %s570_s12, %s570_s12 }
  0xb4   : > { %p2897_p2 = scmp.ne.s32.totalorder %s570_s12, %s2896_s0  ;;  %p2905_p7 = scmp.lt.s32.totalorder %s2896_s0, %s2896_s0 }
  0xb6   : > { %p2899_p4 = pnand %p2897_p2, %p3918_p3  ;;  %p2906_p9 = por %p2905_p7, %p2904_p0 }
  0xb8   : > { %p2900_p12 = pneg %p2899_p4 }
  0xba   : > { %p2907_p13 = pnand %p2906_p9, %p2900_p12 }
  0xbc   : > { %2910 = shalt.err (!%p2907_p13)
}
  0xbd   : > { %s3921_s27 = smov 4   ;;  %s3922_s1 = smov 64  }
  0xbe   : > { %2635 = dma.hbm_to_vmem [thread:$0]  (!%p3919_p1), %s3920_s10, 256, %s570_s12, [#allocation13], %s3922_s1, %s3922_s1, %s3921_s27  }
  0xbf   : > { %s2911_s9 = scalar_lea.hbm %s3844_s11, 16 }
  0xc0   : > { %p2912_p11 = scmp.ne.s32.totalorder %s3844_s11, %s2911_s9  ;;  %p2918_p8 = scmp.lt.u32.totalorder %s2911_s9, %s3844_s11 }
  0xc2   : > { %p2914_p13 = pnand %p2912_p11, %p3918_p3 }
  0xc4   : > { %p2915_p6 = pneg %p2914_p13 }
  0xc6   : > { %p2920_p5 = pnand %p2918_p8, %p2915_p6 }
  0xc8   : > { %2923 = shalt.err (!%p2920_p5)
}
  0xc9   : > { %s2924_s16 = scalar_lea.vmem %s584_s2, 16  ;;  %s2931_s12 = scalar_lea.vmem %s584_s2, 32 }
  0xca   : > { %p2925_p10 = scmp.ne.s32.totalorder %s584_s2, %s2924_s16  ;;  %p2932_p12 = scmp.lt.s32.totalorder %s584_s2, %s584_s2 }
  0xcb   : > { %p2933_p0 = scmp.lt.s32.totalorder %s2931_s12, %s2924_s16 }
  0xcc   : > { %p2927_p2 = pnand %p2925_p10, %p3918_p3 }
  0xcd   : > { %p2934_p7 = por %p2933_p0, %p2932_p12 }
  0xce   : > { %p2928_p4 = pneg %p2927_p2 }
  0xd0   : > { %p2935_p9 = pnand %p2934_p7, %p2928_p4 }
  0xd2   : > { %2938 = shalt.err (!%p2935_p9)
}
  0xd3   : > { %2638 = dma.hbm_to_vmem [thread:$0]  (!%p3919_p1), %s3844_s11, 16, %s584_s2, [#allocation16]  }
  0xd4   : > { %s3923_s20 = sshll.u32 %s3081_s24, 7  ;;  %s3924_s18 = sld [smem:[#allocation30_spill]] }
  0xd5   : > { %s3925_s17 = sshll.u32 %s3339_s28, 3  ;;  %s2354_s19 = sshll.u32 %s3339_s28, 1 }
  0xd6   : > { %s622_s4 = scalar_lea.vmem [#allocation3], %s3925_s17  ;;  %s619_s0 = scalar_lea.sflag [#allocation4], %s3339_s28 }
  0xd7   : > { %s629_s6 = sshll.u32 %s622_s4, 4  ;;  %p3926_p11 = scmp.ne.s32.totalorder %s3916_s30, 0  ;;  %s630_s6 = int_to_ptr.vmem [resolvable:$true] %s629_s6 }
  0xda   : > { %s3462_s9 = scalar_lea.hbm %s3924_s18, %s3923_s20  ;;  %s2944_s27 = scalar_lea.hbm %s3924_s18, 256 }
  0xdb   : > { %s2939_s16 = scalar_lea.hbm %s3462_s9, 128  ;;  %p2945_p6 = scmp.lt.u32.totalorder %s3462_s9, %s3924_s18 }
  0xdc   : > { %p2940_p3 = scmp.ne.s32.totalorder %s3462_s9, %s2939_s16  ;;  %p2946_p8 = scmp.lt.u32.totalorder %s2944_s27, %s2939_s16 }
  0xdd   : > { %p2948_p10 = scmp.lt.u32.totalorder %s2939_s16, %s3462_s9 }
  0xde   : > { %p2942_p1 = pnand %p2940_p3, %p3926_p11  ;;  %p2947_p5 = por %p2946_p8, %p2945_p6 }
  0xe0   : > { %p2943_p13 = pneg %p2942_p1  ;;  %p2949_p2 = por %p2948_p10, %p2947_p5 }
  0xe2   : > { %p2950_p4 = pnand %p2949_p2, %p2943_p13 }
  0xe4   : > { %2953 = shalt.err (!%p2950_p4)
}
  0xe5   : > { %s2954_s25 = scalar_lea.vmem %s630_s6, 128  ;;  %s3091_s23 = smov [#allocation3]  }
  0xe6   : > { %p2955_p12 = scmp.ne.s32.totalorder %s630_s6, %s2954_s25  ;;  %s2959_s17 = sshll.u32 %s3091_s23, 4  ;;  %s2960_s17 = int_to_ptr.vmem [resolvable:$false] %s2959_s17 }
  0xe7   : > { %s2961_s4 = scalar_lea.vmem %s2960_s17, 256  ;;  %p2962_p9 = scmp.lt.s32.totalorder %s630_s6, %s2960_s17 }
  0xe8   : > { %p2957_p0 = pnand %p2955_p12, %p3926_p11  ;;  %p2963_p3 = scmp.lt.s32.totalorder %s2961_s4, %s2954_s25 }
  0xea   : > { %p2958_p7 = pneg %p2957_p0  ;;  %p2964_p1 = por %p2963_p3, %p2962_p9 }
  0xec   : > { %p2965_p6 = pnand %p2964_p1, %p2958_p7 }
  0xee   : > { %2968 = shalt.err (!%p2965_p6)
}
  0xef   : > { %p3927_p8 = scmp.ne.s32.totalorder %s3914_s21, 0  ;;  %s2355_s16 = sshll.u32 %s3081_s24, 5 }
  0xf0   : > { %s658_s2 = scalar_lea.vmem [#allocation8], %s2354_s19  ;;  %s3928_s20 = sld [smem:[#allocation32_spill]] }
  0xf1   : > { %2642 = dma.hbm_to_vmem [thread:$0]  (!%p3927_p8), %s3462_s9, 128, %s630_s6, %s619_s0  }
  0xf2   : > { %s665_s12 = sshll.u32 %s658_s2, 4  ;;  %s666_s12 = int_to_ptr.vmem [resolvable:$true] %s665_s12 }
  0xf6   : > { %s663_s23 = scalar_lea.hbm %s3928_s20, %s2355_s16  ;;  %s2974_s7 = scalar_lea.hbm %s3928_s20, 64 }
  0xf7   : > { %s2969_s25 = scalar_lea.hbm %s663_s23, 32  ;;  %p2975_p2 = scmp.lt.u32.totalorder %s663_s23, %s3928_s20 }
  0xf8   : > { %p2970_p13 = scmp.ne.s32.totalorder %s663_s23, %s2969_s25  ;;  %p2976_p4 = scmp.lt.u32.totalorder %s2974_s7, %s2969_s25 }
  0xf9   : > { %p2978_p0 = scmp.lt.u32.totalorder %s2969_s25, %s663_s23 }
  0xfa   : > { %p2972_p5 = pnand %p2970_p13, %p3926_p11  ;;  %p2977_p12 = por %p2976_p4, %p2975_p2 }
  0xfc   : > { %p2973_p10 = pneg %p2972_p5  ;;  %p2979_p7 = por %p2978_p0, %p2977_p12 }
  0xfe   : > { %p2980_p9 = pnand %p2979_p7, %p2973_p10 }
 0x100   : > { %2983 = shalt.err (!%p2980_p9)
}
 0x101   : > { %s2984_s28 = scalar_lea.vmem %s666_s12, 32  ;;  %s3092_s6 = smov [#allocation8]  }
 0x102   : > { %p2985_p3 = scmp.ne.s32.totalorder %s666_s12, %s2984_s28  ;;  %s2989_s19 = sshll.u32 %s3092_s6, 4  ;;  %s2990_s19 = int_to_ptr.vmem [resolvable:$false] %s2989_s19 }
 0x103   : > { %s2991_s0 = scalar_lea.vmem %s2990_s19, 64  ;;  %p2992_p13 = scmp.lt.s32.totalorder %s666_s12, %s2990_s19 }
 0x104   : > { %p2987_p1 = pnand %p2985_p3, %p3926_p11  ;;  %p2993_p5 = scmp.lt.s32.totalorder %s2991_s0, %s2984_s28 }
 0x106   : > { %p2988_p6 = pneg %p2987_p1  ;;  %p2994_p8 = por %p2993_p5, %p2992_p13 }
 0x108   : > { %p2995_p2 = pnand %p2994_p8, %p2988_p6 }
 0x10a   : > { %2998 = shalt.err (!%p2995_p2)
}
 0x10b   : > { %p3929_p4 = scmp.ne.s32.totalorder %s3914_s21, 0  ;;  %p3930_p10 = scmp.ne.s32.totalorder %s3902_s26, 0 }
 0x10c   : > { %s3507_s7 = sand.u32 (!%p3930_p10), 1, %s3073_s22   ;;  %p3931_p11 = scmp.ne.s32.totalorder (!%p3930_p10), %s3909_s29, 0 }
 0x10d   : > { %2648 = dma.hbm_to_vmem [thread:$0]  (!%p3929_p4), %s663_s23, 32, %s666_s12, %s3369_s13  }
 0x10e   : > { %680 = sbr.rel (%p3930_p10) target bundleno = 4199 (0x1067), region = 100  ;;  %s3510_s10 = sshll.u32 (!%p3930_p10), %s3507_s7, 3 }
 0x10f   : > { %s683_s30 = scalar_lea.sflag (!%p3930_p10), [#allocation4], %s3507_s7  ;;  %s686_s16 = scalar_lea.vmem (!%p3930_p10), [#allocation3], %s3510_s10 }
 0x115   : > { %3044 = dma.done.wait (%p3931_p11), %s683_s30, 128  }
 0x116   : > { %3046 = vsyncadd (%p3931_p11), %s683_s30, 4294967168  ;;  %s691_s26 = sand.u32 1, %s3237_s3   ;;  %s695_s21 = scalar_lea.vmem [#allocation6], %s3510_s10 }
 0x117   : > { %s692_s13 = scalar_lea.sflag [#allocation7], %s691_s26 }
 0x118   : > { %3048 = dma.done.wait (%p3931_p11), %s692_s13, 160  }
 0x119   : > { %3050 = vsyncadd (%p3931_p11), %s692_s13, 4294967136  ;;  %s2359_s2 = sshll.u32 %s3507_s7, 1  ;;  %p3932_p8 = scmp.eq.s32.totalorder %s3237_s3, 0 }
 0x11a   : > { %s3525_s12 = scalar_lea.vmem [#allocation8], %s2359_s2 }
 0x11b   : > { %3052 = dma.done.wait (%p3932_p8), [#allocation10], 272   ;;  %p3933_p12 = pmov %p3932_p8 }
 0x11c   : > { %p3934_p0 = pmov %p3932_p8 }
 0x11d   : > { %3054 = vsyncadd (%p3933_p12), [#allocation10], 4294967024 }
 0x11e   : > { %3056 = dma.done.wait (%p3934_p0), [#allocation13], 272   ;;  %p3935_p7 = pmov %p3934_p0 }
 0x11f   : > { %p3936_p9 = pmov %p3934_p0 }
 0x120   : > { %3058 = vsyncadd (%p3935_p7), [#allocation13], 4294967024 }
 0x121   : > { %3060 = dma.done.wait (%p3936_p9), [#allocation16], 16   ;;  %p3937_p3 = pmov %p3934_p0 }
 0x122   : > { %vm809_vm0 = vcmask 261120   ;;  %v3539_v0 = vld [vmem:[%s686_s16] sm:$0xff]  ;;  %s3938_s1 = sld [smem:[#allocation34_spill]]  ;;  %v3093_v8 = vmov 0.0   ;;  %vm3094_vm1 = vmmov 0   ;;  %s3095_s30 = smov 120  }
 0x123   : > { %3062 = vsyncadd (%p3937_p3), [#allocation16], 4294967280  ;;  %v810_v1 = vsel %vm809_vm0, %v3539_v0, 0.0  ;;  %2459 = vmatprep.subr.bf16.mxu0 %v3093_v8  ;;  %2463 = vmatprep.mubr.msk.bf16.mxu0 %vm3094_vm1, %v3093_v8  ;;  %v2366_v14 = vld [vmem:[%s3847_s14] ss:$0 sm:$0xff]  ;;  %s3096_s16 = smov 96  }
 0x124   : > { %811 = vadd.xlane.f32.xlu0 %v810_v1  ;;  %2467 = vmatprep.subr.bf16.mxu1 %v3093_v8  ;;  %v2367_v16 = vld [vmem:[%s3848_s15] ss:$0 sm:$0xff]  ;;  %s3097_s26 = smov 88   ;;  %s3098_s13 = smov 80   ;;  %vm909_vm2 = vcmask 64512   ;;  %vm973_vm4 = vcmask 1043456  }
 0x125   : > { %2469 = vmatprep.mubr.msk.bf16.mxu1 %vm3094_vm1, %v3093_v8  ;;  %v2368_v20 = vld [vmem:[%s3838_s5] ss:$0 sm:$0xff]  ;;  %s3099_s2 = smov 112   ;;  %s3100_s29 = smov 72   ;;  %v799_v38 = vld [vmem:[%s3525_s12] sm:$0x3] }
 0x126   : > { %s3101_s27 = smov 104   ;;  %v800_v39 = vunpack.c.0.s8 %v799_v38  ;;  %v3102_v40 = vmov -1e+30   ;;  %s3103_s12 = smov 64   ;;  %vm1132_vm5 = vcmask 130112   ;;  %vm1248_vm6 = vcmask 195712  }
 0x127   : > { %s3105_s23 = smov 48   ;;  %s3106_s17 = smov 40   ;;  %vm1364_vm7 = vcmask 261312  }
 0x128   : > { %s3939_s25 = smov %s3938_s1  ;;  %v2721_v7 = vld [vmem:[%s3938_s1] sm:$0xff]   ;;  %vm801_vm3 = vcmp.ne.s32.totalorder %v800_v39, 0  ;;  %s3104_s1 = smov 56  }
 0x129   : > { %2460 = vmatpush3.bf16.msra.mxu0 %v2721_v7  ;;  %v2722_v9 = vld [vmem:[%s3939_s25 + $0x8] sm:$0xff]   ;;  %v802_v41 = vsel %vm801_vm3, 0.0, %v3102_v40  ;;  %s3107_s4 = smov 8   ;;  %s3108_s9 = smov 16  }
 0x12a   : > { %2461 = vmatprep.subr.bf16.mxu0 %v3093_v8  ;;  %s3109_s28 = smov 24   ;;  %s3941_s19 = sld [smem:[#allocation42_spill]] }
 0x12b   : > { %p794_p1 = scmp.lt.s32.totalorder %s3237_s3, 1  ;;  %s3942_s0 = sld [smem:[#allocation33_spill]] }
 0x12c   : > { %s3946_s6 = sld [smem:[#allocation43_spill]] }
 0x12d   : > { %2462 = vmatpush3.bf16.msra.mxu0 %v2722_v9 }
 0x12e   : > { %2473 = vmatprep.subr.bf16.mxu0 %v3093_v8 }
 0x1b1   : > { %v812_v2 = vpop.xlane.xlu0 %811 }
 0x1b2   : > { %v814_v3 = vmul.f32 0.03125, %v812_v2 }
 0x1b4   : > { %v815_v4 = vsub.f32 %v3539_v0, %v814_v3 }
 0x1b6   : > { %v816_v5 = vmul.f32 %v815_v4, %v815_v4 }
 0x1b8   : > { %v817_v6 = vsel %vm809_vm0, %v816_v5, 0.0 }
 0x1b9   : > { %818 = vadd.xlane.f32.xlu0 %v817_v6 }
 0x246   : > { %v819_v10 = vpop.xlane.xlu0 %818 }
 0x247   : > { %v820_v11 = vmul.f32 0.03125, %v819_v10 }
 0x249   : > { %v821_v12 = vadd.f32 1e-05, %v820_v11 }
 0x24b   : > { %2731 = vrsqrt.f32 %v821_v12 }
 0x255   : > { %v2732_v13 = vpop.eup %2731 }
 0x256   : > { %v823_v15 = vmul.f32 %v2732_v13, %v815_v4 }
 0x258   : > { %v830_v17 = vmul.f32 %v2366_v14, %v823_v15 }
 0x25a   : > { %v837_v18 = vadd.f32 %v2367_v16, %v830_v17 }
 0x25c   : > { %v838_v19 = vpack.c.bf16 %v837_v18, %v837_v18 }
 0x25e   : > { %2464 = vmatmul.mubr.msk.bf16.vlgmr.msra.gmra.mrb[0].mxu0 %vm809_vm0, %v838_v19 }
 0x25f   : > { %2475 = vmatprep.mubr.msk.bf16.mxu0 %vm3094_vm1, %v3093_v8 }
 0x331   : > { %v899_v21 = vpop.f32.mrb[0].mxu0 }
 0x332   : > { %v900_v22 = vadd.f32 %v2368_v20, %v899_v21  ;;  %v2465_v23 = vpop.f32.mrb[1].mxu0 }
 0x333   : > { %v902_v24 = vpop.f32.mrb[2].mxu0 }
 0x334   : > { %v3571_v25 = vpack.c.bf16 %v900_v22, %v900_v22  ;;  %v2466_v26 = vpop.f32.mrb[3].mxu0 }
 0x336   : > { %1018 = vrot.lane.b32.xlu0 %v3571_v25, %s3095_s30  ;;  %907 = vrot.lane.b32.xlu1 %v3571_v25, %s3096_s16 }
 0x33a   : > { %1020 = vrot.lane.b32.xlu1 %v3571_v25, %s3097_s26 }
 0x33e   : > { %1136 = vrot.lane.b32.xlu1 %v3571_v25, %s3098_s13 }
 0x342   : > { %1134 = vrot.lane.b32.xlu1 %v3571_v25, %s3099_s2 }
 0x346   : > { %1252 = vrot.lane.b32.xlu1 %v3571_v25, %s3100_s29 }
 0x34a   : > { %1250 = vrot.lane.b32.xlu1 %v3571_v25, %s3101_s27 }
 0x3a8   : > { %v908_v27 = vpop.permute.xlu1 %907  ;;  %v1019_v32 = vpop.permute.xlu0 %1018 }
 0x3a9   : > { %v914_v28 = vsel %vm909_vm2, %v908_v27, 0 }
 0x3aa   : > { %2468 = vmatpush3.bf16.xpose.msra.mxu1 %v914_v28 }
 0x3ab   : > { %2479 = vmatprep.subr.bf16.mxu1 %v3093_v8 }
 0x3ac   : > { %v1021_v29 = vpop.permute.xlu1 %1020 }
 0x3ad   : > { %v1026_v30 = vsel %vm909_vm2, %v1021_v29, 0 }
 0x3b0   : > { %v1137_v31 = vpop.permute.xlu1 %1136 }
 0x3b1   : > { %2470 = vmatmul.mubr.msk.bf16.vlgmr.msra.gmra.mrb[0].mxu1 %vm909_vm2, %v3571_v25  ;;  %v1142_v34 = vsel %vm909_vm2, %v1137_v31, 0 }
 0x3b2   : > { %2480 = vmatpush3.bf16.xpose.msra.mxu1 %v1026_v30  ;;  %2481 = vmatprep.mubr.msk.bf16.mxu1 %vm3094_vm1, %v3093_v8 }
 0x3b3   : > { %2491 = vmatprep.subr.bf16.mxu1 %v3093_v8 }
 0x3b4   : > { %v1135_v33 = vpop.permute.xlu1 %1134 }
 0x3b8   : > { %v1253_v35 = vpop.permute.xlu1 %1252 }
 0x3b9   : > { %2482 = vmatmul.mubr.msk.bf16.vlgmr.msra.gmra.mrb[4].mxu1 %vm909_vm2, %v1019_v32  ;;  %v1258_v36 = vsel %vm909_vm2, %v1253_v35, 0 }
 0x3ba   : > { %2492 = vmatpush3.bf16.xpose.msra.mxu1 %v1142_v34  ;;  %2493 = vmatprep.mubr.msk.bf16.mxu1 %vm3094_vm1, %v3093_v8 }
 0x3bb   : > { %2503 = vmatprep.subr.bf16.mxu1 %v3093_v8 }
 0x3bc   : > { %v1251_v37 = vpop.permute.xlu1 %1250 }
 0x3c1   : > { %2494 = vmatmul.mubr.msk.bf16.vlgmr.msra.gmra.mrb[8].mxu1 %vm909_vm2, %v1135_v33 }
 0x3c2   : > { %2504 = vmatpush3.bf16.xpose.msra.mxu1 %v1258_v36  ;;  %2505 = vmatprep.mubr.msk.bf16.mxu1 %vm3094_vm1, %v3093_v8 }
 0x3c3   : > { %2515 = vmatprep.subr.bf16.mxu1 %v3093_v8 }
 0x3c9   : > { %2506 = vmatmul.mubr.msk.bf16.vlgmr.msra.gmra.mrb[12].mxu1 %vm909_vm2, %v1251_v37 }
 0x3ca   : > { %2519 = vmatprep.mubr.msk.bf16.mxu1 %vm3094_vm1, %v3093_v8 }
 0x484   : > { %v950_v42 = vpop.f32.mrb[0].mxu1 }
 0x485   : > { %v951_v43 = vadd.f32 %v950_v42, %v802_v41  ;;  %v2471_v44 = vpop.f32.mrb[1].mxu1 }
 0x486   : > { %v953_v45 = vpop.f32.mrb[2].mxu1 }
 0x487   : > { %v2472_v46 = vpop.f32.mrb[3].mxu1  ;;  %v956_v47 = vsel %vm909_vm2, %v951_v43, -inf }
 0x488   : > { %957 = vmax.xlane.f32.xlu1 %v956_v47 }
 0x48c   : > { %v1062_v48 = vpop.f32.mrb[4].mxu1 }
 0x48d   : > { %v1063_v49 = vadd.f32 %v1062_v48, %v802_v41  ;;  %v2483_v50 = vpop.f32.mrb[5].mxu1 }
 0x48e   : > { %v1065_v51 = vpop.f32.mrb[6].mxu1 }
 0x48f   : > { %v2484_v52 = vpop.f32.mrb[7].mxu1  ;;  %v1068_v53 = vsel %vm909_vm2, %v1063_v49, -inf }
 0x490   : > { %1069 = vmax.xlane.f32.xlu0 %v1068_v53 }
 0x494   : > { %v1178_v54 = vpop.f32.mrb[8].mxu1 }
 0x495   : > { %v1179_v55 = vadd.f32 %v1178_v54, %v802_v41  ;;  %v2495_v56 = vpop.f32.mrb[9].mxu1 }
 0x496   : > { %v1181_v57 = vpop.f32.mrb[10].mxu1 }
 0x497   : > { %v2496_v58 = vpop.f32.mrb[11].mxu1  ;;  %v1184_v59 = vsel %vm909_vm2, %v1179_v55, -inf  ;;  %v2723_v57 = vld [vmem:[#allocation9] sm:$0xff]  }
 0x498   : > { %1185 = vmax.xlane.f32.xlu1 %v1184_v59  ;;  %2516 = vmatpush3.bf16.msra.mxu1 %v2723_v57  ;;  %v2724_v58 = vld [vmem:[#allocation9 + $0x8] sm:$0xff]  }
 0x499   : > { %2517 = vmatprep.subr.bf16.mxu1 %v3093_v8 }
 0x49c   : > { %v1294_v60 = vpop.f32.mrb[12].mxu1  ;;  %2518 = vmatpush3.bf16.msra.mxu1 %v2724_v58 }
 0x49d   : > { %v1295_v61 = vadd.f32 %v1294_v60, %v802_v41  ;;  %v2507_v62 = vpop.f32.mrb[13].mxu1  ;;  %2531 = vmatprep.subr.bf16.mxu1 %v3093_v8 }
 0x49e   : > { %v1297_v63 = vpop.f32.mrb[14].mxu1 }
 0x49f   : > { %v2508_v1 = vpop.f32.mrb[15].mxu1  ;;  %v1300_v2 = vsel %vm909_vm2, %v1295_v61, -inf }
 0x4a0   : > { %1301 = vmax.xlane.f32.xlu0 %v1300_v2 }
 0x515   : > { %v958_v3 = vpop.xlane.xlu1 %957 }
 0x516   : > { %v959_v4 = vsub.f32 %v951_v43, %v958_v3 }
 0x518   : > { %v960_v5 = vmul.f32 1.442695, %v959_v4 }
 0x51a   : > { %2733 = vpow2.f32 %v960_v5 }
 0x51d   : > { %v1070_v6 = vpop.xlane.xlu0 %1069 }
 0x51e   : > { %v1071_v7 = vsub.f32 %v1063_v49, %v1070_v6 }
 0x520   : > { %v1072_v9 = vmul.f32 1.442695, %v1071_v7 }
 0x522   : > { %2735 = vpow2.f32 %v1072_v9 }
 0x524   : > { %v2734_v10 = vpop.eup %2733 }
 0x525   : > { %v962_v11 = vsel %vm909_vm2, %v2734_v10, 0.0  ;;  %v1186_v19 = vpop.xlane.xlu1 %1185 }
 0x526   : > { %963 = vadd.xlane.f32.xlu1 %v962_v11  ;;  %v1187_v20 = vsub.f32 %v1179_v55, %v1186_v19 }
 0x528   : > { %v1188_v21 = vmul.f32 1.442695, %v1187_v20 }
 0x52c   : > { %v2736_v12 = vpop.eup %2735 }
 0x52d   : > { %v1302_v13 = vpop.xlane.xlu0 %1301  ;;  %v1074_v14 = vsel %vm909_vm2, %v2736_v12, 0.0 }
 0x52e   : > { %v1303_v15 = vsub.f32 %v1295_v61, %v1302_v13  ;;  %1075 = vadd.xlane.f32.xlu0 %v1074_v14 }
 0x530   : > { %v1304_v16 = vmul.f32 1.442695, %v1303_v15 }
 0x532   : > { %2737 = vpow2.f32 %v1304_v16 }
 0x533   : > { %2739 = vpow2.f32 %v1188_v21 }
 0x537   : > { %968 = vrot.lane.b32.xlu1 %v3571_v25, %s3103_s12 }
 0x53c   : > { %v2738_v17 = vpop.eup %2737 }
 0x53d   : > { %v1306_v18 = vsel %vm909_vm2, %v2738_v17, 0.0  ;;  %v2740_v22 = vpop.eup %2739 }
 0x53e   : > { %1307 = vadd.xlane.f32.xlu0 %v1306_v18  ;;  %v1190_v23 = vsel %vm909_vm2, %v2740_v22, 0.0 }
 0x554   : > { %1080 = vrot.lane.b32.xlu0 %v3571_v25, %s3104_s1  ;;  %s3944_s1 = sld [smem:[#allocation40_spill]] }
 0x55b   : > { %1191 = vadd.xlane.f32.xlu1 %v1190_v23  ;;  %v2725_v23 = vld [vmem:[#allocation14] sm:$0xff]  }
 0x56c   : > { %1196 = vrot.lane.b32.xlu1 %v3571_v25, %s3105_s23  ;;  %s3940_s23 = sld [smem:[#allocation41_spill]] }
 0x570   : > { %1312 = vrot.lane.b32.xlu1 %v3571_v25, %s3106_s17 }
 0x5b3   : > { %v964_v24 = vpop.xlane.xlu1 %963 }
 0x5b4   : > { %2741 = vrcp.f32 %v964_v24  ;;  %v2726_v24 = vld [vmem:[#allocation14 + $0x8] sm:$0xff]  }
 0x5b7   : > { %v969_v26 = vpop.permute.xlu1 %968 }
 0x5b8   : > { %v975_v27 = vsel %vm973_vm4, %v969_v26, 0 }
 0x5b9   : > { %2474 = vmatpush3.bf16.msra.mxu0 %v975_v27  ;;  %v2727_v27 = vld [vmem:[%s3841_s8] sm:$0xff]  }
 0x5ba   : > { %2485 = vmatprep.subr.bf16.mxu0 %v3093_v8 }
 0x5bb   : > { %v1076_v29 = vpop.xlane.xlu0 %1075 }
 0x5bc   : > { %2743 = vrcp.f32 %v1076_v29 }
 0x5be   : > { %v2742_v28 = vpop.eup %2741 }
 0x5bf   : > { %v966_v30 = vmul.f32 %v2742_v28, %v2734_v10  ;;  %v2380_v10 = vld [vmem:[#allocation11] ss:$0 sm:$0xff]  ;;  %v2728_v28 = vld [vmem:[%s3841_s8 + $0x8] sm:$0xff]  }
 0x5c1   : > { %v967_v31 = vpack.c.bf16 %v966_v30, %v966_v30 }
 0x5c3   : > { %2476 = vmatmul.mubr.msk.bf16.vlgmr.msra.gmra.mrb[4].mxu0 %vm909_vm2, %v967_v31 }
 0x5c4   : > { %2487 = vmatprep.mubr.msk.bf16.mxu0 %vm3094_vm1, %v3093_v8 }
 0x5c6   : > { %v2744_v25 = vpop.eup %2743 }
 0x5c7   : > { %v1078_v33 = vmul.f32 %v2744_v25, %v2736_v12 }
 0x5c9   : > { %v1079_v36 = vpack.c.bf16 %v1078_v33, %v1078_v33 }
 0x5cb   : > { %v1308_v32 = vpop.xlane.xlu0 %1307 }
 0x5cf   : > { %v1081_v34 = vpop.permute.xlu0 %1080 }
 0x5d0   : > { %v1086_v35 = vsel %vm973_vm4, %v1081_v34, 0  ;;  %v2385_v34 = vld [vmem:[%s3941_s19] ss:$0 sm:$0xff] }
 0x5d1   : > { %2486 = vmatpush3.bf16.msra.mxu0 %v1086_v35 }
 0x5d2   : > { %2497 = vmatprep.subr.bf16.mxu0 %v3093_v8 }
 0x5d4   : > { %2488 = vmatmul.mubr.msk.bf16.vlgmr.msra.gmra.mrb[8].mxu0 %vm909_vm2, %v1079_v36 }
 0x5d5   : > { %2499 = vmatprep.mubr.msk.bf16.mxu0 %vm3094_vm1, %v3093_v8 }
 0x5e8   : > { %v1192_v37 = vpop.xlane.xlu1 %1191 }
 0x5e9   : > { %2745 = vrcp.f32 %v1192_v37 }
 0x5ea   : > { %2747 = vrcp.f32 %v1308_v32  ;;  %v2384_v32 = vld [vmem:[%s3940_s23] ss:$0 sm:$0xff] }
 0x5ec   : > { %v1197_v38 = vpop.permute.xlu1 %1196 }
 0x5ed   : > { %v1202_v39 = vsel %vm973_vm4, %v1197_v38, 0  ;;  %v2390_v38 = vld [vmem:[#allocation15] ss:$0 sm:$0xff] }
 0x5ee   : > { %2498 = vmatpush3.bf16.msra.mxu0 %v1202_v39 }
 0x5ef   : > { %2509 = vmatprep.subr.bf16.mxu0 %v3093_v8 }
 0x5f0   : > { %v1313_v43 = vpop.permute.xlu1 %1312 }
 0x5f1   : > { %v1318_v46 = vsel %vm973_vm4, %v1313_v43, 0 }
 0x5f3   : > { %v2746_v41 = vpop.eup %2745 }
 0x5f4   : > { %v1194_v42 = vmul.f32 %v2746_v41, %v2740_v22  ;;  %v2748_v45 = vpop.eup %2747 }
 0x5f5   : > { %v1310_v47 = vmul.f32 %v2748_v45, %v2738_v17 }
 0x5f6   : > { %v1195_v44 = vpack.c.bf16 %v1194_v42, %v1194_v42 }
 0x5f7   : > { %v1311_v48 = vpack.c.bf16 %v1310_v47, %v1310_v47  ;;  %v2386_v47 = vld [vmem:[#allocation12] ss:$0 sm:$0xff] }
 0x5f8   : > { %2500 = vmatmul.mubr.msk.bf16.vlgmr.msra.gmra.mrb[12].mxu0 %vm909_vm2, %v1195_v44 }
 0x5f9   : > { %2510 = vmatpush3.bf16.msra.mxu0 %v1318_v46  ;;  %2511 = vmatprep.mubr.msk.bf16.mxu0 %vm3094_vm1, %v3093_v8 }
 0x5fa   : > { %2523 = vmatprep.subr.bf16.mxu0 %v3093_v8 }
 0x600   : > { %2512 = vmatmul.mubr.msk.bf16.vlgmr.msra.gmra.mrb[16].mxu0 %vm909_vm2, %v1311_v48 }
 0x601   : > { %2527 = vmatprep.mubr.msk.bf16.mxu0 %vm3094_vm1, %v3093_v8  ;;  %2524 = vmatpush3.bf16.msra.mxu0 %v2727_v27 }
 0x602   : > { %2525 = vmatprep.subr.bf16.mxu0 %v3093_v8 }
 0x605   : > { %2526 = vmatpush3.bf16.msra.mxu0 %v2728_v28 }
 0x606   : > { %2539 = vmatprep.subr.bf16.mxu0 %v3093_v8 }
 0x696   : > { %v1011_v49 = vpop.f32.mrb[4].mxu0 }
 0x697   : > { %1017 = vst.msk [vmem:[#allocation2] sm:$0xff] %vm909_vm2, %v1011_v49  ;;  %v2477_v50 = vpop.f32.mrb[5].mxu0 }
 0x698   : > { %v1014_v51 = vpop.f32.mrb[6].mxu0 }
 0x699   : > { %v2478_v52 = vpop.f32.mrb[7].mxu0 }
 0x6a7   : > { %v1122_v53 = vpop.f32.mrb[8].mxu0 }
 0x6a8   : > { %1129 = vrot.lane.b32.xlu0 %v1122_v53, %s3107_s4  ;;  %v2489_v54 = vpop.f32.mrb[9].mxu0 }
 0x6a9   : > { %v1125_v55 = vpop.f32.mrb[10].mxu0 }
 0x6aa   : > { %v2490_v56 = vpop.f32.mrb[11].mxu0 }
 0x6cb   : > { %v1238_v59 = vpop.f32.mrb[12].mxu0 }
 0x6cc   : > { %1245 = vrot.lane.b32.xlu1 %v1238_v59, %s3108_s9  ;;  %v2501_v60 = vpop.f32.mrb[13].mxu0 }
 0x6cd   : > { %v1241_v61 = vpop.f32.mrb[14].mxu0 }
 0x6ce   : > { %v2502_v62 = vpop.f32.mrb[15].mxu0 }
 0x6d3   : > { %v1354_v63 = vpop.f32.mrb[16].mxu0 }
 0x6d4   : > { %1361 = vrot.lane.b32.xlu0 %v1354_v63, %s3109_s28  ;;  %v2513_v1 = vpop.f32.mrb[17].mxu0 }
 0x6d5   : > { %v1357_v2 = vpop.f32.mrb[18].mxu0  ;;  %v1601_v1 = vlaneseq }
 0x6d6   : > { %v2514_v3 = vpop.f32.mrb[19].mxu0 }
 0x6d7   : > { %v1602_v3 = vshrl.u32 %v1601_v1, 7 }
 0x71a   : > { %v1130_v4 = vpop.permute.xlu0 %1129 }
 0x71b   : > { %1133 = vst.msk [vmem:[#allocation2] sm:$0xff] %vm1132_vm5, %v1130_v4  ;;  %v1603_v4 = vsub.s32 0, %v1602_v3 }
 0x73e   : > { %v1246_v5 = vpop.permute.xlu1 %1245 }
 0x73f   : > { %1249 = vst.msk [vmem:[#allocation2] sm:$0xff] %vm1248_vm6, %v1246_v5 }
 0x746   : > { %v1362_v6 = vpop.permute.xlu0 %1361 }
 0x747   : > { %1365 = vst.msk [vmem:[#allocation2] sm:$0xff] %vm1364_vm7, %v1362_v6 }
 0x74e   : > { %v1366_v7 = vld [vmem:[#allocation2] sm:$0xff] }
 0x74f   : > { %v1367_v9 = vpack.c.bf16 %v1366_v7, %v1366_v7 }
 0x751   : > { %2520 = vmatmul.mubr.msk.bf16.vlgmr.msra.gmra.mrb[16].mxu1 %vm809_vm0, %v1367_v9 }
 0x752   : > { %2535 = vmatprep.mubr.msk.bf16.mxu1 %vm3094_vm1, %v3093_v8  ;;  %2532 = vmatpush3.bf16.msra.mxu1 %v2725_v23 }
 0x753   : > { %2533 = vmatprep.subr.bf16.mxu1 %v3093_v8 }
 0x756   : > { %2534 = vmatpush3.bf16.msra.mxu1 %v2726_v24 }
 0x757   : > { %2545 = vmatprep.subr.bf16.mxu1 %v3093_v8 }
 0x824   : > { %v1428_v11 = vpop.f32.mrb[16].mxu1 }
 0x825   : > { %v1429_v12 = vadd.f32 %v2380_v10, %v1428_v11  ;;  %v2521_v13 = vpop.f32.mrb[17].mxu1 }
 0x826   : > { %v1431_v14 = vpop.f32.mrb[18].mxu1 }
 0x827   : > { %v3655_v15 = vadd.f32 %v1429_v12, %v3539_v0  ;;  %v2522_v16 = vpop.f32.mrb[19].mxu1  ;;  %v1531_v0 = vld [vmem:[%s695_s21] sm:$0xff] }
 0x828   : > { %v1532_v26 = vpack.c.bf16 %v1531_v0, %v1531_v0 }
 0x829   : > { %v1437_v17 = vsel %vm809_vm0, %v3655_v15, 0.0 }
 0x82a   : > { %1438 = vadd.xlane.f32.xlu1 %v1437_v17  ;;  %2536 = vmatmul.mubr.msk.bf16.vlgmr.msra.gmra.mrb[20].mxu1 %vm809_vm0, %v1532_v26 }
 0x82b   : > { %2547 = vmatprep.mubr.msk.bf16.mxu1 %vm3094_vm1, %v3093_v8 }
 0x8b7   : > { %v1439_v18 = vpop.xlane.xlu1 %1438 }
 0x8b8   : > { %v1440_v19 = vmul.f32 0.03125, %v1439_v18 }
 0x8ba   : > { %v1441_v20 = vsub.f32 %v3655_v15, %v1440_v19 }
 0x8bc   : > { %v1442_v21 = vmul.f32 %v1441_v20, %v1441_v20 }
 0x8be   : > { %v1443_v22 = vsel %vm809_vm0, %v1442_v21, 0.0 }
 0x8bf   : > { %1444 = vadd.xlane.f32.xlu0 %v1443_v22 }
 0x8fd   : > { %v1593_v39 = vpop.f32.mrb[20].mxu1 }
 0x8fe   : > { %v1594_v41 = vadd.f32 %v2390_v38, %v1593_v39  ;;  %v2537_v42 = vpop.f32.mrb[21].mxu1 }
 0x8ff   : > { %v1596_v43 = vpop.f32.mrb[22].mxu1 }
 0x900   : > { %v3685_v44 = vpack.c.bf16 %v1594_v41, %v1594_v41  ;;  %v2538_v45 = vpop.f32.mrb[23].mxu1 }
 0x902   : > { %1716 = vrot.lane.b32.xlu0 %v3685_v44, %s3095_s30  ;;  %v1609_v46 = vsel %vm909_vm2, %v3685_v44, 0 }
 0x94c   : > { %v1445_v29 = vpop.xlane.xlu0 %1444 }
 0x94d   : > { %v1446_v30 = vmul.f32 0.03125, %v1445_v29 }
 0x94f   : > { %v1447_v31 = vadd.f32 1e-05, %v1446_v30 }
 0x951   : > { %2749 = vrsqrt.f32 %v1447_v31 }
 0x95b   : > { %v2750_v25 = vpop.eup %2749 }
 0x95c   : > { %v1449_v33 = vmul.f32 %v2750_v25, %v1441_v20 }
 0x95e   : > { %v1456_v35 = vmul.f32 %v2384_v32, %v1449_v33 }
 0x960   : > { %v1463_v36 = vadd.f32 %v2385_v34, %v1456_v35 }
 0x962   : > { %v1464_v37 = vpack.c.bf16 %v1463_v36, %v1463_v36 }
 0x964   : > { %2528 = vmatmul.mubr.msk.bf16.vlgmr.msra.gmra.mrb[20].mxu0 %vm809_vm0, %v1464_v37 }
 0x965   : > { %2541 = vmatprep.mubr.msk.bf16.mxu0 %vm3094_vm1, %v3093_v8  ;;  %2540 = vmatpush3.bf16.xpose.msra.mxu0 %v1609_v46 }
 0x966   : > { %2551 = vmatprep.subr.bf16.mxu0 %v3093_v8 }
 0x974   : > { %v1717_v51 = vpop.permute.xlu0 %1716 }
 0x975   : > { %v1722_v55 = vsel %vm909_vm2, %v1717_v51, 0 }
 0xa37   : > { %v1525_v48 = vpop.f32.mrb[20].mxu0 }
 0xa38   : > { %v1526_v49 = vadd.f32 %v2386_v47, %v1525_v48  ;;  %v2529_v50 = vpop.f32.mrb[21].mxu0 }
 0xa39   : > { %v1528_v52 = vpop.f32.mrb[22].mxu0 }
 0xa3a   : > { %v1599_v53 = vpack.c.bf16 %v1526_v49, %v1526_v49  ;;  %v2530_v54 = vpop.f32.mrb[23].mxu0 }
 0xa3c   : > { %1829 = vrot.lane.b32.xlu0 %v1599_v53, %s3099_s2  ;;  %1714 = vrot.lane.b32.xlu1 %v1599_v53, %s3095_s30  ;;  %s795_s30 = scalar_select %p794_p1, %s3237_s3, 1 }
 0xa3d   : > { %2542 = vmatmul.mubr.msk.bf16.vlgmr.msra.gmra.mrb[24].mxu0 %vm909_vm2, %v1599_v53 }
 0xa3e   : > { %2552 = vmatpush3.bf16.xpose.msra.mxu0 %v1722_v55  ;;  %2553 = vmatprep.mubr.msk.bf16.mxu0 %vm3094_vm1, %v3093_v8  ;;  %s796_s12 = scalar_lea.vmem %s3942_s0, %s795_s30  ;;  %s793_s0 = scalar_lea.vmem [#allocation17], %s3510_s10 }
 0xa3f   : > { %2563 = vmatprep.subr.bf16.mxu0 %v3093_v8  ;;  %v803_v63 = vld [vmem:[%s796_s12] sm:$0x1]  ;;  %s2172_s12 = sshll.u32 %s793_s0, 4  ;;  %s3790_s12 = int_to_ptr.vmem [resolvable:$true] %s2172_s12 }
 0xa40   : > { %1944 = vrot.lane.b32.xlu0 %v1599_v53, %s3101_s27  ;;  %1831 = vrot.lane.b32.xlu1 %v3685_v44, %s3099_s2  ;;  %v804_v2 = vunpack.c.0.s8 %v803_v63  ;;  %s3947_s2 = sld [smem:[#allocation44_spill]] }
 0xa42   : > { %vm805_vm8 = vcmp.ne.s32.totalorder %v804_v2, 0 }
 0xa43   : > { %v806_v5 = vsel %vm805_vm8, 0.0, %v3102_v40 }
 0xa44   : > { %1946 = vrot.lane.b32.xlu1 %v3685_v44, %s3101_s27  ;;  %v1604_v6 = vrot.slane %v806_v5, %v1603_v4  ;;  %s2409_s27 = sshll.u32 %s3237_s3, 7  ;;  %s3110_s3 = smov [#allocation17]  }
 0xa45   : > { %s3003_s10 = sshll.u32 %s3110_s3, 4  ;;  %s3004_s10 = int_to_ptr.vmem [resolvable:$false] %s3003_s10 }
 0xa46   : > { %p3006_p4 = scmp.lt.s32.totalorder %s3790_s12, %s3004_s10 }
 0xaae   : > { %v1715_v56 = vpop.permute.xlu1 %1714  ;;  %v1830_v60 = vpop.permute.xlu0 %1829 }
 0xaaf   : > { %2554 = vmatmul.mubr.msk.bf16.vlgmr.msra.gmra.mrb[28].mxu0 %vm909_vm2, %v1715_v56 }
 0xab0   : > { %2565 = vmatprep.mubr.msk.bf16.mxu0 %vm3094_vm1, %v3093_v8 }
 0xab2   : > { %v1832_v57 = vpop.permute.xlu1 %1831  ;;  %v1945_v62 = vpop.permute.xlu0 %1944 }
 0xab3   : > { %v1837_v58 = vsel %vm909_vm2, %v1832_v57, 0 }
 0xab4   : > { %2564 = vmatpush3.bf16.xpose.msra.mxu0 %v1837_v58 }
 0xab5   : > { %2575 = vmatprep.subr.bf16.mxu0 %v3093_v8 }
 0xab6   : > { %v1947_v59 = vpop.permute.xlu1 %1946 }
 0xab7   : > { %v1952_v61 = vsel %vm909_vm2, %v1947_v59, 0 }
 0xabb   : > { %2566 = vmatmul.mubr.msk.bf16.vlgmr.msra.gmra.mrb[32].mxu0 %vm909_vm2, %v1830_v60 }
 0xabc   : > { %2576 = vmatpush3.bf16.xpose.msra.mxu0 %v1952_v61  ;;  %2577 = vmatprep.mubr.msk.bf16.mxu0 %vm3094_vm1, %v3093_v8 }
 0xabd   : > { %2587 = vmatprep.subr.bf16.mxu0 %v3093_v8 }
 0xac3   : > { %2578 = vmatmul.mubr.msk.bf16.vlgmr.msra.gmra.mrb[36].mxu0 %vm909_vm2, %v1945_v62 }
 0xac4   : > { %2591 = vmatprep.mubr.msk.bf16.mxu0 %vm3094_vm1, %v3093_v8 }
 0xb10   : > { %v1645_v7 = vpop.f32.mrb[24].mxu0 }
 0xb11   : > { %v1646_v9 = vadd.f32 %v1645_v7, %v1604_v6  ;;  %v2543_v10 = vpop.f32.mrb[25].mxu0 }
 0xb12   : > { %v1648_v11 = vpop.f32.mrb[26].mxu0 }
 0xb13   : > { %v2544_v12 = vpop.f32.mrb[27].mxu0  ;;  %v1651_v13 = vsel %vm909_vm2, %v1646_v9, -inf }
 0xb14   : > { %1652 = vmax.xlane.f32.xlu1 %v1651_v13 }
 0xb82   : > { %v1758_v14 = vpop.f32.mrb[28].mxu0 }
 0xb83   : > { %v1759_v16 = vadd.f32 %v1758_v14, %v1604_v6  ;;  %v2555_v17 = vpop.f32.mrb[29].mxu0 }
 0xb84   : > { %v1761_v18 = vpop.f32.mrb[30].mxu0 }
 0xb85   : > { %v2556_v19 = vpop.f32.mrb[31].mxu0  ;;  %v1764_v20 = vsel %vm909_vm2, %v1759_v16, -inf }
 0xb86   : > { %1765 = vmax.xlane.f32.xlu0 %v1764_v20 }
 0xb8e   : > { %v1873_v21 = vpop.f32.mrb[32].mxu0 }
 0xb8f   : > { %v1874_v22 = vadd.f32 %v1873_v21, %v1604_v6  ;;  %v2567_v40 = vpop.f32.mrb[33].mxu0 }
 0xb90   : > { %v1876_v23 = vpop.f32.mrb[34].mxu0 }
 0xb91   : > { %v2568_v24 = vpop.f32.mrb[35].mxu0  ;;  %v1879_v0 = vsel %vm909_vm2, %v1874_v22, -inf }
 0xb92   : > { %1880 = vmax.xlane.f32.xlu0 %v1879_v0 }
 0xb96   : > { %v1988_v26 = vpop.f32.mrb[36].mxu0 }
 0xb97   : > { %v1989_v27 = vadd.f32 %v1988_v26, %v1604_v6  ;;  %v2579_v28 = vpop.f32.mrb[37].mxu0 }
 0xb98   : > { %v1991_v29 = vpop.f32.mrb[38].mxu0 }
 0xb99   : > { %v2580_v30 = vpop.f32.mrb[39].mxu0  ;;  %v1994_v31 = vsel %vm909_vm2, %v1989_v27, -inf }
 0xb9a   : > { %1995 = vmax.xlane.f32.xlu1 %v1994_v31 }
 0xba1   : > { %v1653_v25 = vpop.xlane.xlu1 %1652 }
 0xba2   : > { %v1654_v32 = vsub.f32 %v1646_v9, %v1653_v25 }
 0xba4   : > { %v1655_v33 = vmul.f32 1.442695, %v1654_v32 }
 0xba6   : > { %2751 = vpow2.f32 %v1655_v33 }
 0xbb0   : > { %v2752_v34 = vpop.eup %2751 }
 0xbb1   : > { %v1657_v35 = vsel %vm909_vm2, %v2752_v34, 0.0 }
 0xbb2   : > { %1658 = vadd.xlane.f32.xlu0 %v1657_v35  ;;  %v2402_v35 = vld [vmem:[%s3944_s1] ss:$0 sm:$0xff]  ;;  %s3005_s1 = scalar_lea.vmem %s3004_s10, 256 }
 0xc13   : > { %v1766_v36 = vpop.xlane.xlu0 %1765 }
 0xc14   : > { %v1767_v37 = vsub.f32 %v1759_v16, %v1766_v36 }
 0xc16   : > { %v1768_v38 = vmul.f32 1.442695, %v1767_v37 }
 0xc18   : > { %2753 = vpow2.f32 %v1768_v38 }
 0xc1f   : > { %v1881_v39 = vpop.xlane.xlu0 %1880 }
 0xc20   : > { %v1882_v41 = vsub.f32 %v1874_v22, %v1881_v39 }
 0xc22   : > { %v2754_v42 = vpop.eup %2753  ;;  %v1883_v43 = vmul.f32 1.442695, %v1882_v41 }
 0xc23   : > { %v1770_v45 = vsel %vm909_vm2, %v2754_v42, 0.0 }
 0xc24   : > { %2755 = vpow2.f32 %v1883_v43  ;;  %1771 = vadd.xlane.f32.xlu1 %v1770_v45 }
 0xc27   : > { %v1996_v48 = vpop.xlane.xlu1 %1995 }
 0xc28   : > { %v1997_v49 = vsub.f32 %v1989_v27, %v1996_v48 }
 0xc2a   : > { %v1998_v50 = vmul.f32 1.442695, %v1997_v49 }
 0xc2c   : > { %2757 = vpow2.f32 %v1998_v50 }
 0xc2e   : > { %v2756_v46 = vpop.eup %2755 }
 0xc2f   : > { %v1885_v47 = vsel %vm909_vm2, %v2756_v46, 0.0 }
 0xc30   : > { %1886 = vadd.xlane.f32.xlu0 %v1885_v47 }
 0xc35   : > { %1776 = vrot.lane.b32.xlu1 %v3685_v44, %s3097_s26 }
 0xc36   : > { %v2758_v51 = vpop.eup %2757 }
 0xc37   : > { %v2000_v52 = vsel %vm909_vm2, %v2758_v51, 0.0 }
 0xc3f   : > { %v1659_v53 = vpop.xlane.xlu0 %1658 }
 0xc40   : > { %2759 = vrcp.f32 %v1659_v53 }
 0xc46   : > { %1664 = vrot.lane.b32.xlu0 %v3685_v44, %s3096_s16 }
 0xc4a   : > { %2006 = vrot.lane.b32.xlu0 %v3685_v44, %s3100_s29  ;;  %v2760_v55 = vpop.eup %2759  ;;  %s3948_s29 = sld [smem:[#allocation45_spill]] }
 0xc4b   : > { %v1661_v57 = vmul.f32 %v2760_v55, %v2752_v34  ;;  %v2407_v55 = vld [vmem:[%s3947_s2] ss:$0 sm:$0xff] }
 0xc4d   : > { %v1662_v61 = vpack.c.bf16 %v1661_v57, %v1661_v57 }
 0xc50   : > { %s3788_s21 = scalar_lea.hbm %s3948_s29, %s2409_s27 }
 0xc59   : > { %2001 = vadd.xlane.f32.xlu1 %v2000_v52 }
 0xc6a   : > { %1891 = vrot.lane.b32.xlu1 %v3685_v44, %s3098_s13  ;;  %s3943_s13 = sld [smem:[#allocation39_spill]] }
 0xc70   : > { %v2729_v40 = vld [vmem:[%s3943_s13] sm:$0xff]   ;;  %v2730_v23 = vld [vmem:[%s3943_s13 + $0x8] sm:$0xff]  }
 0xc71   : > { %2588 = vmatpush3.bf16.msra.mxu0 %v2729_v40 }
 0xc72   : > { %2589 = vmatprep.subr.bf16.mxu0 %v3093_v8 }
 0xc75   : > { %2590 = vmatpush3.bf16.msra.mxu0 %v2730_v23 }
 0xcb1   : > { %v1772_v54 = vpop.xlane.xlu1 %1771 }
 0xcb2   : > { %2761 = vrcp.f32 %v1772_v54 }
 0xcb5   : > { %v1777_v60 = vpop.permute.xlu1 %1776 }
 0xcb6   : > { %v1782_v63 = vsel %vm973_vm4, %v1777_v60, 0 }
 0xcbc   : > { %v2762_v62 = vpop.eup %2761 }
 0xcbd   : > { %v1887_v56 = vpop.xlane.xlu0 %1886  ;;  %v1774_v44 = vmul.f32 %v2762_v62, %v2754_v42 }
 0xcbe   : > { %2763 = vrcp.f32 %v1887_v56 }
 0xcbf   : > { %v1775_v1 = vpack.c.bf16 %v1774_v44, %v1774_v44 }
 0xcc1   : > { %v1665_v58 = vpop.permute.xlu0 %1664 }
 0xcc2   : > { %v1670_v59 = vsel %vm973_vm4, %v1665_v58, 0 }
 0xcc3   : > { %2546 = vmatpush3.bf16.msra.mxu1 %v1670_v59 }
 0xcc4   : > { %2557 = vmatprep.subr.bf16.mxu1 %v3093_v8 }
 0xcc5   : > { %v2007_v7 = vpop.permute.xlu0 %2006 }
 0xcc6   : > { %2548 = vmatmul.mubr.msk.bf16.vlgmr.msra.gmra.mrb[24].mxu1 %vm909_vm2, %v1662_v61  ;;  %v2012_v10 = vsel %vm973_vm4, %v2007_v7, 0 }
 0xcc7   : > { %2558 = vmatpush3.bf16.msra.mxu1 %v1782_v63  ;;  %2559 = vmatprep.mubr.msk.bf16.mxu1 %vm3094_vm1, %v3093_v8 }
 0xcc8   : > { %2569 = vmatprep.subr.bf16.mxu1 %v3093_v8  ;;  %v2764_v2 = vpop.eup %2763 }
 0xcc9   : > { %v1889_v4 = vmul.f32 %v2764_v2, %v2756_v46 }
 0xccb   : > { %v1890_v9 = vpack.c.bf16 %v1889_v4, %v1889_v4 }
 0xcce   : > { %2560 = vmatmul.mubr.msk.bf16.vlgmr.msra.gmra.mrb[28].mxu1 %vm909_vm2, %v1775_v1 }
 0xccf   : > { %2571 = vmatprep.mubr.msk.bf16.mxu1 %vm3094_vm1, %v3093_v8 }
 0xce6   : > { %v2002_v3 = vpop.xlane.xlu1 %2001 }
 0xce7   : > { %2765 = vrcp.f32 %v2002_v3 }
 0xcea   : > { %v1892_v5 = vpop.permute.xlu1 %1891 }
 0xceb   : > { %v1897_v6 = vsel %vm973_vm4, %v1892_v5, 0 }
 0xcec   : > { %2570 = vmatpush3.bf16.msra.mxu1 %v1897_v6 }
 0xced   : > { %2581 = vmatprep.subr.bf16.mxu1 %v3093_v8 }
 0xcef   : > { %2572 = vmatmul.mubr.msk.bf16.vlgmr.msra.gmra.mrb[32].mxu1 %vm909_vm2, %v1890_v9 }
 0xcf0   : > { %2582 = vmatpush3.bf16.msra.mxu1 %v2012_v10  ;;  %2583 = vmatprep.mubr.msk.bf16.mxu1 %vm3094_vm1, %v3093_v8 }
 0xcf1   : > { %v2766_v11 = vpop.eup %2765 }
 0xcf2   : > { %v2004_v12 = vmul.f32 %v2766_v11, %v2758_v51 }
 0xcf4   : > { %v2005_v13 = vpack.c.bf16 %v2004_v12, %v2004_v12 }
 0xcf7   : > { %2584 = vmatmul.mubr.msk.bf16.vlgmr.msra.gmra.mrb[36].mxu1 %vm909_vm2, %v2005_v13 }
 0xd99   : > { %v1706_v14 = vpop.f32.mrb[24].mxu1 }
 0xd9a   : > { %1712 = vst.msk [vmem:[#allocation2] sm:$0xff] %vm909_vm2, %v1706_v14  ;;  %v2549_v16 = vpop.f32.mrb[25].mxu1 }
 0xd9b   : > { %v1709_v17 = vpop.f32.mrb[26].mxu1 }
 0xd9c   : > { %v2550_v18 = vpop.f32.mrb[27].mxu1 }
 0xda1   : > { %v1818_v19 = vpop.f32.mrb[28].mxu1 }
 0xda2   : > { %1825 = vrot.lane.b32.xlu1 %v1818_v19, %s3107_s4  ;;  %v2561_v20 = vpop.f32.mrb[29].mxu1  ;;  %s2159_s4 = scalar_lea.sflag [#allocation5], %s3507_s7 }
 0xda3   : > { %v1821_v21 = vpop.f32.mrb[30].mxu1 }
 0xda4   : > { %v2562_v22 = vpop.f32.mrb[31].mxu1 }
 0xdc2   : > { %v1933_v24 = vpop.f32.mrb[32].mxu1 }
 0xdc3   : > { %1940 = vrot.lane.b32.xlu0 %v1933_v24, %s3108_s9  ;;  %v2573_v0 = vpop.f32.mrb[33].mxu1  ;;  %s2999_s9 = scalar_lea.vmem %s3790_s12, 128 }
 0xdc4   : > { %v1936_v26 = vpop.f32.mrb[34].mxu1  ;;  %p3000_p6 = scmp.ne.s32.totalorder %s3790_s12, %s2999_s9  ;;  %p3007_p10 = scmp.lt.s32.totalorder %s3005_s1, %s2999_s9 }
 0xdc5   : > { %v2574_v27 = vpop.f32.mrb[35].mxu1 }
 0xdc6   : > { %p3008_p11 = por %p3007_p10, %p3006_p4 }
 0xdca   : > { %v2048_v28 = vpop.f32.mrb[36].mxu1 }
 0xdcb   : > { %2055 = vrot.lane.b32.xlu1 %v2048_v28, %s3109_s28  ;;  %v2585_v29 = vpop.f32.mrb[37].mxu1  ;;  %s3945_s28 = sld [smem:[#allocation28_spill]] }
 0xdcc   : > { %v2051_v30 = vpop.f32.mrb[38].mxu1 }
 0xdcd   : > { %v2586_v31 = vpop.f32.mrb[39].mxu1 }
 0xdd1   : > { %p3949_p13 = scmp.ne.s32.totalorder %s3945_s28, 0 }
 0xdd3   : > { %p3001_p5 = pnand %p3000_p6, %p3949_p13 }
 0xdd5   : > { %p3002_p2 = pneg %p3001_p5 }
 0xdd7   : > { %p3009_p8 = pnand %p3008_p11, %p3002_p2 }
 0xe14   : > { %v1826_v25 = vpop.permute.xlu1 %1825 }
 0xe15   : > { %1828 = vst.msk [vmem:[#allocation2] sm:$0xff] %vm1132_vm5, %v1826_v25 }
 0xe35   : > { %v1941_v32 = vpop.permute.xlu0 %1940 }
 0xe36   : > { %1943 = vst.msk [vmem:[#allocation2] sm:$0xff] %vm1248_vm6, %v1941_v32 }
 0xe3d   : > { %v2056_v8 = vpop.permute.xlu1 %2055 }
 0xe3e   : > { %2058 = vst.msk [vmem:[#allocation2] sm:$0xff] %vm1364_vm7, %v2056_v8 }
 0xe45   : > { %v2059_v33 = vld [vmem:[#allocation2] sm:$0xff] }
 0xe46   : > { %v2060_v34 = vpack.c.bf16 %v2059_v33, %v2059_v33 }
 0xe48   : > { %2592 = vmatmul.mubr.msk.bf16.vlgmr.msra.gmra.mrb[40].mxu0 %vm809_vm0, %v2060_v34 }
 0xf1b   : > { %v2121_v36 = vpop.f32.mrb[40].mxu0 }
 0xf1c   : > { %v2122_v37 = vadd.f32 %v2402_v35, %v2121_v36  ;;  %v2593_v38 = vpop.f32.mrb[41].mxu0 }
 0xf1d   : > { %v2124_v39 = vpop.f32.mrb[42].mxu0 }
 0xf1e   : > { %v2594_v41 = vpop.f32.mrb[43].mxu0  ;;  %v2127_v42 = vadd.f32 %v2122_v37, %v3655_v15  ;;  %v2406_v15 = vld [vmem:[%s3946_s6] ss:$0 sm:$0xff] }
 0xf20   : > { %v2130_v43 = vsel %vm809_vm0, %v2127_v42, 0.0 }
 0xf21   : > { %2131 = vadd.xlane.f32.xlu0 %v2130_v43 }
 0xfae   : > { %v2132_v45 = vpop.xlane.xlu0 %2131 }
 0xfaf   : > { %v2133_v46 = vmul.f32 0.03125, %v2132_v45 }
 0xfb1   : > { %v2134_v47 = vsub.f32 %v2127_v42, %v2133_v46 }
 0xfb3   : > { %v2135_v48 = vmul.f32 %v2134_v47, %v2134_v47 }
 0xfb5   : > { %v2136_v49 = vsel %vm809_vm0, %v2135_v48, 0.0 }
 0xfb6   : > { %2137 = vadd.xlane.f32.xlu1 %v2136_v49 }
0x1043   : > { %v2138_v50 = vpop.xlane.xlu1 %2137 }
0x1044   : > { %v2139_v51 = vmul.f32 0.03125, %v2138_v50 }
0x1046   : > { %v2140_v52 = vadd.f32 1e-05, %v2139_v51 }
0x1048   : > { %2767 = vrsqrt.f32 %v2140_v52 }
0x1052   : > { %v2768_v53 = vpop.eup %2767 }
0x1053   : > { %v2142_v54 = vmul.f32 %v2768_v53, %v2134_v47 }
0x1055   : > { %v2149_v56 = vmul.f32 %v2406_v15, %v2142_v54 }
0x1057   : > { %v2156_v57 = vadd.f32 %v2407_v55, %v2149_v56 }
0x1059   : > { %2157 = vst.msk [vmem:[%s793_s0] sm:$0xff] %vm809_vm0, %v2156_v57 }
0x105a   : > { %3012 = shalt.err (!%p3009_p8)
}
0x105b   : > { %s3013_s7 = scalar_lea.hbm %s3788_s21, 128  ;;  %s3017_s6 = scalar_lea.hbm %s3948_s29, 256 }
0x105c   : > { %p3014_p12 = scmp.ne.s32.totalorder %s3788_s21, %s3013_s7  ;;  %p3018_p9 = scmp.lt.u32.totalorder %s3788_s21, %s3948_s29 }
0x105d   : > { %p3019_p3 = scmp.lt.u32.totalorder %s3017_s6, %s3013_s7  ;;  %p3021_p6 = scmp.lt.u32.totalorder %s3013_s7, %s3788_s21 }
0x105e   : > { %p3015_p0 = pnand %p3014_p12, %p3949_p13 }
0x105f   : > { %p3020_p1 = por %p3019_p3, %p3018_p9 }
0x1060   : > { %p3016_p7 = pneg %p3015_p0 }
0x1061   : > { %p3022_p5 = por %p3021_p6, %p3020_p1 }
0x1063   : > { %p3023_p2 = pnand %p3022_p5, %p3016_p7 }
0x1065   : > { %3026 = shalt.err (!%p3023_p2)
}
0x1066   : > { %2621 = dma.vmem_to_hbm [thread:$0]  (%p3949_p13), %s3790_s12, 128, %s3788_s21, %s2159_s4  }
0x1067 PF: > { %s3950_s2 = sld [smem:[#allocation24_spill]]  ;;  %s3951_s27 = sld [smem:[#allocation29_spill]] }
0x1068   : > { %p3953_p10 = scmp.ge.s32.totalorder %s3081_s24, 2 }
0x106d   : > { %s2184_s0 = sand.u32 1, %s3950_s2   ;;  %p3952_p4 = scmp.ne.s32.totalorder %s3951_s27, 0 }
0x106e   : > { %s2185_s16 = scalar_lea.sflag [#allocation5], %s2184_s0 }
0x106f   : > { %p2650_p11 = pnand %p3953_p10, %p3952_p4 }
0x1071   : > { %3064 = dma.done.wait (!%p2650_p11), %s2185_s16, 128  }
0x1072   : > { %3066 = vsyncadd (!%p2650_p11), %s2185_s16, 4294967168  ;;  %s3954_s24 = sld [smem:[#allocation26_spill]]  ;;  %s3955_s26 = sld [smem:[#allocation25_spill]] }
0x1073   : > { %s3956_s23 = sld [smem:[#allocation27_spill]]  ;;  %s3957_s1 = smov %s3073_s22 }
0x1078   : > { %p39_p8 = scmp.ge.s32.totalorder %s3954_s24, 4   ;;  %s3958_s22 = smov %s3955_s26 }
0x107a   :  { %41 = sbr.rel (!%p39_p8) target bundleno = 27 (0x1b), region = 192 }
0x1081   :  { %2190 = vsyncpa [#allocation4], 1 }
0x1082   :  { %2192 = vsyncpa [#allocation4 + $0x1], 1 }
0x1083   :  { %2193 = vsyncpa [#allocation7], 1 }
0x1084   :  { %2195 = vsyncpa [#allocation7 + $0x1], 1 }
0x1085   :  { %2196 = vsyncpa [#allocation10], 1 }
0x1086   :  { %2197 = vsyncpa [#allocation13], 1 }
0x1087   :  { %2198 = vsyncpa [#allocation16], 1 }
0x1088   :  { %2199 = vsyncpa [#allocation5], 1 }
0x1089   :  { %2201 = vsyncpa [#allocation5 + $0x1], 1 }

// kernel: tpu_custom_call.1
= control target key start
LH: loop header
LB: loop body
LE: loop exit
PB: predicated region body
PF: predicated region fallthrough
CT: control target
= control target key end

     0   :  { %s3833_s0 = inlined_call_operand.hbm [shape: f32[2,8,32], index: 0, kind: input, shape index: {}]   ;;  %s3834_s1 = inlined_call_operand.hbm [shape: f32[2,8,32], index: 1, kind: input, shape index: {}]   ;;  %s3835_s2 = inlined_call_operand.hbm [shape: s8[2,8,8], index: 2, kind: input, shape index: {}]   ;;  %s3836_s3 = inlined_call_operand.vmem [shape: s8[2,1,8], index: 3, kind: input, shape index: {}]   ;;  %s3837_s4 = inlined_call_operand.vmem [shape: bf16[32,96], index: 4, kind: input, shape index: {}]   ;;  %s3838_s5 = inlined_call_operand.vmem [shape: f32[1,96], index: 5, kind: input, shape index: {}]   ;;  %s3839_s6 = inlined_call_operand.hbm [shape: bf16[32,32], index: 6, kind: input, shape index: {}]   ;;  %s3840_s7 = inlined_call_operand.hbm [shape: f32[1,32], index: 7, kind: input, shape index: {}]   ;;  %s3841_s8 = inlined_call_operand.vmem [shape: bf16[32,32], index: 8, kind: input, shape index: {}]   ;;  %s3842_s9 = inlined_call_operand.hbm [shape: f32[1,32], index: 9, kind: input, shape index: {}]   ;;  %s3843_s10 = inlined_call_operand.hbm [shape: bf16[32,64], index: 10, kind: input, shape index: {}]   ;;  %s3844_s11 = inlined_call_operand.hbm [shape: f32[1,64], index: 11, kind: input, shape index: {}]   ;;  %s3845_s12 = inlined_call_operand.vmem [shape: bf16[32,32], index: 12, kind: input, shape index: {}]   ;;  %s3846_s13 = inlined_call_operand.vmem [shape: f32[1,32], index: 13, kind: input, shape index: {}]   ;;  %s3847_s14 = inlined_call_operand.vmem [shape: f32[1,32], index: 14, kind: input, shape index: {}]   ;;  %s3848_s15 = inlined_call_operand.vmem [shape: f32[1,32], index: 15, kind: input, shape index: {}]   ;;  %s3849_s16 = inlined_call_operand.vmem [shape: f32[1,32], index: 16, kind: input, shape index: {}]   ;;  %s3850_s17 = inlined_call_operand.vmem [shape: f32[1,32], index: 17, kind: input, shape index: {}]   ;;  %s3851_s18 = inlined_call_operand.vmem [shape: f32[1,32], index: 18, kind: input, shape index: {}]   ;;  %s3852_s19 = inlined_call_operand.vmem [shape: f32[1,32], index: 19, kind: input, shape index: {}]   ;;  %s3853_s20 = inlined_call_operand.hbm [shape: f32[2,8,32], index: 20, kind: output, shape index: {}]  }
   0x1   :  { %3884 = sst [smem:[#allocation30_spill]] %s3833_s0 }
   0x2   :  { %3885 = sst [smem:[#allocation31_spill]] %s3834_s1 }
   0x3   :  { %3886 = sst [smem:[#allocation32_spill]] %s3835_s2 }
   0x4   :  { %3887 = sst [smem:[#allocation33_spill]] %s3836_s3 }
   0x5   :  { %3888 = sst [smem:[#allocation34_spill]] %s3837_s4 }
   0x6   :  { %3889 = sst [smem:[#allocation35_spill]] %s3839_s6 }
   0x7   :  { %3890 = sst [smem:[#allocation36_spill]] %s3840_s7 }
   0x8   :  { %3891 = sst [smem:[#allocation37_spill]] %s3842_s9 }
   0x9   :  { %3892 = sst [smem:[#allocation38_spill]] %s3843_s10 }
   0xa   :  { %3893 = sst [smem:[#allocation39_spill]] %s3845_s12 }
   0xb   :  { %3894 = sst [smem:[#allocation40_spill]] %s3846_s13 }
   0xc   :  { %3895 = sst [smem:[#allocation41_spill]] %s3849_s16 }
   0xd   :  { %3896 = sst [smem:[#allocation42_spill]] %s3850_s17 }
   0xe   :  { %3897 = sst [smem:[#allocation43_spill]] %s3851_s18 }
   0xf   :  { %3898 = sst [smem:[#allocation44_spill]] %s3852_s19 }
  0x10   :  { %3899 = sst [smem:[#allocation45_spill]] %s3853_s20 }
  0x11   :  { %25 = vsyncpa [#allocation4], 0 }
  0x12   :  { %27 = vsyncpa [#allocation4 + $0x1], 0 }
  0x13   :  { %28 = vsyncpa [#allocation7], 0 }
  0x14   :  { %30 = vsyncpa [#allocation7 + $0x1], 0 }
  0x15   :  { %31 = vsyncpa [#allocation10], 0 }
  0x16   :  { %32 = vsyncpa [#allocation13], 0 }
  0x17   :  { %33 = vsyncpa [#allocation16], 0 }
  0x18   :  { %34 = vsyncpa [#allocation5], 0 }
  0x19   :  { %36 = vsyncpa [#allocation5 + $0x1], 0  ;;  %s3216_s1 = smov 0   ;;  %s3218_s22 = smov 0  }
  0x1a   :  { %s3220_s23 = smov 0   ;;  %s3222_s24 = smov 0  }
  0x1b LB: > { %3900 = sst [smem:[#allocation24_spill]] %s3069_s1  ;;  %s3083_s2 = smov [#allocation9]   ;;  %s3081_s24 = sphi %s3222_s24, %s3954_s24   ;;  %s3077_s23 = sphi %s3220_s23, %s3956_s23   ;;  %s3073_s22 = sphi %s3218_s22, %s3958_s22   ;;  %s3069_s1 = sphi %s3216_s1, %s3957_s1  }
  0x1c   : > { %3901 = sst [smem:[#allocation25_spill]] %s3077_s23  ;;  %s531_s25 = sshll.u32 %s3083_s2, 4  ;;  %s3242_s25 = int_to_ptr.vmem [resolvable:$true] %s531_s25 }
  0x1d   : > { %s3237_s3 = sadd.s32 4294967295, %s3081_s24   ;;  %p2343_p0 = scmp.ge.s32.totalorder %s3081_s24, 1 }
  0x1e   : > { %p3870_p1 = scmp.eq.s32.totalorder %s3237_s3, 0  ;;  %p513_p2 = scmp.lt.s32.totalorder %s3081_s24, 3 }
  0x1f   : > { %s3084_s27 = smov [#allocation12]   ;;  %s3904_s6 = sld [smem:[#allocation35_spill]] }
  0x20   : > { %p3244_p3 = pnand %p2343_p0, %p513_p2  ;;  %s559_s28 = sshll.u32 %s3084_s27, 4  ;;  %s3257_s28 = int_to_ptr.vmem [resolvable:$true] %s559_s28 }
  0x22   : > { %s3902_s26 = scalar_select %p3244_p3, 1, 0 }
  0x23   : > { %p2623_p5 = pneg %p3244_p3 }
  0x25   : > { %p3253_p6 = pnand %p2623_p5, %p3870_p1  ;;  %s2769_s0 = scalar_lea.hbm %s3904_s6, 256 }
  0x26   : > { %p2770_p7 = scmp.ne.s32.totalorder %s3904_s6, %s2769_s0  ;;  %p2776_p11 = scmp.lt.u32.totalorder %s2769_s0, %s3904_s6 }
  0x27   : > { %s3903_s4 = scalar_select %p3253_p6, 1, 0 }
  0x28   : > { %p3267_p8 = pneg %p3253_p6 }
  0x2a   : > { %s3905_s20 = scalar_select %p3267_p8, 1, 0 }
  0x2b   : > { %p2772_p9 = pnand %p3267_p8, %p2770_p7 }
  0x2d   : > { %p2773_p10 = pneg %p2772_p9 }
  0x2f   : > { %p2778_p12 = pnand %p2776_p11, %p2773_p10 }
  0x31   : > { %2781 = shalt.err (!%p2778_p12)
}
  0x32   : > { %s2782_s29 = scalar_lea.vmem %s3242_s25, 256  ;;  %p2790_p5 = scmp.lt.s32.totalorder %s3242_s25, %s3242_s25 }
  0x33   : > { %p2783_p13 = scmp.ne.s32.totalorder %s3242_s25, %s2782_s29  ;;  %p2791_p4 = scmp.lt.s32.totalorder %s2782_s29, %s2782_s29 }
  0x35   : > { %p2785_p0 = pnand %p2783_p13, %p3267_p8  ;;  %p2792_p7 = por %p2791_p4, %p2790_p5 }
  0x37   : > { %p2786_p2 = pneg %p2785_p0 }
  0x39   : > { %p2793_p9 = pnand %p2792_p7, %p2786_p2 }
  0x3b   : > { %2796 = shalt.err (!%p2793_p9)
}
  0x3c   : > { %s3861_s30 = smov 64   ;;  %s3862_s19 = smov 4  }
  0x3d   : > { %2626 = dma.hbm_to_vmem [thread:$0]  (!%p3253_p6), %s3904_s6, 256, %s3242_s25, [#allocation10], %s3861_s30, %s3861_s30, %s3862_s19  }
  0x3e   : > { %s3906_s9 = sld [smem:[#allocation37_spill]] }
  0x44   : > { %s2797_s29 = scalar_lea.hbm %s3906_s9, 16 }
  0x45   : > { %p2798_p4 = scmp.ne.s32.totalorder %s3906_s9, %s2797_s29  ;;  %p2804_p12 = scmp.lt.u32.totalorder %s2797_s29, %s3906_s9 }
  0x47   : > { %p2800_p10 = pnand %p2798_p4, %p3267_p8 }
  0x49   : > { %p2801_p11 = pneg %p2800_p10 }
  0x4b   : > { %p2806_p13 = pnand %p2804_p12, %p2801_p11 }
  0x4d   : > { %2809 = shalt.err (!%p2806_p13)
}
  0x4e   : > { %s2810_s25 = scalar_lea.vmem %s3257_s28, 16  ;;  %s2817_s13 = scalar_lea.vmem %s3257_s28, 32 }
  0x4f   : > { %p2811_p0 = scmp.ne.s32.totalorder %s3257_s28, %s2810_s25  ;;  %p2818_p7 = scmp.lt.s32.totalorder %s3257_s28, %s3257_s28 }
  0x50   : > { %p2819_p9 = scmp.lt.s32.totalorder %s2817_s13, %s2810_s25 }
  0x51   : > { %p2813_p2 = pnand %p2811_p0, %p3267_p8 }
  0x52   : > { %p2820_p4 = por %p2819_p9, %p2818_p7 }
  0x53   : > { %p2814_p5 = pneg %p2813_p2 }
  0x55   : > { %p2821_p10 = pnand %p2820_p4, %p2814_p5 }
  0x57   : > { %2824 = shalt.err (!%p2821_p10)
}
  0x58   : > { %2632 = dma.hbm_to_vmem [thread:$0]  (!%p3253_p6), %s3906_s9, 16, %s3257_s28, [#allocation13]  }
  0x59   : > { %s2342_s18 = sadd.s32 4294967294, %s3081_s24   ;;  %s3317_s0 = sadd.s32 1, %s3081_s24  }
  0x5a   : > { %3907 = sst [smem:[#allocation26_spill]] %s3317_s0  ;;  %s46_s21 = ssub.s32 %s3081_s24, %s3317_s0 }
  0x5b   : > { %s49_s2 = sadd.s32 1, %s3077_s23  ;;  %p47_p11 = scmp.eq.s32.totalorder %s46_s21, 0 }
  0x5c   : > { %p56_p12 = scmp.ne.s32.totalorder %s3077_s23, %s3073_s22  ;;  %p57_p13 = scmp.eq.s32.totalorder %s3081_s24, 0 }
  0x5d   : > { %p62_p0 = scmp.ne.s32.totalorder %s3073_s22, %s3069_s1  ;;  %p500_p7 = scmp.eq.s32.totalorder %s3237_s3, 1 }
  0x5e   : > { %s3328_s27 = scalar_select %p47_p11, %s3077_s23, %s49_s2  }
  0x5f   : > { %p58_p2 = por %p57_p13, %p56_p12  ;;  %p3332_p5 = por %p3870_p1, %p62_p0 }
  0x60   : > { %3908 = sst [smem:[#allocation27_spill]] %s3328_s27  ;;  %p506_p9 = scmp.eq.s32.totalorder %s2342_s18, 1 }
  0x61   : > { %s3909_s29 = scalar_select %p3332_p5, 1, 0 }
  0x62   : > { %p2658_p4 = scmp.lt.s32.totalorder %s3081_s24, 2  ;;  %s3339_s28 = sand.u32 1, %s3077_s23  }
  0x63   : > { %p3341_p10 = por %p500_p7, %p56_p12  ;;  %p3345_p3 = por %p506_p9, %p62_p0 }
  0x64   : > { %s3868_s12 = sshll.u32 %s3339_s28, 3  ;;  %s3869_s17 = sshll.u32 %s3081_s24, 7 }
  0x65   : > { %s3910_s25 = scalar_select %p3341_p10, 1, 0 }
  0x66   : > { %s3912_s13 = scalar_select %p3345_p3, 1, 0 }
  0x67   : > { %3911 = sst [smem:[#allocation28_spill]] %s3910_s25  ;;  %p3351_p11 = pnand %p2658_p4, %p58_p2 }
  0x68   : > { %3913 = sst [smem:[#allocation29_spill]] %s3912_s13  ;;  %s636_s18 = sand.u32 1, %s3081_s24  }
  0x69   : > { %s3914_s21 = scalar_select %p3351_p11, 1, 0 }
  0x6a   : > { %s3915_s19 = sld [smem:[#allocation31_spill]]  ;;  %s640_s9 = scalar_lea.vmem [#allocation6], %s3868_s12 }
  0x6b   : > { %s647_s27 = sshll.u32 %s640_s9, 4  ;;  %s3087_s23 = smov [#allocation11]   ;;  %s3365_s27 = int_to_ptr.vmem [resolvable:$true] %s647_s27 }
  0x6c   : > { %s3367_s0 = sshll.u32 %s3087_s23, 4  ;;  %s3369_s13 = scalar_lea.sflag [#allocation7], %s636_s18  ;;  %s546_s0 = int_to_ptr.vmem [resolvable:$true] %s3367_s0 }
  0x6d   : > { %p3375_p13 = pneg %p3351_p11 }
  0x6f   : > { %s3916_s30 = scalar_select %p3375_p13, 1, 0 }
  0x70   : > { %s3361_s6 = scalar_lea.hbm %s3915_s19, %s3869_s17  ;;  %s2830_s12 = scalar_lea.hbm %s3915_s19, 256 }
  0x71   : > { %s2825_s1 = scalar_lea.hbm %s3361_s6, 128  ;;  %p2831_p7 = scmp.lt.u32.totalorder %s3361_s6, %s3915_s19 }
  0x72   : > { %p2826_p12 = scmp.ne.s32.totalorder %s3361_s6, %s2825_s1  ;;  %p2832_p9 = scmp.lt.u32.totalorder %s2830_s12, %s2825_s1 }
  0x73   : > { %p2834_p1 = scmp.lt.u32.totalorder %s2825_s1, %s3361_s6 }
  0x74   : > { %p2828_p0 = pnand %p3375_p13, %p2826_p12  ;;  %p2833_p4 = por %p2832_p9, %p2831_p7 }
  0x76   : > { %p2829_p2 = pneg %p2828_p0  ;;  %p2835_p3 = por %p2834_p1, %p2833_p4 }
  0x78   : > { %p2836_p10 = pnand %p2835_p3, %p2829_p2 }
  0x7a   : > { %2839 = shalt.err (!%p2836_p10)
}
  0x7b   : > { %s2840_s18 = scalar_lea.vmem %s3365_s27, 128  ;;  %s3088_s2 = smov [#allocation6]  }
  0x7c   : > { %p2841_p12 = scmp.ne.s32.totalorder %s3365_s27, %s2840_s18  ;;  %s2845_s9 = sshll.u32 %s3088_s2, 4  ;;  %s2846_s9 = int_to_ptr.vmem [resolvable:$false] %s2845_s9 }
  0x7d   : > { %s2847_s17 = scalar_lea.vmem %s2846_s9, 256  ;;  %p2848_p6 = scmp.lt.s32.totalorder %s3365_s27, %s2846_s9 }
  0x7e   : > { %p2843_p0 = pnand %p2841_p12, %p3375_p13  ;;  %p2849_p8 = scmp.lt.s32.totalorder %s2847_s17, %s2840_s18 }
  0x80   : > { %p2844_p5 = pneg %p2843_p0  ;;  %p2850_p7 = por %p2849_p8, %p2848_p6 }
  0x82   : > { %p2851_p9 = pnand %p2850_p7, %p2844_p5 }
  0x84   : > { %2854 = shalt.err (!%p2851_p9)
}
  0x85   : > { %2645 = dma.hbm_to_vmem [thread:$0]  (!%p3351_p11), %s3361_s6, 128, %s3365_s27, %s3369_s13  }
  0x86   : > { %s3917_s7 = sld [smem:[#allocation36_spill]]  ;;  %p3918_p3 = scmp.ne.s32.totalorder %s3905_s20, 0 }
  0x8c   : > { %s2855_s23 = scalar_lea.hbm %s3917_s7, 16 }
  0x8d   : > { %p2856_p1 = scmp.ne.s32.totalorder %s3917_s7, %s2855_s23  ;;  %p2862_p5 = scmp.lt.u32.totalorder %s2855_s23, %s3917_s7 }
  0x8f   : > { %p2858_p6 = pnand %p2856_p1, %p3918_p3 }
  0x91   : > { %p2859_p8 = pneg %p2858_p6 }
  0x93   : > { %p2864_p10 = pnand %p2862_p5, %p2859_p8 }
  0x95   : > { %2867 = shalt.err (!%p2864_p10)
}
  0x96   : > { %s2868_s17 = scalar_lea.vmem %s546_s0, 16  ;;  %s2875_s6 = scalar_lea.vmem %s546_s0, 32 }
  0x97   : > { %p2869_p2 = scmp.ne.s32.totalorder %s546_s0, %s2868_s17  ;;  %p2876_p0 = scmp.lt.s32.totalorder %s546_s0, %s546_s0 }
  0x98   : > { %p2877_p7 = scmp.lt.s32.totalorder %s2875_s6, %s2868_s17 }
  0x99   : > { %p2871_p4 = pnand %p2869_p2, %p3918_p3 }
  0x9a   : > { %p2878_p9 = por %p2877_p7, %p2876_p0 }
  0x9b   : > { %p2872_p12 = pneg %p2871_p4 }
  0x9d   : > { %p2879_p11 = pnand %p2878_p9, %p2872_p12 }
  0x9f   : > { %2882 = shalt.err (!%p2879_p11)
}
  0xa0   : > { %p3919_p1 = scmp.ne.s32.totalorder %s3903_s4, 0  ;;  %s3089_s1 = smov [#allocation14]  }
  0xa1   : > { %s569_s12 = sshll.u32 %s3089_s1, 4  ;;  %s3090_s23 = smov [#allocation15]   ;;  %s570_s12 = int_to_ptr.vmem [resolvable:$true] %s569_s12 }
  0xa2   : > { %2629 = dma.hbm_to_vmem [thread:$0]  (!%p3919_p1), %s3917_s7, 16, %s546_s0, [#allocation10]  }
  0xa3   : > { %s583_s2 = sshll.u32 %s3090_s23, 4  ;;  %s3920_s10 = sld [smem:[#allocation38_spill]]  ;;  %s584_s2 = int_to_ptr.vmem [resolvable:$true] %s583_s2 }
  0xa9   : > { %s2883_s25 = scalar_lea.hbm %s3920_s10, 256 }
  0xaa   : > { %p2884_p11 = scmp.ne.s32.totalorder %s3920_s10, %s2883_s25  ;;  %p2890_p5 = scmp.lt.u32.totalorder %s2883_s25, %s3920_s10 }
  0xac   : > { %p2886_p6 = pnand %p2884_p11, %p3918_p3 }
  0xae   : > { %p2887_p8 = pneg %p2886_p6 }
  0xb0   : > { %p2892_p10 = pnand %p2890_p5, %p2887_p8 }
  0xb2   : > { %2895 = shalt.err (!%p2892_p10)
}
  0xb3   : > { %s2896_s0 = scalar_lea.vmem %s570_s12, 256  ;;  %p2904_p0 = scmp.lt.s32.totalorder %s570_s12, %s570_s12 }
  0xb4   : > { %p2897_p2 = scmp.ne.s32.totalorder %s570_s12, %s2896_s0  ;;  %p2905_p7 = scmp.lt.s32.totalorder %s2896_s0, %s2896_s0 }
  0xb6   : > { %p2899_p4 = pnand %p2897_p2, %p3918_p3  ;;  %p2906_p9 = por %p2905_p7, %p2904_p0 }
  0xb8   : > { %p2900_p12 = pneg %p2899_p4 }
  0xba   : > { %p2907_p13 = pnand %p2906_p9, %p2900_p12 }
  0xbc   : > { %2910 = shalt.err (!%p2907_p13)
}
  0xbd   : > { %s3921_s27 = smov 4   ;;  %s3922_s1 = smov 64  }
  0xbe   : > { %2635 = dma.hbm_to_vmem [thread:$0]  (!%p3919_p1), %s3920_s10, 256, %s570_s12, [#allocation13], %s3922_s1, %s3922_s1, %s3921_s27  }
  0xbf   : > { %s2911_s9 = scalar_lea.hbm %s3844_s11, 16 }
  0xc0   : > { %p2912_p11 = scmp.ne.s32.totalorder %s3844_s11, %s2911_s9  ;;  %p2918_p8 = scmp.lt.u32.totalorder %s2911_s9, %s3844_s11 }
  0xc2   : > { %p2914_p13 = pnand %p2912_p11, %p3918_p3 }
  0xc4   : > { %p2915_p6 = pneg %p2914_p13 }
  0xc6   : > { %p2920_p5 = pnand %p2918_p8, %p2915_p6 }
  0xc8   : > { %2923 = shalt.err (!%p2920_p5)
}
  0xc9   : > { %s2924_s16 = scalar_lea.vmem %s584_s2, 16  ;;  %s2931_s12 = scalar_lea.vmem %s584_s2, 32 }
  0xca   : > { %p2925_p10 = scmp.ne.s32.totalorder %s584_s2, %s2924_s16  ;;  %p2932_p12 = scmp.lt.s32.totalorder %s584_s2, %s584_s2 }
  0xcb   : > { %p2933_p0 = scmp.lt.s32.totalorder %s2931_s12, %s2924_s16 }
  0xcc   : > { %p2927_p2 = pnand %p2925_p10, %p3918_p3 }
  0xcd   : > { %p2934_p7 = por %p2933_p0, %p2932_p12 }
  0xce   : > { %p2928_p4 = pneg %p2927_p2 }
  0xd0   : > { %p2935_p9 = pnand %p2934_p7, %p2928_p4 }
  0xd2   : > { %2938 = shalt.err (!%p2935_p9)
}
  0xd3   : > { %2638 = dma.hbm_to_vmem [thread:$0]  (!%p3919_p1), %s3844_s11, 16, %s584_s2, [#allocation16]  }
  0xd4   : > { %s3923_s20 = sshll.u32 %s3081_s24, 7  ;;  %s3924_s18 = sld [smem:[#allocation30_spill]] }
  0xd5   : > { %s3925_s17 = sshll.u32 %s3339_s28, 3  ;;  %s2354_s19 = sshll.u32 %s3339_s28, 1 }
  0xd6   : > { %s622_s4 = scalar_lea.vmem [#allocation3], %s3925_s17  ;;  %s619_s0 = scalar_lea.sflag [#allocation4], %s3339_s28 }
  0xd7   : > { %s629_s6 = sshll.u32 %s622_s4, 4  ;;  %p3926_p11 = scmp.ne.s32.totalorder %s3916_s30, 0  ;;  %s630_s6 = int_to_ptr.vmem [resolvable:$true] %s629_s6 }
  0xda   : > { %s3462_s9 = scalar_lea.hbm %s3924_s18, %s3923_s20  ;;  %s2944_s27 = scalar_lea.hbm %s3924_s18, 256 }
  0xdb   : > { %s2939_s16 = scalar_lea.hbm %s3462_s9, 128  ;;  %p2945_p6 = scmp.lt.u32.totalorder %s3462_s9, %s3924_s18 }
  0xdc   : > { %p2940_p3 = scmp.ne.s32.totalorder %s3462_s9, %s2939_s16  ;;  %p2946_p8 = scmp.lt.u32.totalorder %s2944_s27, %s2939_s16 }
  0xdd   : > { %p2948_p10 = scmp.lt.u32.totalorder %s2939_s16, %s3462_s9 }
  0xde   : > { %p2942_p1 = pnand %p2940_p3, %p3926_p11  ;;  %p2947_p5 = por %p2946_p8, %p2945_p6 }
  0xe0   : > { %p2943_p13 = pneg %p2942_p1  ;;  %p2949_p2 = por %p2948_p10, %p2947_p5 }
  0xe2   : > { %p2950_p4 = pnand %p2949_p2, %p2943_p13 }
  0xe4   : > { %2953 = shalt.err (!%p2950_p4)
}
  0xe5   : > { %s2954_s25 = scalar_lea.vmem %s630_s6, 128  ;;  %s3091_s23 = smov [#allocation3]  }
  0xe6   : > { %p2955_p12 = scmp.ne.s32.totalorder %s630_s6, %s2954_s25  ;;  %s2959_s17 = sshll.u32 %s3091_s23, 4  ;;  %s2960_s17 = int_to_ptr.vmem [resolvable:$false] %s2959_s17 }
  0xe7   : > { %s2961_s4 = scalar_lea.vmem %s2960_s17, 256  ;;  %p2962_p9 = scmp.lt.s32.totalorder %s630_s6, %s2960_s17 }
  0xe8   : > { %p2957_p0 = pnand %p2955_p12, %p3926_p11  ;;  %p2963_p3 = scmp.lt.s32.totalorder %s2961_s4, %s2954_s25 }
  0xea   : > { %p2958_p7 = pneg %p2957_p0  ;;  %p2964_p1 = por %p2963_p3, %p2962_p9 }
  0xec   : > { %p2965_p6 = pnand %p2964_p1, %p2958_p7 }
  0xee   : > { %2968 = shalt.err (!%p2965_p6)
}
  0xef   : > { %p3927_p8 = scmp.ne.s32.totalorder %s3914_s21, 0  ;;  %s2355_s16 = sshll.u32 %s3081_s24, 5 }
  0xf0   : > { %s658_s2 = scalar_lea.vmem [#allocation8], %s2354_s19  ;;  %s3928_s20 = sld [smem:[#allocation32_spill]] }
  0xf1   : > { %2642 = dma.hbm_to_vmem [thread:$0]  (!%p3927_p8), %s3462_s9, 128, %s630_s6, %s619_s0  }
  0xf2   : > { %s665_s12 = sshll.u32 %s658_s2, 4  ;;  %s666_s12 = int_to_ptr.vmem [resolvable:$true] %s665_s12 }
  0xf6   : > { %s663_s23 = scalar_lea.hbm %s3928_s20, %s2355_s16  ;;  %s2974_s7 = scalar_lea.hbm %s3928_s20, 64 }
  0xf7   : > { %s2969_s25 = scalar_lea.hbm %s663_s23, 32  ;;  %p2975_p2 = scmp.lt.u32.totalorder %s663_s23, %s3928_s20 }
  0xf8   : > { %p2970_p13 = scmp.ne.s32.totalorder %s663_s23, %s2969_s25  ;;  %p2976_p4 = scmp.lt.u32.totalorder %s2974_s7, %s2969_s25 }
  0xf9   : > { %p2978_p0 = scmp.lt.u32.totalorder %s2969_s25, %s663_s23 }
  0xfa   : > { %p2972_p5 = pnand %p2970_p13, %p3926_p11  ;;  %p2977_p12 = por %p2976_p4, %p2975_p2 }
  0xfc   : > { %p2973_p10 = pneg %p2972_p5  ;;  %p2979_p7 = por %p2978_p0, %p2977_p12 }
  0xfe   : > { %p2980_p9 = pnand %p2979_p7, %p2973_p10 }
 0x100   : > { %2983 = shalt.err (!%p2980_p9)
}
 0x101   : > { %s2984_s28 = scalar_lea.vmem %s666_s12, 32  ;;  %s3092_s6 = smov [#allocation8]  }
 0x102   : > { %p2985_p3 = scmp.ne.s32.totalorder %s666_s12, %s2984_s28  ;;  %s2989_s19 = sshll.u32 %s3092_s6, 4  ;;  %s2990_s19 = int_to_ptr.vmem [resolvable:$false] %s2989_s19 }
 0x103   : > { %s2991_s0 = scalar_lea.vmem %s2990_s19, 64  ;;  %p2992_p13 = scmp.lt.s32.totalorder %s666_s12, %s2990_s19 }
 0x104   : > { %p2987_p1 = pnand %p2985_p3, %p3926_p11  ;;  %p2993_p5 = scmp.lt.s32.totalorder %s2991_s0, %s2984_s28 }
 0x106   : > { %p2988_p6 = pneg %p2987_p1  ;;  %p2994_p8 = por %p2993_p5, %p2992_p13 }
 0x108   : > { %p2995_p2 = pnand %p2994_p8, %p2988_p6 }
 0x10a   : > { %2998 = shalt.err (!%p2995_p2)
}
 0x10b   : > { %p3929_p4 = scmp.ne.s32.totalorder %s3914_s21, 0  ;;  %p3930_p10 = scmp.ne.s32.totalorder %s3902_s26, 0 }
 0x10c   : > { %s3507_s7 = sand.u32 (!%p3930_p10), 1, %s3073_s22   ;;  %p3931_p11 = scmp.ne.s32.totalorder (!%p3930_p10), %s3909_s29, 0 }
 0x10d   : > { %2648 = dma.hbm_to_vmem [thread:$0]  (!%p3929_p4), %s663_s23, 32, %s666_s12, %s3369_s13  }
 0x10e   : > { %680 = sbr.rel (%p3930_p10) target bundleno = 4199 (0x1067), region = 100  ;;  %s3510_s10 = sshll.u32 (!%p3930_p10), %s3507_s7, 3 }
 0x10f   : > { %s683_s30 = scalar_lea.sflag (!%p3930_p10), [#allocation4], %s3507_s7  ;;  %s686_s16 = scalar_lea.vmem (!%p3930_p10), [#allocation3], %s3510_s10 }
 0x115   : > { %3044 = dma.done.wait (%p3931_p11), %s683_s30, 128  }
 0x116   : > { %3046 = vsyncadd (%p3931_p11), %s683_s30, 4294967168  ;;  %s691_s26 = sand.u32 1, %s3237_s3   ;;  %s695_s21 = scalar_lea.vmem [#allocation6], %s3510_s10 }
 0x117   : > { %s692_s13 = scalar_lea.sflag [#allocation7], %s691_s26 }
 0x118   : > { %3048 = dma.done.wait (%p3931_p11), %s692_s13, 160  }
 0x119   : > { %3050 = vsyncadd (%p3931_p11), %s692_s13, 4294967136  ;;  %s2359_s2 = sshll.u32 %s3507_s7, 1  ;;  %p3932_p8 = scmp.eq.s32.totalorder %s3237_s3, 0 }
 0x11a   : > { %s3525_s12 = scalar_lea.vmem [#allocation8], %s2359_s2 }
 0x11b   : > { %3052 = dma.done.wait (%p3932_p8), [#allocation10], 272   ;;  %p3933_p12 = pmov %p3932_p8 }
 0x11c   : > { %p3934_p0 = pmov %p3932_p8 }
 0x11d   : > { %3054 = vsyncadd (%p3933_p12), [#allocation10], 4294967024 }
 0x11e   : > { %3056 = dma.done.wait (%p3934_p0), [#allocation13], 272   ;;  %p3935_p7 = pmov %p3934_p0 }
 0x11f   : > { %p3936_p9 = pmov %p3934_p0 }
 0x120   : > { %3058 = vsyncadd (%p3935_p7), [#allocation13], 4294967024 }
 0x121   : > { %3060 = dma.done.wait (%p3936_p9), [#allocation16], 16   ;;  %p3937_p3 = pmov %p3934_p0 }
 0x122   : > { %vm809_vm0 = vcmask 261120   ;;  %v3539_v0 = vld [vmem:[%s686_s16] sm:$0xff]  ;;  %s3938_s1 = sld [smem:[#allocation34_spill]]  ;;  %v3093_v8 = vmov 0.0   ;;  %vm3094_vm1 = vmmov 0   ;;  %s3095_s30 = smov 120  }
 0x123   : > { %3062 = vsyncadd (%p3937_p3), [#allocation16], 4294967280  ;;  %v810_v1 = vsel %vm809_vm0, %v3539_v0, 0.0  ;;  %2459 = vmatprep.subr.bf16.mxu0 %v3093_v8  ;;  %2463 = vmatprep.mubr.msk.bf16.mxu0 %vm3094_vm1, %v3093_v8  ;;  %v2366_v14 = vld [vmem:[%s3847_s14] ss:$0 sm:$0xff]  ;;  %s3096_s16 = smov 96  }
 0x124   : > { %811 = vadd.xlane.f32.xlu0 %v810_v1  ;;  %2467 = vmatprep.subr.bf16.mxu1 %v3093_v8  ;;  %v2367_v16 = vld [vmem:[%s3848_s15] ss:$0 sm:$0xff]  ;;  %s3097_s26 = smov 88   ;;  %s3098_s13 = smov 80   ;;  %vm909_vm2 = vcmask 64512   ;;  %vm973_vm4 = vcmask 1043456  }
 0x125   : > { %2469 = vmatprep.mubr.msk.bf16.mxu1 %vm3094_vm1, %v3093_v8  ;;  %v2368_v20 = vld [vmem:[%s3838_s5] ss:$0 sm:$0xff]  ;;  %s3099_s2 = smov 112   ;;  %s3100_s29 = smov 72   ;;  %v799_v38 = vld [vmem:[%s3525_s12] sm:$0x3] }
 0x126   : > { %s3101_s27 = smov 104   ;;  %v800_v39 = vunpack.c.0.s8 %v799_v38  ;;  %v3102_v40 = vmov -1e+30   ;;  %s3103_s12 = smov 64   ;;  %vm1132_vm5 = vcmask 130112   ;;  %vm1248_vm6 = vcmask 195712  }
 0x127   : > { %s3105_s23 = smov 48   ;;  %s3106_s17 = smov 40   ;;  %vm1364_vm7 = vcmask 261312  }
 0x128   : > { %s3939_s25 = smov %s3938_s1  ;;  %v2721_v7 = vld [vmem:[%s3938_s1] sm:$0xff]   ;;  %vm801_vm3 = vcmp.ne.s32.totalorder %v800_v39, 0  ;;  %s3104_s1 = smov 56  }
 0x129   : > { %2460 = vmatpush3.bf16.msra.mxu0 %v2721_v7  ;;  %v2722_v9 = vld [vmem:[%s3939_s25 + $0x8] sm:$0xff]   ;;  %v802_v41 = vsel %vm801_vm3, 0.0, %v3102_v40  ;;  %s3107_s4 = smov 8   ;;  %s3108_s9 = smov 16  }
 0x12a   : > { %2461 = vmatprep.subr.bf16.mxu0 %v3093_v8  ;;  %s3109_s28 = smov 24   ;;  %s3941_s19 = sld [smem:[#allocation42_spill]] }
 0x12b   : > { %p794_p1 = scmp.lt.s32.totalorder %s3237_s3, 1  ;;  %s3942_s0 = sld [smem:[#allocation33_spill]] }
 0x12c   : > { %s3946_s6 = sld [smem:[#allocation43_spill]] }
 0x12d   : > { %2462 = vmatpush3.bf16.msra.mxu0 %v2722_v9 }
 0x12e   : > { %2473 = vmatprep.subr.bf16.mxu0 %v3093_v8 }
 0x1b1   : > { %v812_v2 = vpop.xlane.xlu0 %811 }
 0x1b2   : > { %v814_v3 = vmul.f32 0.03125, %v812_v2 }
 0x1b4   : > { %v815_v4 = vsub.f32 %v3539_v0, %v814_v3 }
 0x1b6   : > { %v816_v5 = vmul.f32 %v815_v4, %v815_v4 }
 0x1b8   : > { %v817_v6 = vsel %vm809_vm0, %v816_v5, 0.0 }
 0x1b9   : > { %818 = vadd.xlane.f32.xlu0 %v817_v6 }
 0x246   : > { %v819_v10 = vpop.xlane.xlu0 %818 }
 0x247   : > { %v820_v11 = vmul.f32 0.03125, %v819_v10 }
 0x249   : > { %v821_v12 = vadd.f32 1e-05, %v820_v11 }
 0x24b   : > { %2731 = vrsqrt.f32 %v821_v12 }
 0x255   : > { %v2732_v13 = vpop.eup %2731 }
 0x256   : > { %v823_v15 = vmul.f32 %v2732_v13, %v815_v4 }
 0x258   : > { %v830_v17 = vmul.f32 %v2366_v14, %v823_v15 }
 0x25a   : > { %v837_v18 = vadd.f32 %v2367_v16, %v830_v17 }
 0x25c   : > { %v838_v19 = vpack.c.bf16 %v837_v18, %v837_v18 }
 0x25e   : > { %2464 = vmatmul.mubr.msk.bf16.vlgmr.msra.gmra.mrb[0].mxu0 %vm809_vm0, %v838_v19 }
 0x25f   : > { %2475 = vmatprep.mubr.msk.bf16.mxu0 %vm3094_vm1, %v3093_v8 }
 0x331   : > { %v899_v21 = vpop.f32.mrb[0].mxu0 }
 0x332   : > { %v900_v22 = vadd.f32 %v2368_v20, %v899_v21  ;;  %v2465_v23 = vpop.f32.mrb[1].mxu0 }
 0x333   : > { %v902_v24 = vpop.f32.mrb[2].mxu0 }
 0x334   : > { %v3571_v25 = vpack.c.bf16 %v900_v22, %v900_v22  ;;  %v2466_v26 = vpop.f32.mrb[3].mxu0 }
 0x336   : > { %1018 = vrot.lane.b32.xlu0 %v3571_v25, %s3095_s30  ;;  %907 = vrot.lane.b32.xlu1 %v3571_v25, %s3096_s16 }
 0x33a   : > { %1020 = vrot.lane.b32.xlu1 %v3571_v25, %s3097_s26 }
 0x33e   : > { %1136 = vrot.lane.b32.xlu1 %v3571_v25, %s3098_s13 }
 0x342   : > { %1134 = vrot.lane.b32.xlu1 %v3571_v25, %s3099_s2 }
 0x346   : > { %1252 = vrot.lane.b32.xlu1 %v3571_v25, %s3100_s29 }
 0x34a   : > { %1250 = vrot.lane.b32.xlu1 %v3571_v25, %s3101_s27 }
 0x3a8   : > { %v908_v27 = vpop.permute.xlu1 %907  ;;  %v1019_v32 = vpop.permute.xlu0 %1018 }
 0x3a9   : > { %v914_v28 = vsel %vm909_vm2, %v908_v27, 0 }
 0x3aa   : > { %2468 = vmatpush3.bf16.xpose.msra.mxu1 %v914_v28 }
 0x3ab   : > { %2479 = vmatprep.subr.bf16.mxu1 %v3093_v8 }
 0x3ac   : > { %v1021_v29 = vpop.permute.xlu1 %1020 }
 0x3ad   : > { %v1026_v30 = vsel %vm909_vm2, %v1021_v29, 0 }
 0x3b0   : > { %v1137_v31 = vpop.permute.xlu1 %1136 }
 0x3b1   : > { %2470 = vmatmul.mubr.msk.bf16.vlgmr.msra.gmra.mrb[0].mxu1 %vm909_vm2, %v3571_v25  ;;  %v1142_v34 = vsel %vm909_vm2, %v1137_v31, 0 }
 0x3b2   : > { %2480 = vmatpush3.bf16.xpose.msra.mxu1 %v1026_v30  ;;  %2481 = vmatprep.mubr.msk.bf16.mxu1 %vm3094_vm1, %v3093_v8 }
 0x3b3   : > { %2491 = vmatprep.subr.bf16.mxu1 %v3093_v8 }
 0x3b4   : > { %v1135_v33 = vpop.permute.xlu1 %1134 }
 0x3b8   : > { %v1253_v35 = vpop.permute.xlu1 %1252 }
 0x3b9   : > { %2482 = vmatmul.mubr.msk.bf16.vlgmr.msra.gmra.mrb[4].mxu1 %vm909_vm2, %v1019_v32  ;;  %v1258_v36 = vsel %vm909_vm2, %v1253_v35, 0 }
 0x3ba   : > { %2492 = vmatpush3.bf16.xpose.msra.mxu1 %v1142_v34  ;;  %2493 = vmatprep.mubr.msk.bf16.mxu1 %vm3094_vm1, %v3093_v8 }
 0x3bb   : > { %2503 = vmatprep.subr.bf16.mxu1 %v3093_v8 }
 0x3bc   : > { %v1251_v37 = vpop.permute.xlu1 %1250 }
 0x3c1   : > { %2494 = vmatmul.mubr.msk.bf16.vlgmr.msra.gmra.mrb[8].mxu1 %vm909_vm2, %v1135_v33 }
 0x3c2   : > { %2504 = vmatpush3.bf16.xpose.msra.mxu1 %v1258_v36  ;;  %2505 = vmatprep.mubr.msk.bf16.mxu1 %vm3094_vm1, %v3093_v8 }
 0x3c3   : > { %2515 = vmatprep.subr.bf16.mxu1 %v3093_v8 }
 0x3c9   : > { %2506 = vmatmul.mubr.msk.bf16.vlgmr.msra.gmra.mrb[12].mxu1 %vm909_vm2, %v1251_v37 }
 0x3ca   : > { %2519 = vmatprep.mubr.msk.bf16.mxu1 %vm3094_vm1, %v3093_v8 }
 0x484   : > { %v950_v42 = vpop.f32.mrb[0].mxu1 }
 0x485   : > { %v951_v43 = vadd.f32 %v950_v42, %v802_v41  ;;  %v2471_v44 = vpop.f32.mrb[1].mxu1 }
 0x486   : > { %v953_v45 = vpop.f32.mrb[2].mxu1 }
 0x487   : > { %v2472_v46 = vpop.f32.mrb[3].mxu1  ;;  %v956_v47 = vsel %vm909_vm2, %v951_v43, -inf }
 0x488   : > { %957 = vmax.xlane.f32.xlu1 %v956_v47 }
 0x48c   : > { %v1062_v48 = vpop.f32.mrb[4].mxu1 }
 0x48d   : > { %v1063_v49 = vadd.f32 %v1062_v48, %v802_v41  ;;  %v2483_v50 = vpop.f32.mrb[5].mxu1 }
 0x48e   : > { %v1065_v51 = vpop.f32.mrb[6].mxu1 }
 0x48f   : > { %v2484_v52 = vpop.f32.mrb[7].mxu1  ;;  %v1068_v53 = vsel %vm909_vm2, %v1063_v49, -inf }
 0x490   : > { %1069 = vmax.xlane.f32.xlu0 %v1068_v53 }
 0x494   : > { %v1178_v54 = vpop.f32.mrb[8].mxu1 }
 0x495   : > { %v1179_v55 = vadd.f32 %v1178_v54, %v802_v41  ;;  %v2495_v56 = vpop.f32.mrb[9].mxu1 }
 0x496   : > { %v1181_v57 = vpop.f32.mrb[10].mxu1 }
 0x497   : > { %v2496_v58 = vpop.f32.mrb[11].mxu1  ;;  %v1184_v59 = vsel %vm909_vm2, %v1179_v55, -inf  ;;  %v2723_v57 = vld [vmem:[#allocation9] sm:$0xff]  }
 0x498   : > { %1185 = vmax.xlane.f32.xlu1 %v1184_v59  ;;  %2516 = vmatpush3.bf16.msra.mxu1 %v2723_v57  ;;  %v2724_v58 = vld [vmem:[#allocation9 + $0x8] sm:$0xff]  }
 0x499   : > { %2517 = vmatprep.subr.bf16.mxu1 %v3093_v8 }
 0x49c   : > { %v1294_v60 = vpop.f32.mrb[12].mxu1  ;;  %2518 = vmatpush3.bf16.msra.mxu1 %v2724_v58 }
 0x49d   : > { %v1295_v61 = vadd.f32 %v1294_v60, %v802_v41  ;;  %v2507_v62 = vpop.f32.mrb[13].mxu1  ;;  %2531 = vmatprep.subr.bf16.mxu1 %v3093_v8 }
 0x49e   : > { %v1297_v63 = vpop.f32.mrb[14].mxu1 }
 0x49f   : > { %v2508_v1 = vpop.f32.mrb[15].mxu1  ;;  %v1300_v2 = vsel %vm909_vm2, %v1295_v61, -inf }
 0x4a0   : > { %1301 = vmax.xlane.f32.xlu0 %v1300_v2 }
 0x515   : > { %v958_v3 = vpop.xlane.xlu1 %957 }
 0x516   : > { %v959_v4 = vsub.f32 %v951_v43, %v958_v3 }
 0x518   : > { %v960_v5 = vmul.f32 1.442695, %v959_v4 }
 0x51a   : > { %2733 = vpow2.f32 %v960_v5 }
 0x51d   : > { %v1070_v6 = vpop.xlane.xlu0 %1069 }
 0x51e   : > { %v1071_v7 = vsub.f32 %v1063_v49, %v1070_v6 }
 0x520   : > { %v1072_v9 = vmul.f32 1.442695, %v1071_v7 }
 0x522   : > { %2735 = vpow2.f32 %v1072_v9 }
 0x524   : > { %v2734_v10 = vpop.eup %2733 }
 0x525   : > { %v962_v11 = vsel %vm909_vm2, %v2734_v10, 0.0  ;;  %v1186_v19 = vpop.xlane.xlu1 %1185 }
 0x526   : > { %963 = vadd.xlane.f32.xlu1 %v962_v11  ;;  %v1187_v20 = vsub.f32 %v1179_v55, %v1186_v19 }
 0x528   : > { %v1188_v21 = vmul.f32 1.442695, %v1187_v20 }
 0x52c   : > { %v2736_v12 = vpop.eup %2735 }
 0x52d   : > { %v1302_v13 = vpop.xlane.xlu0 %1301  ;;  %v1074_v14 = vsel %vm909_vm2, %v2736_v12, 0.0 }
 0x52e   : > { %v1303_v15 = vsub.f32 %v1295_v61, %v1302_v13  ;;  %1075 = vadd.xlane.f32.xlu0 %v1074_v14 }
 0x530   : > { %v1304_v16 = vmul.f32 1.442695, %v1303_v15 }
 0x532   : > { %2737 = vpow2.f32 %v1304_v16 }
 0x533   : > { %2739 = vpow2.f32 %v1188_v21 }
 0x537   : > { %968 = vrot.lane.b32.xlu1 %v3571_v25, %s3103_s12 }
 0x53c   : > { %v2738_v17 = vpop.eup %2737 }
 0x53d   : > { %v1306_v18 = vsel %vm909_vm2, %v2738_v17, 0.0  ;;  %v2740_v22 = vpop.eup %2739 }
 0x53e   : > { %1307 = vadd.xlane.f32.xlu0 %v1306_v18  ;;  %v1190_v23 = vsel %vm909_vm2, %v2740_v22, 0.0 }
 0x554   : > { %1080 = vrot.lane.b32.xlu0 %v3571_v25, %s3104_s1  ;;  %s3944_s1 = sld [smem:[#allocation40_spill]] }
 0x55b   : > { %1191 = vadd.xlane.f32.xlu1 %v1190_v23  ;;  %v2725_v23 = vld [vmem:[#allocation14] sm:$0xff]  }
 0x56c   : > { %1196 = vrot.lane.b32.xlu1 %v3571_v25, %s3105_s23  ;;  %s3940_s23 = sld [smem:[#allocation41_spill]] }
 0x570   : > { %1312 = vrot.lane.b32.xlu1 %v3571_v25, %s3106_s17 }
 0x5b3   : > { %v964_v24 = vpop.xlane.xlu1 %963 }
 0x5b4   : > { %2741 = vrcp.f32 %v964_v24  ;;  %v2726_v24 = vld [vmem:[#allocation14 + $0x8] sm:$0xff]  }
 0x5b7   : > { %v969_v26 = vpop.permute.xlu1 %968 }
 0x5b8   : > { %v975_v27 = vsel %vm973_vm4, %v969_v26, 0 }
 0x5b9   : > { %2474 = vmatpush3.bf16.msra.mxu0 %v975_v27  ;;  %v2727_v27 = vld [vmem:[%s3841_s8] sm:$0xff]  }
 0x5ba   : > { %2485 = vmatprep.subr.bf16.mxu0 %v3093_v8 }
 0x5bb   : > { %v1076_v29 = vpop.xlane.xlu0 %1075 }
 0x5bc   : > { %2743 = vrcp.f32 %v1076_v29 }
 0x5be   : > { %v2742_v28 = vpop.eup %2741 }
 0x5bf   : > { %v966_v30 = vmul.f32 %v2742_v28, %v2734_v10  ;;  %v2380_v10 = vld [vmem:[#allocation11] ss:$0 sm:$0xff]  ;;  %v2728_v28 = vld [vmem:[%s3841_s8 + $0x8] sm:$0xff]  }
 0x5c1   : > { %v967_v31 = vpack.c.bf16 %v966_v30, %v966_v30 }
 0x5c3   : > { %2476 = vmatmul.mubr.msk.bf16.vlgmr.msra.gmra.mrb[4].mxu0 %vm909_vm2, %v967_v31 }
 0x5c4   : > { %2487 = vmatprep.mubr.msk.bf16.mxu0 %vm3094_vm1, %v3093_v8 }
 0x5c6   : > { %v2744_v25 = vpop.eup %2743 }
 0x5c7   : > { %v1078_v33 = vmul.f32 %v2744_v25, %v2736_v12 }
 0x5c9   : > { %v1079_v36 = vpack.c.bf16 %v1078_v33, %v1078_v33 }
 0x5cb   : > { %v1308_v32 = vpop.xlane.xlu0 %1307 }
 0x5cf   : > { %v1081_v34 = vpop.permute.xlu0 %1080 }
 0x5d0   : > { %v1086_v35 = vsel %vm973_vm4, %v1081_v34, 0  ;;  %v2385_v34 = vld [vmem:[%s3941_s19] ss:$0 sm:$0xff] }
 0x5d1   : > { %2486 = vmatpush3.bf16.msra.mxu0 %v1086_v35 }
 0x5d2   : > { %2497 = vmatprep.subr.bf16.mxu0 %v3093_v8 }
 0x5d4   : > { %2488 = vmatmul.mubr.msk.bf16.vlgmr.msra.gmra.mrb[8].mxu0 %vm909_vm2, %v1079_v36 }
 0x5d5   : > { %2499 = vmatprep.mubr.msk.bf16.mxu0 %vm3094_vm1, %v3093_v8 }
 0x5e8   : > { %v1192_v37 = vpop.xlane.xlu1 %1191 }
 0x5e9   : > { %2745 = vrcp.f32 %v1192_v37 }
 0x5ea   : > { %2747 = vrcp.f32 %v1308_v32  ;;  %v2384_v32 = vld [vmem:[%s3940_s23] ss:$0 sm:$0xff] }
 0x5ec   : > { %v1197_v38 = vpop.permute.xlu1 %1196 }
 0x5ed   : > { %v1202_v39 = vsel %vm973_vm4, %v1197_v38, 0  ;;  %v2390_v38 = vld [vmem:[#allocation15] ss:$0 sm:$0xff] }
 0x5ee   : > { %2498 = vmatpush3.bf16.msra.mxu0 %v1202_v39 }
 0x5ef   : > { %2509 = vmatprep.subr.bf16.mxu0 %v3093_v8 }
 0x5f0   : > { %v1313_v43 = vpop.permute.xlu1 %1312 }
 0x5f1   : > { %v1318_v46 = vsel %vm973_vm4, %v1313_v43, 0 }
 0x5f3   : > { %v2746_v41 = vpop.eup %2745 }
 0x5f4   : > { %v1194_v42 = vmul.f32 %v2746_v41, %v2740_v22  ;;  %v2748_v45 = vpop.eup %2747 }
 0x5f5   : > { %v1310_v47 = vmul.f32 %v2748_v45, %v2738_v17 }
 0x5f6   : > { %v1195_v44 = vpack.c.bf16 %v1194_v42, %v1194_v42 }
 0x5f7   : > { %v1311_v48 = vpack.c.bf16 %v1310_v47, %v1310_v47  ;;  %v2386_v47 = vld [vmem:[#allocation12] ss:$0 sm:$0xff] }
 0x5f8   : > { %2500 = vmatmul.mubr.msk.bf16.vlgmr.msra.gmra.mrb[12].mxu0 %vm909_vm2, %v1195_v44 }
 0x5f9   : > { %2510 = vmatpush3.bf16.msra.mxu0 %v1318_v46  ;;  %2511 = vmatprep.mubr.msk.bf16.mxu0 %vm3094_vm1, %v3093_v8 }
 0x5fa   : > { %2523 = vmatprep.subr.bf16.mxu0 %v3093_v8 }
 0x600   : > { %2512 = vmatmul.mubr.msk.bf16.vlgmr.msra.gmra.mrb[16].mxu0 %vm909_vm2, %v1311_v48 }
 0x601   : > { %2527 = vmatprep.mubr.msk.bf16.mxu0 %vm3094_vm1, %v3093_v8  ;;  %2524 = vmatpush3.bf16.msra.mxu0 %v2727_v27 }
 0x602   : > { %2525 = vmatprep.subr.bf16.mxu0 %v3093_v8 }
 0x605   : > { %2526 = vmatpush3.bf16.msra.mxu0 %v2728_v28 }
 0x606   : > { %2539 = vmatprep.subr.bf16.mxu0 %v3093_v8 }
 0x696   : > { %v1011_v49 = vpop.f32.mrb[4].mxu0 }
 0x697   : > { %1017 = vst.msk [vmem:[#allocation2] sm:$0xff] %vm909_vm2, %v1011_v49  ;;  %v2477_v50 = vpop.f32.mrb[5].mxu0 }
 0x698   : > { %v1014_v51 = vpop.f32.mrb[6].mxu0 }
 0x699   : > { %v2478_v52 = vpop.f32.mrb[7].mxu0 }
 0x6a7   : > { %v1122_v53 = vpop.f32.mrb[8].mxu0 }
 0x6a8   : > { %1129 = vrot.lane.b32.xlu0 %v1122_v53, %s3107_s4  ;;  %v2489_v54 = vpop.f32.mrb[9].mxu0 }
 0x6a9   : > { %v1125_v55 = vpop.f32.mrb[10].mxu0 }
 0x6aa   : > { %v2490_v56 = vpop.f32.mrb[11].mxu0 }
 0x6cb   : > { %v1238_v59 = vpop.f32.mrb[12].mxu0 }
 0x6cc   : > { %1245 = vrot.lane.b32.xlu1 %v1238_v59, %s3108_s9  ;;  %v2501_v60 = vpop.f32.mrb[13].mxu0 }
 0x6cd   : > { %v1241_v61 = vpop.f32.mrb[14].mxu0 }
 0x6ce   : > { %v2502_v62 = vpop.f32.mrb[15].mxu0 }
 0x6d3   : > { %v1354_v63 = vpop.f32.mrb[16].mxu0 }
 0x6d4   : > { %1361 = vrot.lane.b32.xlu0 %v1354_v63, %s3109_s28  ;;  %v2513_v1 = vpop.f32.mrb[17].mxu0 }
 0x6d5   : > { %v1357_v2 = vpop.f32.mrb[18].mxu0  ;;  %v1601_v1 = vlaneseq }
 0x6d6   : > { %v2514_v3 = vpop.f32.mrb[19].mxu0 }
 0x6d7   : > { %v1602_v3 = vshrl.u32 %v1601_v1, 7 }
 0x71a   : > { %v1130_v4 = vpop.permute.xlu0 %1129 }
 0x71b   : > { %1133 = vst.msk [vmem:[#allocation2] sm:$0xff] %vm1132_vm5, %v1130_v4  ;;  %v1603_v4 = vsub.s32 0, %v1602_v3 }
 0x73e   : > { %v1246_v5 = vpop.permute.xlu1 %1245 }
 0x73f   : > { %1249 = vst.msk [vmem:[#allocation2] sm:$0xff] %vm1248_vm6, %v1246_v5 }
 0x746   : > { %v1362_v6 = vpop.permute.xlu0 %1361 }
 0x747   : > { %1365 = vst.msk [vmem:[#allocation2] sm:$0xff] %vm1364_vm7, %v1362_v6 }
 0x74e   : > { %v1366_v7 = vld [vmem:[#allocation2] sm:$0xff] }
 0x74f   : > { %v1367_v9 = vpack.c.bf16 %v1366_v7, %v1366_v7 }
 0x751   : > { %2520 = vmatmul.mubr.msk.bf16.vlgmr.msra.gmra.mrb[16].mxu1 %vm809_vm0, %v1367_v9 }
 0x752   : > { %2535 = vmatprep.mubr.msk.bf16.mxu1 %vm3094_vm1, %v3093_v8  ;;  %2532 = vmatpush3.bf16.msra.mxu1 %v2725_v23 }
 0x753   : > { %2533 = vmatprep.subr.bf16.mxu1 %v3093_v8 }
 0x756   : > { %2534 = vmatpush3.bf16.msra.mxu1 %v2726_v24 }
 0x757   : > { %2545 = vmatprep.subr.bf16.mxu1 %v3093_v8 }
 0x824   : > { %v1428_v11 = vpop.f32.mrb[16].mxu1 }
 0x825   : > { %v1429_v12 = vadd.f32 %v2380_v10, %v1428_v11  ;;  %v2521_v13 = vpop.f32.mrb[17].mxu1 }
 0x826   : > { %v1431_v14 = vpop.f32.mrb[18].mxu1 }
 0x827   : > { %v3655_v15 = vadd.f32 %v1429_v12, %v3539_v0  ;;  %v2522_v16 = vpop.f32.mrb[19].mxu1  ;;  %v1531_v0 = vld [vmem:[%s695_s21] sm:$0xff] }
 0x828   : > { %v1532_v26 = vpack.c.bf16 %v1531_v0, %v1531_v0 }
 0x829   : > { %v1437_v17 = vsel %vm809_vm0, %v3655_v15, 0.0 }
 0x82a   : > { %1438 = vadd.xlane.f32.xlu1 %v1437_v17  ;;  %2536 = vmatmul.mubr.msk.bf16.vlgmr.msra.gmra.mrb[20].mxu1 %vm809_vm0, %v1532_v26 }
 0x82b   : > { %2547 = vmatprep.mubr.msk.bf16.mxu1 %vm3094_vm1, %v3093_v8 }
 0x8b7   : > { %v1439_v18 = vpop.xlane.xlu1 %1438 }
 0x8b8   : > { %v1440_v19 = vmul.f32 0.03125, %v1439_v18 }
 0x8ba   : > { %v1441_v20 = vsub.f32 %v3655_v15, %v1440_v19 }
 0x8bc   : > { %v1442_v21 = vmul.f32 %v1441_v20, %v1441_v20 }
 0x8be   : > { %v1443_v22 = vsel %vm809_vm0, %v1442_v21, 0.0 }
 0x8bf   : > { %1444 = vadd.xlane.f32.xlu0 %v1443_v22 }
 0x8fd   : > { %v1593_v39 = vpop.f32.mrb[20].mxu1 }
 0x8fe   : > { %v1594_v41 = vadd.f32 %v2390_v38, %v1593_v39  ;;  %v2537_v42 = vpop.f32.mrb[21].mxu1 }
 0x8ff   : > { %v1596_v43 = vpop.f32.mrb[22].mxu1 }
 0x900   : > { %v3685_v44 = vpack.c.bf16 %v1594_v41, %v1594_v41  ;;  %v2538_v45 = vpop.f32.mrb[23].mxu1 }
 0x902   : > { %1716 = vrot.lane.b32.xlu0 %v3685_v44, %s3095_s30  ;;  %v1609_v46 = vsel %vm909_vm2, %v3685_v44, 0 }
 0x94c   : > { %v1445_v29 = vpop.xlane.xlu0 %1444 }
 0x94d   : > { %v1446_v30 = vmul.f32 0.03125, %v1445_v29 }
 0x94f   : > { %v1447_v31 = vadd.f32 1e-05, %v1446_v30 }
 0x951   : > { %2749 = vrsqrt.f32 %v1447_v31 }
 0x95b   : > { %v2750_v25 = vpop.eup %2749 }
 0x95c   : > { %v1449_v33 = vmul.f32 %v2750_v25, %v1441_v20 }
 0x95e   : > { %v1456_v35 = vmul.f32 %v2384_v32, %v1449_v33 }
 0x960   : > { %v1463_v36 = vadd.f32 %v2385_v34, %v1456_v35 }
 0x962   : > { %v1464_v37 = vpack.c.bf16 %v1463_v36, %v1463_v36 }
 0x964   : > { %2528 = vmatmul.mubr.msk.bf16.vlgmr.msra.gmra.mrb[20].mxu0 %vm809_vm0, %v1464_v37 }
 0x965   : > { %2541 = vmatprep.mubr.msk.bf16.mxu0 %vm3094_vm1, %v3093_v8  ;;  %2540 = vmatpush3.bf16.xpose.msra.mxu0 %v1609_v46 }
 0x966   : > { %2551 = vmatprep.subr.bf16.mxu0 %v3093_v8 }
 0x974   : > { %v1717_v51 = vpop.permute.xlu0 %1716 }
 0x975   : > { %v1722_v55 = vsel %vm909_vm2, %v1717_v51, 0 }
 0xa37   : > { %v1525_v48 = vpop.f32.mrb[20].mxu0 }
 0xa38   : > { %v1526_v49 = vadd.f32 %v2386_v47, %v1525_v48  ;;  %v2529_v50 = vpop.f32.mrb[21].mxu0 }
 0xa39   : > { %v1528_v52 = vpop.f32.mrb[22].mxu0 }
 0xa3a   : > { %v1599_v53 = vpack.c.bf16 %v1526_v49, %v1526_v49  ;;  %v2530_v54 = vpop.f32.mrb[23].mxu0 }
 0xa3c   : > { %1829 = vrot.lane.b32.xlu0 %v1599_v53, %s3099_s2  ;;  %1714 = vrot.lane.b32.xlu1 %v1599_v53, %s3095_s30  ;;  %s795_s30 = scalar_select %p794_p1, %s3237_s3, 1 }
 0xa3d   : > { %2542 = vmatmul.mubr.msk.bf16.vlgmr.msra.gmra.mrb[24].mxu0 %vm909_vm2, %v1599_v53 }
 0xa3e   : > { %2552 = vmatpush3.bf16.xpose.msra.mxu0 %v1722_v55  ;;  %2553 = vmatprep.mubr.msk.bf16.mxu0 %vm3094_vm1, %v3093_v8  ;;  %s796_s12 = scalar_lea.vmem %s3942_s0, %s795_s30  ;;  %s793_s0 = scalar_lea.vmem [#allocation17], %s3510_s10 }
 0xa3f   : > { %2563 = vmatprep.subr.bf16.mxu0 %v3093_v8  ;;  %v803_v63 = vld [vmem:[%s796_s12] sm:$0x1]  ;;  %s2172_s12 = sshll.u32 %s793_s0, 4  ;;  %s3790_s12 = int_to_ptr.vmem [resolvable:$true] %s2172_s12 }
 0xa40   : > { %1944 = vrot.lane.b32.xlu0 %v1599_v53, %s3101_s27  ;;  %1831 = vrot.lane.b32.xlu1 %v3685_v44, %s3099_s2  ;;  %v804_v2 = vunpack.c.0.s8 %v803_v63  ;;  %s3947_s2 = sld [smem:[#allocation44_spill]] }
 0xa42   : > { %vm805_vm8 = vcmp.ne.s32.totalorder %v804_v2, 0 }
 0xa43   : > { %v806_v5 = vsel %vm805_vm8, 0.0, %v3102_v40 }
 0xa44   : > { %1946 = vrot.lane.b32.xlu1 %v3685_v44, %s3101_s27  ;;  %v1604_v6 = vrot.slane %v806_v5, %v1603_v4  ;;  %s2409_s27 = sshll.u32 %s3237_s3, 7  ;;  %s3110_s3 = smov [#allocation17]  }
 0xa45   : > { %s3003_s10 = sshll.u32 %s3110_s3, 4  ;;  %s3004_s10 = int_to_ptr.vmem [resolvable:$false] %s3003_s10 }
 0xa46   : > { %p3006_p4 = scmp.lt.s32.totalorder %s3790_s12, %s3004_s10 }
 0xaae   : > { %v1715_v56 = vpop.permute.xlu1 %1714  ;;  %v1830_v60 = vpop.permute.xlu0 %1829 }
 0xaaf   : > { %2554 = vmatmul.mubr.msk.bf16.vlgmr.msra.gmra.mrb[28].mxu0 %vm909_vm2, %v1715_v56 }
 0xab0   : > { %2565 = vmatprep.mubr.msk.bf16.mxu0 %vm3094_vm1, %v3093_v8 }
 0xab2   : > { %v1832_v57 = vpop.permute.xlu1 %1831  ;;  %v1945_v62 = vpop.permute.xlu0 %1944 }
 0xab3   : > { %v1837_v58 = vsel %vm909_vm2, %v1832_v57, 0 }
 0xab4   : > { %2564 = vmatpush3.bf16.xpose.msra.mxu0 %v1837_v58 }
 0xab5   : > { %2575 = vmatprep.subr.bf16.mxu0 %v3093_v8 }
 0xab6   : > { %v1947_v59 = vpop.permute.xlu1 %1946 }
 0xab7   : > { %v1952_v61 = vsel %vm909_vm2, %v1947_v59, 0 }
 0xabb   : > { %2566 = vmatmul.mubr.msk.bf16.vlgmr.msra.gmra.mrb[32].mxu0 %vm909_vm2, %v1830_v60 }
 0xabc   : > { %2576 = vmatpush3.bf16.xpose.msra.mxu0 %v1952_v61  ;;  %2577 = vmatprep.mubr.msk.bf16.mxu0 %vm3094_vm1, %v3093_v8 }
 0xabd   : > { %2587 = vmatprep.subr.bf16.mxu0 %v3093_v8 }
 0xac3   : > { %2578 = vmatmul.mubr.msk.bf16.vlgmr.msra.gmra.mrb[36].mxu0 %vm909_vm2, %v1945_v62 }
 0xac4   : > { %2591 = vmatprep.mubr.msk.bf16.mxu0 %vm3094_vm1, %v3093_v8 }
 0xb10   : > { %v1645_v7 = vpop.f32.mrb[24].mxu0 }
 0xb11   : > { %v1646_v9 = vadd.f32 %v1645_v7, %v1604_v6  ;;  %v2543_v10 = vpop.f32.mrb[25].mxu0 }
 0xb12   : > { %v1648_v11 = vpop.f32.mrb[26].mxu0 }
 0xb13   : > { %v2544_v12 = vpop.f32.mrb[27].mxu0  ;;  %v1651_v13 = vsel %vm909_vm2, %v1646_v9, -inf }
 0xb14   : > { %1652 = vmax.xlane.f32.xlu1 %v1651_v13 }
 0xb82   : > { %v1758_v14 = vpop.f32.mrb[28].mxu0 }
 0xb83   : > { %v1759_v16 = vadd.f32 %v1758_v14, %v1604_v6  ;;  %v2555_v17 = vpop.f32.mrb[29].mxu0 }
 0xb84   : > { %v1761_v18 = vpop.f32.mrb[30].mxu0 }
 0xb85   : > { %v2556_v19 = vpop.f32.mrb[31].mxu0  ;;  %v1764_v20 = vsel %vm909_vm2, %v1759_v16, -inf }
 0xb86   : > { %1765 = vmax.xlane.f32.xlu0 %v1764_v20 }
 0xb8e   : > { %v1873_v21 = vpop.f32.mrb[32].mxu0 }
 0xb8f   : > { %v1874_v22 = vadd.f32 %v1873_v21, %v1604_v6  ;;  %v2567_v40 = vpop.f32.mrb[33].mxu0 }
 0xb90   : > { %v1876_v23 = vpop.f32.mrb[34].mxu0 }
 0xb91   : > { %v2568_v24 = vpop.f32.mrb[35].mxu0  ;;  %v1879_v0 = vsel %vm909_vm2, %v1874_v22, -inf }
 0xb92   : > { %1880 = vmax.xlane.f32.xlu0 %v1879_v0 }
 0xb96   : > { %v1988_v26 = vpop.f32.mrb[36].mxu0 }
 0xb97   : > { %v1989_v27 = vadd.f32 %v1988_v26, %v1604_v6  ;;  %v2579_v28 = vpop.f32.mrb[37].mxu0 }
 0xb98   : > { %v1991_v29 = vpop.f32.mrb[38].mxu0 }
 0xb99   : > { %v2580_v30 = vpop.f32.mrb[39].mxu0  ;;  %v1994_v31 = vsel %vm909_vm2, %v1989_v27, -inf }
 0xb9a   : > { %1995 = vmax.xlane.f32.xlu1 %v1994_v31 }
 0xba1   : > { %v1653_v25 = vpop.xlane.xlu1 %1652 }
 0xba2   : > { %v1654_v32 = vsub.f32 %v1646_v9, %v1653_v25 }
 0xba4   : > { %v1655_v33 = vmul.f32 1.442695, %v1654_v32 }
 0xba6   : > { %2751 = vpow2.f32 %v1655_v33 }
 0xbb0   : > { %v2752_v34 = vpop.eup %2751 }
 0xbb1   : > { %v1657_v35 = vsel %vm909_vm2, %v2752_v34, 0.0 }
 0xbb2   : > { %1658 = vadd.xlane.f32.xlu0 %v1657_v35  ;;  %v2402_v35 = vld [vmem:[%s3944_s1] ss:$0 sm:$0xff]  ;;  %s3005_s1 = scalar_lea.vmem %s3004_s10, 256 }
 0xc13   : > { %v1766_v36 = vpop.xlane.xlu0 %1765 }
 0xc14   : > { %v1767_v37 = vsub.f32 %v1759_v16, %v1766_v36 }
 0xc16   : > { %v1768_v38 = vmul.f32 1.442695, %v1767_v37 }
 0xc18   : > { %2753 = vpow2.f32 %v1768_v38 }
 0xc1f   : > { %v1881_v39 = vpop.xlane.xlu0 %1880 }
 0xc20   : > { %v1882_v41 = vsub.f32 %v1874_v22, %v1881_v39 }
 0xc22   : > { %v2754_v42 = vpop.eup %2753  ;;  %v1883_v43 = vmul.f32 1.442695, %v1882_v41 }
 0xc23   : > { %v1770_v45 = vsel %vm909_vm2, %v2754_v42, 0.0 }
 0xc24   : > { %2755 = vpow2.f32 %v1883_v43  ;;  %1771 = vadd.xlane.f32.xlu1 %v1770_v45 }
 0xc27   : > { %v1996_v48 = vpop.xlane.xlu1 %1995 }
 0xc28   : > { %v1997_v49 = vsub.f32 %v1989_v27, %v1996_v48 }
 0xc2a   : > { %v1998_v50 = vmul.f32 1.442695, %v1997_v49 }
 0xc2c   : > { %2757 = vpow2.f32 %v1998_v50 }
 0xc2e   : > { %v2756_v46 = vpop.eup %2755 }
 0xc2f   : > { %v1885_v47 = vsel %vm909_vm2, %v2756_v46, 0.0 }
 0xc30   : > { %1886 = vadd.xlane.f32.xlu0 %v1885_v47 }
 0xc35   : > { %1776 = vrot.lane.b32.xlu1 %v3685_v44, %s3097_s26 }
 0xc36   : > { %v2758_v51 = vpop.eup %2757 }
 0xc37   : > { %v2000_v52 = vsel %vm909_vm2, %v2758_v51, 0.0 }
 0xc3f   : > { %v1659_v53 = vpop.xlane.xlu0 %1658 }
 0xc40   : > { %2759 = vrcp.f32 %v1659_v53 }
 0xc46   : > { %1664 = vrot.lane.b32.xlu0 %v3685_v44, %s3096_s16 }
 0xc4a   : > { %2006 = vrot.lane.b32.xlu0 %v3685_v44, %s3100_s29  ;;  %v2760_v55 = vpop.eup %2759  ;;  %s3948_s29 = sld [smem:[#allocation45_spill]] }
 0xc4b   : > { %v1661_v57 = vmul.f32 %v2760_v55, %v2752_v34  ;;  %v2407_v55 = vld [vmem:[%s3947_s2] ss:$0 sm:$0xff] }
 0xc4d   : > { %v1662_v61 = vpack.c.bf16 %v1661_v57, %v1661_v57 }
 0xc50   : > { %s3788_s21 = scalar_lea.hbm %s3948_s29, %s2409_s27 }
 0xc59   : > { %2001 = vadd.xlane.f32.xlu1 %v2000_v52 }
 0xc6a   : > { %1891 = vrot.lane.b32.xlu1 %v3685_v44, %s3098_s13  ;;  %s3943_s13 = sld [smem:[#allocation39_spill]] }
 0xc70   : > { %v2729_v40 = vld [vmem:[%s3943_s13] sm:$0xff]   ;;  %v2730_v23 = vld [vmem:[%s3943_s13 + $0x8] sm:$0xff]  }
 0xc71   : > { %2588 = vmatpush3.bf16.msra.mxu0 %v2729_v40 }
 0xc72   : > { %2589 = vmatprep.subr.bf16.mxu0 %v3093_v8 }
 0xc75   : > { %2590 = vmatpush3.bf16.msra.mxu0 %v2730_v23 }
 0xcb1   : > { %v1772_v54 = vpop.xlane.xlu1 %1771 }
 0xcb2   : > { %2761 = vrcp.f32 %v1772_v54 }
 0xcb5   : > { %v1777_v60 = vpop.permute.xlu1 %1776 }
 0xcb6   : > { %v1782_v63 = vsel %vm973_vm4, %v1777_v60, 0 }
 0xcbc   : > { %v2762_v62 = vpop.eup %2761 }
 0xcbd   : > { %v1887_v56 = vpop.xlane.xlu0 %1886  ;;  %v1774_v44 = vmul.f32 %v2762_v62, %v2754_v42 }
 0xcbe   : > { %2763 = vrcp.f32 %v1887_v56 }
 0xcbf   : > { %v1775_v1 = vpack.c.bf16 %v1774_v44, %v1774_v44 }
 0xcc1   : > { %v1665_v58 = vpop.permute.xlu0 %1664 }
 0xcc2   : > { %v1670_v59 = vsel %vm973_vm4, %v1665_v58, 0 }
 0xcc3   : > { %2546 = vmatpush3.bf16.msra.mxu1 %v1670_v59 }
 0xcc4   : > { %2557 = vmatprep.subr.bf16.mxu1 %v3093_v8 }
 0xcc5   : > { %v2007_v7 = vpop.permute.xlu0 %2006 }
 0xcc6   : > { %2548 = vmatmul.mubr.msk.bf16.vlgmr.msra.gmra.mrb[24].mxu1 %vm909_vm2, %v1662_v61  ;;  %v2012_v10 = vsel %vm973_vm4, %v2007_v7, 0 }
 0xcc7   : > { %2558 = vmatpush3.bf16.msra.mxu1 %v1782_v63  ;;  %2559 = vmatprep.mubr.msk.bf16.mxu1 %vm3094_vm1, %v3093_v8 }
 0xcc8   : > { %2569 = vmatprep.subr.bf16.mxu1 %v3093_v8  ;;  %v2764_v2 = vpop.eup %2763 }
 0xcc9   : > { %v1889_v4 = vmul.f32 %v2764_v2, %v2756_v46 }
 0xccb   : > { %v1890_v9 = vpack.c.bf16 %v1889_v4, %v1889_v4 }
 0xcce   : > { %2560 = vmatmul.mubr.msk.bf16.vlgmr.msra.gmra.mrb[28].mxu1 %vm909_vm2, %v1775_v1 }
 0xccf   : > { %2571 = vmatprep.mubr.msk.bf16.mxu1 %vm3094_vm1, %v3093_v8 }
 0xce6   : > { %v2002_v3 = vpop.xlane.xlu1 %2001 }
 0xce7   : > { %2765 = vrcp.f32 %v2002_v3 }
 0xcea   : > { %v1892_v5 = vpop.permute.xlu1 %1891 }
 0xceb   : > { %v1897_v6 = vsel %vm973_vm4, %v1892_v5, 0 }
 0xcec   : > { %2570 = vmatpush3.bf16.msra.mxu1 %v1897_v6 }
 0xced   : > { %2581 = vmatprep.subr.bf16.mxu1 %v3093_v8 }
 0xcef   : > { %2572 = vmatmul.mubr.msk.bf16.vlgmr.msra.gmra.mrb[32].mxu1 %vm909_vm2, %v1890_v9 }
 0xcf0   : > { %2582 = vmatpush3.bf16.msra.mxu1 %v2012_v10  ;;  %2583 = vmatprep.mubr.msk.bf16.mxu1 %vm3094_vm1, %v3093_v8 }
 0xcf1   : > { %v2766_v11 = vpop.eup %2765 }
 0xcf2   : > { %v2004_v12 = vmul.f32 %v2766_v11, %v2758_v51 }
 0xcf4   : > { %v2005_v13 = vpack.c.bf16 %v2004_v12, %v2004_v12 }
 0xcf7   : > { %2584 = vmatmul.mubr.msk.bf16.vlgmr.msra.gmra.mrb[36].mxu1 %vm909_vm2, %v2005_v13 }
 0xd99   : > { %v1706_v14 = vpop.f32.mrb[24].mxu1 }
 0xd9a   : > { %1712 = vst.msk [vmem:[#allocation2] sm:$0xff] %vm909_vm2, %v1706_v14  ;;  %v2549_v16 = vpop.f32.mrb[25].mxu1 }
 0xd9b   : > { %v1709_v17 = vpop.f32.mrb[26].mxu1 }
 0xd9c   : > { %v2550_v18 = vpop.f32.mrb[27].mxu1 }
 0xda1   : > { %v1818_v19 = vpop.f32.mrb[28].mxu1 }
 0xda2   : > { %1825 = vrot.lane.b32.xlu1 %v1818_v19, %s3107_s4  ;;  %v2561_v20 = vpop.f32.mrb[29].mxu1  ;;  %s2159_s4 = scalar_lea.sflag [#allocation5], %s3507_s7 }
 0xda3   : > { %v1821_v21 = vpop.f32.mrb[30].mxu1 }
 0xda4   : > { %v2562_v22 = vpop.f32.mrb[31].mxu1 }
 0xdc2   : > { %v1933_v24 = vpop.f32.mrb[32].mxu1 }
 0xdc3   : > { %1940 = vrot.lane.b32.xlu0 %v1933_v24, %s3108_s9  ;;  %v2573_v0 = vpop.f32.mrb[33].mxu1  ;;  %s2999_s9 = scalar_lea.vmem %s3790_s12, 128 }
 0xdc4   : > { %v1936_v26 = vpop.f32.mrb[34].mxu1  ;;  %p3000_p6 = scmp.ne.s32.totalorder %s3790_s12, %s2999_s9  ;;  %p3007_p10 = scmp.lt.s32.totalorder %s3005_s1, %s2999_s9 }
 0xdc5   : > { %v2574_v27 = vpop.f32.mrb[35].mxu1 }
 0xdc6   : > { %p3008_p11 = por %p3007_p10, %p3006_p4 }
 0xdca   : > { %v2048_v28 = vpop.f32.mrb[36].mxu1 }
 0xdcb   : > { %2055 = vrot.lane.b32.xlu1 %v2048_v28, %s3109_s28  ;;  %v2585_v29 = vpop.f32.mrb[37].mxu1  ;;  %s3945_s28 = sld [smem:[#allocation28_spill]] }
 0xdcc   : > { %v2051_v30 = vpop.f32.mrb[38].mxu1 }
 0xdcd   : > { %v2586_v31 = vpop.f32.mrb[39].mxu1 }
 0xdd1   : > { %p3949_p13 = scmp.ne.s32.totalorder %s3945_s28, 0 }
 0xdd3   : > { %p3001_p5 = pnand %p3000_p6, %p3949_p13 }
 0xdd5   : > { %p3002_p2 = pneg %p3001_p5 }
 0xdd7   : > { %p3009_p8 = pnand %p3008_p11, %p3002_p2 }
 0xe14   : > { %v1826_v25 = vpop.permute.xlu1 %1825 }
 0xe15   : > { %1828 = vst.msk [vmem:[#allocation2] sm:$0xff] %vm1132_vm5, %v1826_v25 }
 0xe35   : > { %v1941_v32 = vpop.permute.xlu0 %1940 }
 0xe36   : > { %1943 = vst.msk [vmem:[#allocation2] sm:$0xff] %vm1248_vm6, %v1941_v32 }
 0xe3d   : > { %v2056_v8 = vpop.permute.xlu1 %2055 }
 0xe3e   : > { %2058 = vst.msk [vmem:[#allocation2] sm:$0xff] %vm1364_vm7, %v2056_v8 }
 0xe45   : > { %v2059_v33 = vld [vmem:[#allocation2] sm:$0xff] }
 0xe46   : > { %v2060_v34 = vpack.c.bf16 %v2059_v33, %v2059_v33 }
 0xe48   : > { %2592 = vmatmul.mubr.msk.bf16.vlgmr.msra.gmra.mrb[40].mxu0 %vm809_vm0, %v2060_v34 }
 0xf1b   : > { %v2121_v36 = vpop.f32.mrb[40].mxu0 }
 0xf1c   : > { %v2122_v37 = vadd.f32 %v2402_v35, %v2121_v36  ;;  %v2593_v38 = vpop.f32.mrb[41].mxu0 }
 0xf1d   : > { %v2124_v39 = vpop.f32.mrb[42].mxu0 }
 0xf1e   : > { %v2594_v41 = vpop.f32.mrb[43].mxu0  ;;  %v2127_v42 = vadd.f32 %v2122_v37, %v3655_v15  ;;  %v2406_v15 = vld [vmem:[%s3946_s6] ss:$0 sm:$0xff] }
 0xf20   : > { %v2130_v43 = vsel %vm809_vm0, %v2127_v42, 0.0 }
 0xf21   : > { %2131 = vadd.xlane.f32.xlu0 %v2130_v43 }
 0xfae   : > { %v2132_v45 = vpop.xlane.xlu0 %2131 }
 0xfaf   : > { %v2133_v46 = vmul.f32 0.03125, %v2132_v45 }
 0xfb1   : > { %v2134_v47 = vsub.f32 %v2127_v42, %v2133_v46 }
 0xfb3   : > { %v2135_v48 = vmul.f32 %v2134_v47, %v2134_v47 }
 0xfb5   : > { %v2136_v49 = vsel %vm809_vm0, %v2135_v48, 0.0 }
 0xfb6   : > { %2137 = vadd.xlane.f32.xlu1 %v2136_v49 }
0x1043   : > { %v2138_v50 = vpop.xlane.xlu1 %2137 }
0x1044   : > { %v2139_v51 = vmul.f32 0.03125, %v2138_v50 }
0x1046   : > { %v2140_v52 = vadd.f32 1e-05, %v2139_v51 }
0x1048   : > { %2767 = vrsqrt.f32 %v2140_v52 }
0x1052   : > { %v2768_v53 = vpop.eup %2767 }
0x1053   : > { %v2142_v54 = vmul.f32 %v2768_v53, %v2134_v47 }
0x1055   : > { %v2149_v56 = vmul.f32 %v2406_v15, %v2142_v54 }
0x1057   : > { %v2156_v57 = vadd.f32 %v2407_v55, %v2149_v56 }
0x1059   : > { %2157 = vst.msk [vmem:[%s793_s0] sm:$0xff] %vm809_vm0, %v2156_v57 }
0x105a   : > { %3012 = shalt.err (!%p3009_p8)
}
0x105b   : > { %s3013_s7 = scalar_lea.hbm %s3788_s21, 128  ;;  %s3017_s6 = scalar_lea.hbm %s3948_s29, 256 }
0x105c   : > { %p3014_p12 = scmp.ne.s32.totalorder %s3788_s21, %s3013_s7  ;;  %p3018_p9 = scmp.lt.u32.totalorder %s3788_s21, %s3948_s29 }
0x105d   : > { %p3019_p3 = scmp.lt.u32.totalorder %s3017_s6, %s3013_s7  ;;  %p3021_p6 = scmp.lt.u32.totalorder %s3013_s7, %s3788_s21 }
0x105e   : > { %p3015_p0 = pnand %p3014_p12, %p3949_p13 }
0x105f   : > { %p3020_p1 = por %p3019_p3, %p3018_p9 }
0x1060   : > { %p3016_p7 = pneg %p3015_p0 }
0x1061   : > { %p3022_p5 = por %p3021_p6, %p3020_p1 }
0x1063   : > { %p3023_p2 = pnand %p3022_p5, %p3016_p7 }
0x1065   : > { %3026 = shalt.err (!%p3023_p2)
}
0x1066   : > { %2621 = dma.vmem_to_hbm [thread:$0]  (%p3949_p13), %s3790_s12, 128, %s3788_s21, %s2159_s4  }
0x1067 PF: > { %s3950_s2 = sld [smem:[#allocation24_spill]]  ;;  %s3951_s27 = sld [smem:[#allocation29_spill]] }
0x1068   : > { %p3953_p10 = scmp.ge.s32.totalorder %s3081_s24, 2 }
0x106d   : > { %s2184_s0 = sand.u32 1, %s3950_s2   ;;  %p3952_p4 = scmp.ne.s32.totalorder %s3951_s27, 0 }
0x106e   : > { %s2185_s16 = scalar_lea.sflag [#allocation5], %s2184_s0 }
0x106f   : > { %p2650_p11 = pnand %p3953_p10, %p3952_p4 }
0x1071   : > { %3064 = dma.done.wait (!%p2650_p11), %s2185_s16, 128  }
0x1072   : > { %3066 = vsyncadd (!%p2650_p11), %s2185_s16, 4294967168  ;;  %s3954_s24 = sld [smem:[#allocation26_spill]]  ;;  %s3955_s26 = sld [smem:[#allocation25_spill]] }
0x1073   : > { %s3956_s23 = sld [smem:[#allocation27_spill]]  ;;  %s3957_s1 = smov %s3073_s22 }
0x1078   : > { %p39_p8 = scmp.ge.s32.totalorder %s3954_s24, 4   ;;  %s3958_s22 = smov %s3955_s26 }
0x107a   :  { %41 = sbr.rel (!%p39_p8) target bundleno = 27 (0x1b), region = 192 }
0x1081   :  { %2190 = vsyncpa [#allocation4], 1 }
0x1082   :  { %2192 = vsyncpa [#allocation4 + $0x1], 1 }
0x1083   :  { %2193 = vsyncpa [#allocation7], 1 }
0x1084   :  { %2195 = vsyncpa [#allocation7 + $0x1], 1 }
0x1085   :  { %2196 = vsyncpa [#allocation10], 1 }
0x1086   :  { %2197 = vsyncpa [#allocation13], 1 }
0x1087   :  { %2198 = vsyncpa [#allocation16], 1 }
0x1088   :  { %2199 = vsyncpa [#allocation5], 1 }
0x1089   :  { %2201 = vsyncpa [#allocation5 + $0x1], 1 }

</bundles_post_ra>
